<compile_context>
chip_gen: v7x
topology: tpu7x:2x2x1
jax: 0.10.0
libtpu: 0.0.40
codegen_flags: <defaults>
</compile_context>

<pallas_src>
import math

import jax
import jax.numpy as jnp
from jax import lax
from jax.experimental import pallas as pl
from jax.experimental.pallas import tpu as pltpu


def out_dim(in_d, padding, dilation, kernel, stride):
    return int((in_d + 2 * padding - dilation * (kernel - 1) - 1) // stride + 1)


def _round_up(x, m):
    return (x + m - 1) // m * m


# ---------------------------------------------------------------------------
# Static layout shared by the kernel builder and the host-side weight packer
# ---------------------------------------------------------------------------
def _layout(c_dict, B, T, window_size):
    K = c_dict['kernel_conv']; sc = c_dict['stride_conv']; dc = c_dict['dilation_conv']
    KP = c_dict['kernel_pool']; sp = c_dict['stride_pool']; dp = c_dict['dilation_pool']
    C = c_dict['nb_channel']; H = c_dict['hidden_size']
    n_conv = c_dict['nb_conv_layers']; n_rnn = c_dict['nb_rnn_layers']
    NB = 2 if c_dict['envelope_input'] else 1
    power = bool(c_dict['power_features_input'])
    N = B * T

    conv_dims = []            # (Cin, L_out, P_out) per conv layer
    conv_col = []             # (weight_col_off, bias_col_off) per conv layer
    L, cin, col = window_size, 1, 0
    for _ in range(n_conv):
        L_out = out_dim(L, 0, dc, K, sc)
        P_out = out_dim(L_out, 0, dp, KP, sp)
        conv_dims.append((cin, L_out, P_out))
        conv_col.append((col, col + C * cin * K))
        col += C * cin * K + C
        L, cin = P_out, C
    conv_cols = col
    Dcnn = C * L              # output_cnn_size per branch

    GW = 3 * NB * H           # packed gate width: [r | z | n], each NB*H lanes
    row = 0
    wih_off, whh_off, bias_off = [], [], []
    for l in range(n_rnn):
        din = Dcnn if l == 0 else H
        wih_off.append(row); row += _round_up(NB * din, 8)   # block-diag W_ih
        whh_off.append(row); row += _round_up(NB * H, 8)     # block-diag W_hh
        bias_off.append(row); row += 8                       # row0: b_ih, row1: b_hh
    fc_off = row; row += 8                                   # row0: [fc_w | fc_b | fc_w3]
    w_rows = row

    return dict(K=K, sc=sc, dc=dc, KP=KP, sp=sp, dp=dp, C=C, H=H,
                n_conv=n_conv, n_rnn=n_rnn, NB=NB, power=power,
                B=B, T=T, N=N, window=window_size,
                conv_dims=conv_dims, conv_col=conv_col, conv_cols=conv_cols,
                Dcnn=Dcnn, GW=GW, wih_off=wih_off, whh_off=whh_off,
                bias_off=bias_off, fc_off=fc_off, w_rows=w_rows)


# ---------------------------------------------------------------------------
# Fused whole-network kernel
# ---------------------------------------------------------------------------
def _build_kernel(lo):
    K, sc, dc = lo['K'], lo['sc'], lo['dc']
    KP, sp, dp = lo['KP'], lo['sp'], lo['dp']
    C, H = lo['C'], lo['H']
    NB, power = lo['NB'], lo['power']
    B, T, N = lo['B'], lo['T'], lo['N']
    n_rnn, Dcnn = lo['n_rnn'], lo['Dcnn']
    conv_dims, conv_col = lo['conv_dims'], lo['conv_col']
    wih_off, whh_off = lo['wih_off'], lo['whh_off']
    bias_off, fc_off = lo['bias_off'], lo['fc_off']
    HH = NB * H
    NBN = NB * N

    def kernel(*refs):
        i = 0
        x_ref = refs[i]; i += 1          # (NB*N, window)   branches stacked on sublanes
        h0_ref = refs[i]; i += 1         # (Lr, B, NB*H)    branches stacked on lanes
        x3_ref = None
        if power:
            x3_ref = refs[i]; i += 1     # (B, 1)
        maxin_ref = refs[i]; i += 1      # (1, 1) SMEM
        conv_ref = refs[i]; i += 1       # (NB*N, conv_cols) packed conv weights/biases
        w_ref = refs[i]; i += 1          # (w_rows, GW)      packed GRU/FC weights
        out_ref = refs[i]; i += 1        # (B, 1)
        hn_ref = refs[i]; i += 1         # (Lr, B, NB*H)
        mx_ref = refs[i]; i += 1         # (1, 1) SMEM
        seq_ref = refs[i]; i += 1        # (N, NB*H) VMEM scratch (per-step GRU outputs)

        # ------------------------------------------------------------------
        # Conv1d + bias + ReLU + MaxPool1d for BOTH branches at once:
        # sublane-stacked (NB*N, L) slabs, per-branch weight columns, pure VPU.
        # ------------------------------------------------------------------
        x = x_ref[...]
        cw = conv_ref[...]
        chans = [x]
        conv_maxes = []
        for (cin, L_out, P_out), (w_off, b_off) in zip(conv_dims, conv_col):
            accs = [None] * C
            for c in range(cin):
                xc = chans[c]
                for k in range(K):
                    s0 = k * dc
                    # tap computed once, reused across all C output channels
                    tap = lax.slice(xc, (0, s0),
                                    (NBN, s0 + (L_out - 1) * sc + 1), (1, sc))
                    for o in range(C):
                        j = w_off + (o * cin + c) * K + k
                        term = tap * cw[:, j:j + 1]          # per-branch weight column
                        accs[o] = term if accs[o] is None else accs[o] + term
            new_chans = []
            for o in range(C):
                y = jnp.maximum(accs[o] + cw[:, b_off + o:b_off + o + 1], 0.0)
                pooled = None
                for p in range(KP):                           # MaxPool1d
                    s0 = p * dp
                    ys = lax.slice(y, (0, s0),
                                   (NBN, s0 + (P_out - 1) * sp + 1), (1, sp))
                    pooled = ys if pooled is None else jnp.maximum(pooled, ys)
                new_chans.append(pooled)
            chans = new_chans
            # deferred abs-max: elementwise tree + ONE reduction per layer
            m = chans[0]
            for po in chans[1:]:
                m = jnp.maximum(m, po)
            conv_maxes.append(jnp.max(m))      # post-ReLU/maxpool => already >= 0

        # channel-major lane blocks == torch.flatten((N, C, L)) ordering
        flat2n = jnp.concatenate(chans, axis=-1)              # (NB*N, Dcnn)
        if NB == 2:
            # restack branches from sublanes to lanes for the block-diag GRU
            flat = jnp.concatenate([flat2n[:N, :], flat2n[N:, :]], axis=-1)
        else:
            flat = flat2n                                     # (N, NB*Dcnn)

        # ------------------------------------------------------------------
        # GRU stack: gates merged (one matmul/step), branches lane-stacked.
        # ------------------------------------------------------------------
        seq_in = flat
        h = None
        for l in range(n_rnn):
            din_tot = NB * (Dcnn if l == 0 else H)
            wih = w_ref[wih_off[l]:wih_off[l] + din_tot, :]   # block-diag (din_tot, GW)
            whh = w_ref[whh_off[l]:whh_off[l] + HH, :]        # block-diag (HH, GW)
            bih = w_ref[bias_off[l]:bias_off[l] + 1, :]       # (1, GW)
            bhh = w_ref[bias_off[l] + 1:bias_off[l] + 2, :]   # (1, GW)
            # hoisted input projection: one matmul for all T steps, 3 gates, NB branches
            gi_all = jnp.dot(seq_in, wih,
                             preferred_element_type=jnp.float32) + bih     # (N, GW)
            h = h0_ref[l]                                     # (B, HH)
            for t in range(T):
                gi = gi_all[t * B:(t + 1) * B, :]
                gh = jnp.dot(h, whh, preferred_element_type=jnp.float32) + bhh
                r = jax.nn.sigmoid(gi[:, 0:HH] + gh[:, 0:HH])
                z = jax.nn.sigmoid(gi[:, HH:2 * HH] + gh[:, HH:2 * HH])
                n = jnp.tanh(gi[:, 2 * HH:3 * HH] + r * gh[:, 2 * HH:3 * HH])
                h = (1.0 - z) * n + z * h
                seq_ref[t * B:(t + 1) * B, :] = h             # bound vreg live ranges
            hn_ref[l] = h
            if l + 1 < n_rnn:
                seq_in = seq_ref[...]                         # next layer's input sequence
        # torch tracks max(|.|) over the top-layer GRU output sequence only
        seq_max = jnp.max(jnp.abs(seq_ref[...]))

        # ------------------------------------------------------------------
        # Final Linear + sigmoid (+ deferred abs-max combine)
        # ------------------------------------------------------------------
        fc_row = w_ref[fc_off:fc_off + 1, :]                  # [fc_w(HH) | fc_b | fc_w3]
        logits = jnp.sum(h * fc_row[:, 0:HH], axis=-1, keepdims=True)      # (B, 1)
        if power:
            logits = logits + x3_ref[...] * fc_row[:, HH + 1:HH + 2]
        logits = logits + fc_row[:, HH:HH + 1]
        logit_max = jnp.max(jnp.abs(logits))
        out_ref[...] = jax.nn.sigmoid(logits)

        mx = maxin_ref[0, 0]
        for m in conv_maxes:
            mx = jnp.maximum(mx, m)
        mx = jnp.maximum(mx, seq_max)
        mx = jnp.maximum(mx, logit_max)
        mx_ref[0, 0] = mx

    return kernel


# ---------------------------------------------------------------------------
# Host-side weight packing into the two consolidated operands
# ---------------------------------------------------------------------------
def pack_params(params, c_dict, B, T, window_size):
    lo = _layout(c_dict, B, T, window_size)
    NB, N, C, K, H = lo['NB'], lo['N'], lo['C'], lo['K'], lo['H']
    n_rnn, Dcnn, GW = lo['n_rnn'], lo['Dcnn'], lo['GW']

    # conv slab: per-branch weights/biases broadcast as (NB*N, 1) sublane columns
    conv_slab = jnp.zeros((NB * N, lo['conv_cols']), jnp.float32)
    conv_names = ['conv1'] + (['conv2'] if NB == 2 else [])
    for b, name in enumerate(conv_names):
        rows = slice(b * N, (b + 1) * N)
        for l, (w_flat, bias) in enumerate(params[name]):
            cin = lo['conv_dims'][l][0]
            w_off, b_off = lo['conv_col'][l]
            ncw = C * cin * K
            conv_slab = conv_slab.at[rows, w_off:w_off + ncw].set(
                jnp.broadcast_to(w_flat.reshape(1, ncw), (N, ncw)))
            conv_slab = conv_slab.at[rows, b_off:b_off + C].set(
                jnp.broadcast_to(bias.reshape(1, C), (N, C)))

    # GRU/FC slab: gate-merged, branch block-diagonal weights + biases + fc row
    w_slab = jnp.zeros((lo['w_rows'], GW), jnp.float32)
    gru_names = ['gru1'] + (['gru2'] if NB == 2 else [])
    for l in range(n_rnn):
        din = Dcnn if l == 0 else H
        for b, name in enumerate(gru_names):
            w_ih, w_hh, b_ih, b_hh = params[name][l]          # torch layouts, gates r,z,n
            for g in range(3):
                cg = g * NB * H + b * H
                w_slab = w_slab.at[lo['wih_off'][l] + b * din:
                                   lo['wih_off'][l] + (b + 1) * din,
                                   cg:cg + H].set(w_ih[g * H:(g + 1) * H, :].T)
                w_slab = w_slab.at[lo['whh_off'][l] + b * H:
                                   lo['whh_off'][l] + (b + 1) * H,
                                   cg:cg + H].set(w_hh[g * H:(g + 1) * H, :].T)
                w_slab = w_slab.at[lo['bias_off'][l], cg:cg + H].set(
                    b_ih[g * H:(g + 1) * H])
                w_slab = w_slab.at[lo['bias_off'][l] + 1, cg:cg + H].set(
                    b_hh[g * H:(g + 1) * H])
    fc_w, fc_b = params['fc_w'], params['fc_b']               # (1, fc_feat), (1,)
    w_slab = w_slab.at[lo['fc_off'], 0:NB * H].set(fc_w[0, 0:NB * H])
    w_slab = w_slab.at[lo['fc_off'], NB * H].set(fc_b[0])
    if lo['power']:
        w_slab = w_slab.at[lo['fc_off'], NB * H + 1].set(fc_w[0, NB * H])

    return dict(conv_slab=conv_slab, w_slab=w_slab)


# ---------------------------------------------------------------------------
# Forward factory: builds the single fused pallas_call
# ---------------------------------------------------------------------------
def make_portiloop_forward(c_dict, exp_config, B, T, window_size):
    assert c_dict['RNN'], "TODO(synk): RNN=False FcModule path not implemented"
    lo = _layout(c_dict, B, T, window_size)
    NB, power, N, H, Lr = lo['NB'], lo['power'], lo['N'], lo['H'], lo['n_rnn']
    W = window_size
    kernel = _build_kernel(lo)

    vmem = pl.BlockSpec(memory_space=pltpu.MemorySpace.VMEM)
    smem = pl.BlockSpec(memory_space=pltpu.MemorySpace.SMEM)

    def forward(packed, x1, x2, x3, h1, h2, max_value=jnp.inf):
        if exp_config['ablation'] == 1:
            x1 = x2
        elif exp_config['ablation'] == 2:
            x2 = x1

        # time-major rows (row = t*B + b); branches stacked along sublanes / lanes
        x1_tm = jnp.transpose(x1, (1, 0, 2)).reshape(N, W).astype(jnp.float32)
        if NB == 2:
            x2_tm = jnp.transpose(x2, (1, 0, 2)).reshape(N, W).astype(jnp.float32)
            x_cat = jnp.concatenate([x1_tm, x2_tm], axis=0)
            h_cat = jnp.concatenate([h1, h2], axis=-1).astype(jnp.float32)
        else:
            x_cat = x1_tm
            h_cat = h1.astype(jnp.float32)

        inputs = [x_cat, h_cat]
        in_specs = [vmem, vmem]
        if power:
            inputs.append(jnp.asarray(x3, jnp.float32).reshape(B, 1))
            in_specs.append(vmem)
        inputs.append(jnp.full((1, 1), max_value, jnp.float32))
        in_specs.append(smem)
        inputs += [packed['conv_slab'], packed['w_slab']]
        in_specs += [vmem, vmem]

        out_shape = (jax.ShapeDtypeStruct((B, 1), jnp.float32),
                     jax.ShapeDtypeStruct((Lr, B, NB * H), jnp.float32),
                     jax.ShapeDtypeStruct((1, 1), jnp.float32))
        out_specs = (vmem, vmem, smem)

        out, hn_cat, mx = pl.pallas_call(
            kernel,
            out_shape=out_shape,
            in_specs=in_specs,
            out_specs=out_specs,
            scratch_shapes=[pltpu.VMEM((N, NB * H), jnp.float32)],
        )(*inputs)

        hn1 = hn_cat[..., :H]
        hn2 = hn_cat[..., H:] if NB == 2 else None
        return out, hn1, hn2, mx[0, 0]

    return forward


# ---------------------------------------------------------------------------
# Parameter init (deterministic, shapes follow PortiloopNetwork.__init__)
# ---------------------------------------------------------------------------
def init_params(key, c_dict, window_size):
    C = c_dict['nb_channel']; H = c_dict['hidden_size']; K = c_dict['kernel_conv']
    n_conv = c_dict['nb_conv_layers']; n_rnn = c_dict['nb_rnn_layers']
    envelope = c_dict['envelope_input']; power = c_dict['power_features_input']

    nb_out = window_size
    for _ in range(n_conv):
        nb_out = out_dim(nb_out, 0, c_dict['dilation_conv'], K, c_dict['stride_conv'])
        nb_out = out_dim(nb_out, 0, c_dict['dilation_pool'], c_dict['kernel_pool'],
                         c_dict['stride_pool'])
    output_cnn_size = int(C * nb_out)

    keys = iter(jax.random.split(key, 256))

    def uni(shape, fan_in):
        bound = 1.0 / math.sqrt(fan_in)
        return jax.random.uniform(next(keys), shape, jnp.float32, -bound, bound)

    def conv_stack():
        layers, cin = [], 1
        for _ in range(n_conv):
            w = uni((C, cin, K), cin * K)             # torch Conv1d (Cout, Cin, K)
            b = uni((C,), cin * K)
            layers.append((w.reshape(-1), b))         # flattened in (o, c, k) order
            cin = C
        return layers

    def gru_stack():
        layers, din = [], output_cnn_size
        for _ in range(n_rnn):
            w_ih = uni((3 * H, din), H)               # torch GRU gate order: r, z, n
            w_hh = uni((3 * H, H), H)
            b_ih = uni((3 * H,), H)
            b_hh = uni((3 * H,), H)
            layers.append((w_ih, w_hh, b_ih, b_hh))
            din = H
        return layers

    fc_features = H + (H if envelope else 0) + (1 if power else 0)
    params = dict(conv1=conv_stack(), gru1=gru_stack(),
                  fc_w=uni((1, fc_features), fc_features),
                  fc_b=uni((1,), fc_features))
    if envelope:
        params['conv2'] = conv_stack()
        params['gru2'] = gru_stack()
    return params


if __name__ == "__main__":
    c_dict = dict(
        RNN=True, stride_pool=1, stride_conv=1, kernel_conv=5, kernel_pool=5,
        nb_channel=4, hidden_size=8, window_size_s=0.128, dropout=0.5,
        dilation_conv=1, dilation_pool=1, fe=250, nb_conv_layers=2,
        nb_rnn_layers=1, first_layer_dropout=False, envelope_input=True,
        power_features_input=True, classification=True,
    )
    exp_config = {'ablation': 0}
    window_size = int(c_dict['window_size_s'] * c_dict['fe'])   # 32

    B, T = 2, 3
    k = jax.random.split(jax.random.PRNGKey(0), 5)

    params = init_params(k[0], c_dict, window_size)
    packed = pack_params(params, c_dict, B, T, window_size)

    x1 = jax.random.normal(k[1], (B, T, window_size), jnp.float32)
    x2 = jax.random.normal(k[2], (B, T, window_size), jnp.float32)
    x3 = jax.random.normal(k[3], (B,), jnp.float32)
    h1 = jnp.zeros((c_dict['nb_rnn_layers'], B, c_dict['hidden_size']), jnp.float32)
    h2 = jnp.zeros((c_dict['nb_rnn_layers'], B, c_dict['hidden_size']), jnp.float32)

    forward = make_portiloop_forward(c_dict, exp_config, B, T, window_size)
    out, hn1, hn2, max_value = forward(packed, x1, x2, x3, h1, h2, max_value=0.0)
    jax.block_until_ready((out, hn1, hn2, max_value))

    assert out.shape == (B, 1)
    assert hn1.shape == (c_dict['nb_rnn_layers'], B, c_dict['hidden_size'])
    assert hn2.shape == (c_dict['nb_rnn_layers'], B, c_dict['hidden_size'])
    assert max_value.shape == ()
    print("KERNEL_OK")
</pallas_src>

<mosaic_0001>
module attributes {stable_mosaic.version = 11 : i64} {
  func.func @kernel(%arg0: memref<12x32xf32, #tpu.memory_space<vmem>>, %arg1: memref<1x2x16xf32, #tpu.memory_space<vmem>>, %arg2: memref<2x1xf32, #tpu.memory_space<vmem>>, %arg3: memref<1x1xf32, #tpu.memory_space<smem>>, %arg4: memref<12x108xf32, #tpu.memory_space<vmem>>, %arg5: memref<160x48xf32, #tpu.memory_space<vmem>>, %arg6: memref<2x1xf32, #tpu.memory_space<vmem>>, %arg7: memref<1x2x16xf32, #tpu.memory_space<vmem>>, %arg8: memref<1x1xf32, #tpu.memory_space<smem>>, %arg9: memref<6x16xf32, #tpu.memory_space<vmem>>) attributes {dimension_semantics = [], scalar_prefetch = 0 : i64, scratch_operands = 1 : i64, tpu.core_type = #tpu.core_type<tc>} {
    %c0 = arith.constant 0 : index
    %c0_0 = arith.constant 0 : index
    %0 = vector.load %arg0[%c0, %c0_0] : memref<12x32xf32, #tpu.memory_space<vmem>>, vector<12x32xf32>
    %c0_1 = arith.constant 0 : index
    %c0_2 = arith.constant 0 : index
    %1 = vector.load %arg4[%c0_1, %c0_2] : memref<12x108xf32, #tpu.memory_space<vmem>>, vector<12x108xf32>
    %2 = vector.extract_strided_slice %0 {offsets = [0, 0], sizes = [12, 28], strides = [1, 1]} : vector<12x32xf32> to vector<12x28xf32>
    %3 = vector.extract_strided_slice %1 {offsets = [0, 0], sizes = [12, 1], strides = [1, 1]} : vector<12x108xf32> to vector<12x1xf32>
    %4 = vector.broadcast %3 : vector<12x1xf32> to vector<12x28xf32>
    %5 = arith.mulf %2, %4 : vector<12x28xf32>
    %6 = vector.extract_strided_slice %1 {offsets = [0, 5], sizes = [12, 1], strides = [1, 1]} : vector<12x108xf32> to vector<12x1xf32>
    %7 = vector.broadcast %6 : vector<12x1xf32> to vector<12x28xf32>
    %8 = arith.mulf %2, %7 : vector<12x28xf32>
    %9 = vector.extract_strided_slice %1 {offsets = [0, 10], sizes = [12, 1], strides = [1, 1]} : vector<12x108xf32> to vector<12x1xf32>
    %10 = vector.broadcast %9 : vector<12x1xf32> to vector<12x28xf32>
    %11 = arith.mulf %2, %10 : vector<12x28xf32>
    %12 = vector.extract_strided_slice %1 {offsets = [0, 15], sizes = [12, 1], strides = [1, 1]} : vector<12x108xf32> to vector<12x1xf32>
    %13 = vector.broadcast %12 : vector<12x1xf32> to vector<12x28xf32>
    %14 = arith.mulf %2, %13 : vector<12x28xf32>
    %15 = vector.extract_strided_slice %0 {offsets = [0, 1], sizes = [12, 28], strides = [1, 1]} : vector<12x32xf32> to vector<12x28xf32>
    %16 = vector.extract_strided_slice %1 {offsets = [0, 1], sizes = [12, 1], strides = [1, 1]} : vector<12x108xf32> to vector<12x1xf32>
    %17 = vector.broadcast %16 : vector<12x1xf32> to vector<12x28xf32>
    %18 = arith.mulf %15, %17 : vector<12x28xf32>
    %19 = arith.addf %5, %18 : vector<12x28xf32>
    %20 = vector.extract_strided_slice %1 {offsets = [0, 6], sizes = [12, 1], strides = [1, 1]} : vector<12x108xf32> to vector<12x1xf32>
    %21 = vector.broadcast %20 : vector<12x1xf32> to vector<12x28xf32>
    %22 = arith.mulf %15, %21 : vector<12x28xf32>
    %23 = arith.addf %8, %22 : vector<12x28xf32>
    %24 = vector.extract_strided_slice %1 {offsets = [0, 11], sizes = [12, 1], strides = [1, 1]} : vector<12x108xf32> to vector<12x1xf32>
    %25 = vector.broadcast %24 : vector<12x1xf32> to vector<12x28xf32>
    %26 = arith.mulf %15, %25 : vector<12x28xf32>
    %27 = arith.addf %11, %26 : vector<12x28xf32>
    %28 = vector.extract_strided_slice %1 {offsets = [0, 16], sizes = [12, 1], strides = [1, 1]} : vector<12x108xf32> to vector<12x1xf32>
    %29 = vector.broadcast %28 : vector<12x1xf32> to vector<12x28xf32>
    %30 = arith.mulf %15, %29 : vector<12x28xf32>
    %31 = arith.addf %14, %30 : vector<12x28xf32>
    %32 = vector.extract_strided_slice %0 {offsets = [0, 2], sizes = [12, 28], strides = [1, 1]} : vector<12x32xf32> to vector<12x28xf32>
    %33 = vector.extract_strided_slice %1 {offsets = [0, 2], sizes = [12, 1], strides = [1, 1]} : vector<12x108xf32> to vector<12x1xf32>
    %34 = vector.broadcast %33 : vector<12x1xf32> to vector<12x28xf32>
    %35 = arith.mulf %32, %34 : vector<12x28xf32>
    %36 = arith.addf %19, %35 : vector<12x28xf32>
    %37 = vector.extract_strided_slice %1 {offsets = [0, 7], sizes = [12, 1], strides = [1, 1]} : vector<12x108xf32> to vector<12x1xf32>
    %38 = vector.broadcast %37 : vector<12x1xf32> to vector<12x28xf32>
    %39 = arith.mulf %32, %38 : vector<12x28xf32>
    %40 = arith.addf %23, %39 : vector<12x28xf32>
    %41 = vector.extract_strided_slice %1 {offsets = [0, 12], sizes = [12, 1], strides = [1, 1]} : vector<12x108xf32> to vector<12x1xf32>
    %42 = vector.broadcast %41 : vector<12x1xf32> to vector<12x28xf32>
    %43 = arith.mulf %32, %42 : vector<12x28xf32>
    %44 = arith.addf %27, %43 : vector<12x28xf32>
    %45 = vector.extract_strided_slice %1 {offsets = [0, 17], sizes = [12, 1], strides = [1, 1]} : vector<12x108xf32> to vector<12x1xf32>
    %46 = vector.broadcast %45 : vector<12x1xf32> to vector<12x28xf32>
    %47 = arith.mulf %32, %46 : vector<12x28xf32>
    %48 = arith.addf %31, %47 : vector<12x28xf32>
    %49 = vector.extract_strided_slice %0 {offsets = [0, 3], sizes = [12, 28], strides = [1, 1]} : vector<12x32xf32> to vector<12x28xf32>
    %50 = vector.extract_strided_slice %1 {offsets = [0, 3], sizes = [12, 1], strides = [1, 1]} : vector<12x108xf32> to vector<12x1xf32>
    %51 = vector.broadcast %50 : vector<12x1xf32> to vector<12x28xf32>
    %52 = arith.mulf %49, %51 : vector<12x28xf32>
    %53 = arith.addf %36, %52 : vector<12x28xf32>
    %54 = vector.extract_strided_slice %1 {offsets = [0, 8], sizes = [12, 1], strides = [1, 1]} : vector<12x108xf32> to vector<12x1xf32>
    %55 = vector.broadcast %54 : vector<12x1xf32> to vector<12x28xf32>
    %56 = arith.mulf %49, %55 : vector<12x28xf32>
    %57 = arith.addf %40, %56 : vector<12x28xf32>
    %58 = vector.extract_strided_slice %1 {offsets = [0, 13], sizes = [12, 1], strides = [1, 1]} : vector<12x108xf32> to vector<12x1xf32>
    %59 = vector.broadcast %58 : vector<12x1xf32> to vector<12x28xf32>
    %60 = arith.mulf %49, %59 : vector<12x28xf32>
    %61 = arith.addf %44, %60 : vector<12x28xf32>
    %62 = vector.extract_strided_slice %1 {offsets = [0, 18], sizes = [12, 1], strides = [1, 1]} : vector<12x108xf32> to vector<12x1xf32>
    %63 = vector.broadcast %62 : vector<12x1xf32> to vector<12x28xf32>
    %64 = arith.mulf %49, %63 : vector<12x28xf32>
    %65 = arith.addf %48, %64 : vector<12x28xf32>
    %66 = vector.extract_strided_slice %0 {offsets = [0, 4], sizes = [12, 28], strides = [1, 1]} : vector<12x32xf32> to vector<12x28xf32>
    %67 = vector.extract_strided_slice %1 {offsets = [0, 4], sizes = [12, 1], strides = [1, 1]} : vector<12x108xf32> to vector<12x1xf32>
    %68 = vector.broadcast %67 : vector<12x1xf32> to vector<12x28xf32>
    %69 = arith.mulf %66, %68 : vector<12x28xf32>
    %70 = arith.addf %53, %69 : vector<12x28xf32>
    %71 = vector.extract_strided_slice %1 {offsets = [0, 9], sizes = [12, 1], strides = [1, 1]} : vector<12x108xf32> to vector<12x1xf32>
    %72 = vector.broadcast %71 : vector<12x1xf32> to vector<12x28xf32>
    %73 = arith.mulf %66, %72 : vector<12x28xf32>
    %74 = arith.addf %57, %73 : vector<12x28xf32>
    %75 = vector.extract_strided_slice %1 {offsets = [0, 14], sizes = [12, 1], strides = [1, 1]} : vector<12x108xf32> to vector<12x1xf32>
    %76 = vector.broadcast %75 : vector<12x1xf32> to vector<12x28xf32>
    %77 = arith.mulf %66, %76 : vector<12x28xf32>
    %78 = arith.addf %61, %77 : vector<12x28xf32>
    %79 = vector.extract_strided_slice %1 {offsets = [0, 19], sizes = [12, 1], strides = [1, 1]} : vector<12x108xf32> to vector<12x1xf32>
    %80 = vector.broadcast %79 : vector<12x1xf32> to vector<12x28xf32>
    %81 = arith.mulf %66, %80 : vector<12x28xf32>
    %82 = arith.addf %65, %81 : vector<12x28xf32>
    %83 = vector.extract_strided_slice %1 {offsets = [0, 20], sizes = [12, 1], strides = [1, 1]} : vector<12x108xf32> to vector<12x1xf32>
    %84 = vector.broadcast %83 : vector<12x1xf32> to vector<12x28xf32>
    %85 = arith.addf %70, %84 : vector<12x28xf32>
    %cst = arith.constant 0.000000e+00 : f32
    %86 = vector.broadcast %cst : f32 to vector<12x28xf32>
    %87 = arith.maximumf %85, %86 : vector<12x28xf32>
    %88 = vector.extract_strided_slice %87 {offsets = [0, 0], sizes = [12, 24], strides = [1, 1]} : vector<12x28xf32> to vector<12x24xf32>
    %89 = vector.extract_strided_slice %87 {offsets = [0, 1], sizes = [12, 24], strides = [1, 1]} : vector<12x28xf32> to vector<12x24xf32>
    %90 = arith.maximumf %88, %89 : vector<12x24xf32>
    %91 = vector.extract_strided_slice %87 {offsets = [0, 2], sizes = [12, 24], strides = [1, 1]} : vector<12x28xf32> to vector<12x24xf32>
    %92 = arith.maximumf %90, %91 : vector<12x24xf32>
    %93 = vector.extract_strided_slice %87 {offsets = [0, 3], sizes = [12, 24], strides = [1, 1]} : vector<12x28xf32> to vector<12x24xf32>
    %94 = arith.maximumf %92, %93 : vector<12x24xf32>
    %95 = vector.extract_strided_slice %87 {offsets = [0, 4], sizes = [12, 24], strides = [1, 1]} : vector<12x28xf32> to vector<12x24xf32>
    %96 = arith.maximumf %94, %95 : vector<12x24xf32>
    %97 = vector.extract_strided_slice %1 {offsets = [0, 21], sizes = [12, 1], strides = [1, 1]} : vector<12x108xf32> to vector<12x1xf32>
    %98 = vector.broadcast %97 : vector<12x1xf32> to vector<12x28xf32>
    %99 = arith.addf %74, %98 : vector<12x28xf32>
    %cst_3 = arith.constant 0.000000e+00 : f32
    %100 = vector.broadcast %cst_3 : f32 to vector<12x28xf32>
    %101 = arith.maximumf %99, %100 : vector<12x28xf32>
    %102 = vector.extract_strided_slice %101 {offsets = [0, 0], sizes = [12, 24], strides = [1, 1]} : vector<12x28xf32> to vector<12x24xf32>
    %103 = vector.extract_strided_slice %101 {offsets = [0, 1], sizes = [12, 24], strides = [1, 1]} : vector<12x28xf32> to vector<12x24xf32>
    %104 = arith.maximumf %102, %103 : vector<12x24xf32>
    %105 = vector.extract_strided_slice %101 {offsets = [0, 2], sizes = [12, 24], strides = [1, 1]} : vector<12x28xf32> to vector<12x24xf32>
    %106 = arith.maximumf %104, %105 : vector<12x24xf32>
    %107 = vector.extract_strided_slice %101 {offsets = [0, 3], sizes = [12, 24], strides = [1, 1]} : vector<12x28xf32> to vector<12x24xf32>
    %108 = arith.maximumf %106, %107 : vector<12x24xf32>
    %109 = vector.extract_strided_slice %101 {offsets = [0, 4], sizes = [12, 24], strides = [1, 1]} : vector<12x28xf32> to vector<12x24xf32>
    %110 = arith.maximumf %108, %109 : vector<12x24xf32>
    %111 = vector.extract_strided_slice %1 {offsets = [0, 22], sizes = [12, 1], strides = [1, 1]} : vector<12x108xf32> to vector<12x1xf32>
    %112 = vector.broadcast %111 : vector<12x1xf32> to vector<12x28xf32>
    %113 = arith.addf %78, %112 : vector<12x28xf32>
    %cst_4 = arith.constant 0.000000e+00 : f32
    %114 = vector.broadcast %cst_4 : f32 to vector<12x28xf32>
    %115 = arith.maximumf %113, %114 : vector<12x28xf32>
    %116 = vector.extract_strided_slice %115 {offsets = [0, 0], sizes = [12, 24], strides = [1, 1]} : vector<12x28xf32> to vector<12x24xf32>
    %117 = vector.extract_strided_slice %115 {offsets = [0, 1], sizes = [12, 24], strides = [1, 1]} : vector<12x28xf32> to vector<12x24xf32>
    %118 = arith.maximumf %116, %117 : vector<12x24xf32>
    %119 = vector.extract_strided_slice %115 {offsets = [0, 2], sizes = [12, 24], strides = [1, 1]} : vector<12x28xf32> to vector<12x24xf32>
    %120 = arith.maximumf %118, %119 : vector<12x24xf32>
    %121 = vector.extract_strided_slice %115 {offsets = [0, 3], sizes = [12, 24], strides = [1, 1]} : vector<12x28xf32> to vector<12x24xf32>
    %122 = arith.maximumf %120, %121 : vector<12x24xf32>
    %123 = vector.extract_strided_slice %115 {offsets = [0, 4], sizes = [12, 24], strides = [1, 1]} : vector<12x28xf32> to vector<12x24xf32>
    %124 = arith.maximumf %122, %123 : vector<12x24xf32>
    %125 = vector.extract_strided_slice %1 {offsets = [0, 23], sizes = [12, 1], strides = [1, 1]} : vector<12x108xf32> to vector<12x1xf32>
    %126 = vector.broadcast %125 : vector<12x1xf32> to vector<12x28xf32>
    %127 = arith.addf %82, %126 : vector<12x28xf32>
    %cst_5 = arith.constant 0.000000e+00 : f32
    %128 = vector.broadcast %cst_5 : f32 to vector<12x28xf32>
    %129 = arith.maximumf %127, %128 : vector<12x28xf32>
    %130 = vector.extract_strided_slice %129 {offsets = [0, 0], sizes = [12, 24], strides = [1, 1]} : vector<12x28xf32> to vector<12x24xf32>
    %131 = vector.extract_strided_slice %129 {offsets = [0, 1], sizes = [12, 24], strides = [1, 1]} : vector<12x28xf32> to vector<12x24xf32>
    %132 = arith.maximumf %130, %131 : vector<12x24xf32>
    %133 = vector.extract_strided_slice %129 {offsets = [0, 2], sizes = [12, 24], strides = [1, 1]} : vector<12x28xf32> to vector<12x24xf32>
    %134 = arith.maximumf %132, %133 : vector<12x24xf32>
    %135 = vector.extract_strided_slice %129 {offsets = [0, 3], sizes = [12, 24], strides = [1, 1]} : vector<12x28xf32> to vector<12x24xf32>
    %136 = arith.maximumf %134, %135 : vector<12x24xf32>
    %137 = vector.extract_strided_slice %129 {offsets = [0, 4], sizes = [12, 24], strides = [1, 1]} : vector<12x28xf32> to vector<12x24xf32>
    %138 = arith.maximumf %136, %137 : vector<12x24xf32>
    %139 = arith.maximumf %96, %110 : vector<12x24xf32>
    %140 = arith.maximumf %139, %124 : vector<12x24xf32>
    %141 = arith.maximumf %140, %138 : vector<12x24xf32>
    %142 = vector.shape_cast %141 : vector<12x24xf32> to vector<1x12x24xf32>
    %cst_6 = arith.constant dense<0xFF800000> : vector<1xf32>
    %143 = vector.multi_reduction <maximumf>, %142, %cst_6 [1, 2] : vector<1x12x24xf32> to vector<1xf32>
    %144 = vector.shape_cast %143 : vector<1xf32> to vector<1x1x1xf32>
    %145 = vector.extract %144[0, 0, 0] : f32 from vector<1x1x1xf32>
    %146 = vector.extract_strided_slice %96 {offsets = [0, 0], sizes = [12, 20], strides = [1, 1]} : vector<12x24xf32> to vector<12x20xf32>
    %147 = vector.extract_strided_slice %1 {offsets = [0, 24], sizes = [12, 1], strides = [1, 1]} : vector<12x108xf32> to vector<12x1xf32>
    %148 = vector.broadcast %147 : vector<12x1xf32> to vector<12x20xf32>
    %149 = arith.mulf %146, %148 : vector<12x20xf32>
    %150 = vector.extract_strided_slice %1 {offsets = [0, 44], sizes = [12, 1], strides = [1, 1]} : vector<12x108xf32> to vector<12x1xf32>
    %151 = vector.broadcast %150 : vector<12x1xf32> to vector<12x20xf32>
    %152 = arith.mulf %146, %151 : vector<12x20xf32>
    %153 = vector.extract_strided_slice %1 {offsets = [0, 64], sizes = [12, 1], strides = [1, 1]} : vector<12x108xf32> to vector<12x1xf32>
    %154 = vector.broadcast %153 : vector<12x1xf32> to vector<12x20xf32>
    %155 = arith.mulf %146, %154 : vector<12x20xf32>
    %156 = vector.extract_strided_slice %1 {offsets = [0, 84], sizes = [12, 1], strides = [1, 1]} : vector<12x108xf32> to vector<12x1xf32>
    %157 = vector.broadcast %156 : vector<12x1xf32> to vector<12x20xf32>
    %158 = arith.mulf %146, %157 : vector<12x20xf32>
    %159 = vector.extract_strided_slice %96 {offsets = [0, 1], sizes = [12, 20], strides = [1, 1]} : vector<12x24xf32> to vector<12x20xf32>
    %160 = vector.extract_strided_slice %1 {offsets = [0, 25], sizes = [12, 1], strides = [1, 1]} : vector<12x108xf32> to vector<12x1xf32>
    %161 = vector.broadcast %160 : vector<12x1xf32> to vector<12x20xf32>
    %162 = arith.mulf %159, %161 : vector<12x20xf32>
    %163 = arith.addf %149, %162 : vector<12x20xf32>
    %164 = vector.extract_strided_slice %1 {offsets = [0, 45], sizes = [12, 1], strides = [1, 1]} : vector<12x108xf32> to vector<12x1xf32>
    %165 = vector.broadcast %164 : vector<12x1xf32> to vector<12x20xf32>
    %166 = arith.mulf %159, %165 : vector<12x20xf32>
    %167 = arith.addf %152, %166 : vector<12x20xf32>
    %168 = vector.extract_strided_slice %1 {offsets = [0, 65], sizes = [12, 1], strides = [1, 1]} : vector<12x108xf32> to vector<12x1xf32>
    %169 = vector.broadcast %168 : vector<12x1xf32> to vector<12x20xf32>
    %170 = arith.mulf %159, %169 : vector<12x20xf32>
    %171 = arith.addf %155, %170 : vector<12x20xf32>
    %172 = vector.extract_strided_slice %1 {offsets = [0, 85], sizes = [12, 1], strides = [1, 1]} : vector<12x108xf32> to vector<12x1xf32>
    %173 = vector.broadcast %172 : vector<12x1xf32> to vector<12x20xf32>
    %174 = arith.mulf %159, %173 : vector<12x20xf32>
    %175 = arith.addf %158, %174 : vector<12x20xf32>
    %176 = vector.extract_strided_slice %96 {offsets = [0, 2], sizes = [12, 20], strides = [1, 1]} : vector<12x24xf32> to vector<12x20xf32>
    %177 = vector.extract_strided_slice %1 {offsets = [0, 26], sizes = [12, 1], strides = [1, 1]} : vector<12x108xf32> to vector<12x1xf32>
    %178 = vector.broadcast %177 : vector<12x1xf32> to vector<12x20xf32>
    %179 = arith.mulf %176, %178 : vector<12x20xf32>
    %180 = arith.addf %163, %179 : vector<12x20xf32>
    %181 = vector.extract_strided_slice %1 {offsets = [0, 46], sizes = [12, 1], strides = [1, 1]} : vector<12x108xf32> to vector<12x1xf32>
    %182 = vector.broadcast %181 : vector<12x1xf32> to vector<12x20xf32>
    %183 = arith.mulf %176, %182 : vector<12x20xf32>
    %184 = arith.addf %167, %183 : vector<12x20xf32>
    %185 = vector.extract_strided_slice %1 {offsets = [0, 66], sizes = [12, 1], strides = [1, 1]} : vector<12x108xf32> to vector<12x1xf32>
    %186 = vector.broadcast %185 : vector<12x1xf32> to vector<12x20xf32>
    %187 = arith.mulf %176, %186 : vector<12x20xf32>
    %188 = arith.addf %171, %187 : vector<12x20xf32>
    %189 = vector.extract_strided_slice %1 {offsets = [0, 86], sizes = [12, 1], strides = [1, 1]} : vector<12x108xf32> to vector<12x1xf32>
    %190 = vector.broadcast %189 : vector<12x1xf32> to vector<12x20xf32>
    %191 = arith.mulf %176, %190 : vector<12x20xf32>
    %192 = arith.addf %175, %191 : vector<12x20xf32>
    %193 = vector.extract_strided_slice %96 {offsets = [0, 3], sizes = [12, 20], strides = [1, 1]} : vector<12x24xf32> to vector<12x20xf32>
    %194 = vector.extract_strided_slice %1 {offsets = [0, 27], sizes = [12, 1], strides = [1, 1]} : vector<12x108xf32> to vector<12x1xf32>
    %195 = vector.broadcast %194 : vector<12x1xf32> to vector<12x20xf32>
    %196 = arith.mulf %193, %195 : vector<12x20xf32>
    %197 = arith.addf %180, %196 : vector<12x20xf32>
    %198 = vector.extract_strided_slice %1 {offsets = [0, 47], sizes = [12, 1], strides = [1, 1]} : vector<12x108xf32> to vector<12x1xf32>
    %199 = vector.broadcast %198 : vector<12x1xf32> to vector<12x20xf32>
    %200 = arith.mulf %193, %199 : vector<12x20xf32>
    %201 = arith.addf %184, %200 : vector<12x20xf32>
    %202 = vector.extract_strided_slice %1 {offsets = [0, 67], sizes = [12, 1], strides = [1, 1]} : vector<12x108xf32> to vector<12x1xf32>
    %203 = vector.broadcast %202 : vector<12x1xf32> to vector<12x20xf32>
    %204 = arith.mulf %193, %203 : vector<12x20xf32>
    %205 = arith.addf %188, %204 : vector<12x20xf32>
    %206 = vector.extract_strided_slice %1 {offsets = [0, 87], sizes = [12, 1], strides = [1, 1]} : vector<12x108xf32> to vector<12x1xf32>
    %207 = vector.broadcast %206 : vector<12x1xf32> to vector<12x20xf32>
    %208 = arith.mulf %193, %207 : vector<12x20xf32>
    %209 = arith.addf %192, %208 : vector<12x20xf32>
    %210 = vector.extract_strided_slice %96 {offsets = [0, 4], sizes = [12, 20], strides = [1, 1]} : vector<12x24xf32> to vector<12x20xf32>
    %211 = vector.extract_strided_slice %1 {offsets = [0, 28], sizes = [12, 1], strides = [1, 1]} : vector<12x108xf32> to vector<12x1xf32>
    %212 = vector.broadcast %211 : vector<12x1xf32> to vector<12x20xf32>
    %213 = arith.mulf %210, %212 : vector<12x20xf32>
    %214 = arith.addf %197, %213 : vector<12x20xf32>
    %215 = vector.extract_strided_slice %1 {offsets = [0, 48], sizes = [12, 1], strides = [1, 1]} : vector<12x108xf32> to vector<12x1xf32>
    %216 = vector.broadcast %215 : vector<12x1xf32> to vector<12x20xf32>
    %217 = arith.mulf %210, %216 : vector<12x20xf32>
    %218 = arith.addf %201, %217 : vector<12x20xf32>
    %219 = vector.extract_strided_slice %1 {offsets = [0, 68], sizes = [12, 1], strides = [1, 1]} : vector<12x108xf32> to vector<12x1xf32>
    %220 = vector.broadcast %219 : vector<12x1xf32> to vector<12x20xf32>
    %221 = arith.mulf %210, %220 : vector<12x20xf32>
    %222 = arith.addf %205, %221 : vector<12x20xf32>
    %223 = vector.extract_strided_slice %1 {offsets = [0, 88], sizes = [12, 1], strides = [1, 1]} : vector<12x108xf32> to vector<12x1xf32>
    %224 = vector.broadcast %223 : vector<12x1xf32> to vector<12x20xf32>
    %225 = arith.mulf %210, %224 : vector<12x20xf32>
    %226 = arith.addf %209, %225 : vector<12x20xf32>
    %227 = vector.extract_strided_slice %110 {offsets = [0, 0], sizes = [12, 20], strides = [1, 1]} : vector<12x24xf32> to vector<12x20xf32>
    %228 = vector.extract_strided_slice %1 {offsets = [0, 29], sizes = [12, 1], strides = [1, 1]} : vector<12x108xf32> to vector<12x1xf32>
    %229 = vector.broadcast %228 : vector<12x1xf32> to vector<12x20xf32>
    %230 = arith.mulf %227, %229 : vector<12x20xf32>
    %231 = arith.addf %214, %230 : vector<12x20xf32>
    %232 = vector.extract_strided_slice %1 {offsets = [0, 49], sizes = [12, 1], strides = [1, 1]} : vector<12x108xf32> to vector<12x1xf32>
    %233 = vector.broadcast %232 : vector<12x1xf32> to vector<12x20xf32>
    %234 = arith.mulf %227, %233 : vector<12x20xf32>
    %235 = arith.addf %218, %234 : vector<12x20xf32>
    %236 = vector.extract_strided_slice %1 {offsets = [0, 69], sizes = [12, 1], strides = [1, 1]} : vector<12x108xf32> to vector<12x1xf32>
    %237 = vector.broadcast %236 : vector<12x1xf32> to vector<12x20xf32>
    %238 = arith.mulf %227, %237 : vector<12x20xf32>
    %239 = arith.addf %222, %238 : vector<12x20xf32>
    %240 = vector.extract_strided_slice %1 {offsets = [0, 89], sizes = [12, 1], strides = [1, 1]} : vector<12x108xf32> to vector<12x1xf32>
    %241 = vector.broadcast %240 : vector<12x1xf32> to vector<12x20xf32>
    %242 = arith.mulf %227, %241 : vector<12x20xf32>
    %243 = arith.addf %226, %242 : vector<12x20xf32>
    %244 = vector.extract_strided_slice %110 {offsets = [0, 1], sizes = [12, 20], strides = [1, 1]} : vector<12x24xf32> to vector<12x20xf32>
    %245 = vector.extract_strided_slice %1 {offsets = [0, 30], sizes = [12, 1], strides = [1, 1]} : vector<12x108xf32> to vector<12x1xf32>
    %246 = vector.broadcast %245 : vector<12x1xf32> to vector<12x20xf32>
    %247 = arith.mulf %244, %246 : vector<12x20xf32>
    %248 = arith.addf %231, %247 : vector<12x20xf32>
    %249 = vector.extract_strided_slice %1 {offsets = [0, 50], sizes = [12, 1], strides = [1, 1]} : vector<12x108xf32> to vector<12x1xf32>
    %250 = vector.broadcast %249 : vector<12x1xf32> to vector<12x20xf32>
    %251 = arith.mulf %244, %250 : vector<12x20xf32>
    %252 = arith.addf %235, %251 : vector<12x20xf32>
    %253 = vector.extract_strided_slice %1 {offsets = [0, 70], sizes = [12, 1], strides = [1, 1]} : vector<12x108xf32> to vector<12x1xf32>
    %254 = vector.broadcast %253 : vector<12x1xf32> to vector<12x20xf32>
    %255 = arith.mulf %244, %254 : vector<12x20xf32>
    %256 = arith.addf %239, %255 : vector<12x20xf32>
    %257 = vector.extract_strided_slice %1 {offsets = [0, 90], sizes = [12, 1], strides = [1, 1]} : vector<12x108xf32> to vector<12x1xf32>
    %258 = vector.broadcast %257 : vector<12x1xf32> to vector<12x20xf32>
    %259 = arith.mulf %244, %258 : vector<12x20xf32>
    %260 = arith.addf %243, %259 : vector<12x20xf32>
    %261 = vector.extract_strided_slice %110 {offsets = [0, 2], sizes = [12, 20], strides = [1, 1]} : vector<12x24xf32> to vector<12x20xf32>
    %262 = vector.extract_strided_slice %1 {offsets = [0, 31], sizes = [12, 1], strides = [1, 1]} : vector<12x108xf32> to vector<12x1xf32>
    %263 = vector.broadcast %262 : vector<12x1xf32> to vector<12x20xf32>
    %264 = arith.mulf %261, %263 : vector<12x20xf32>
    %265 = arith.addf %248, %264 : vector<12x20xf32>
    %266 = vector.extract_strided_slice %1 {offsets = [0, 51], sizes = [12, 1], strides = [1, 1]} : vector<12x108xf32> to vector<12x1xf32>
    %267 = vector.broadcast %266 : vector<12x1xf32> to vector<12x20xf32>
    %268 = arith.mulf %261, %267 : vector<12x20xf32>
    %269 = arith.addf %252, %268 : vector<12x20xf32>
    %270 = vector.extract_strided_slice %1 {offsets = [0, 71], sizes = [12, 1], strides = [1, 1]} : vector<12x108xf32> to vector<12x1xf32>
    %271 = vector.broadcast %270 : vector<12x1xf32> to vector<12x20xf32>
    %272 = arith.mulf %261, %271 : vector<12x20xf32>
    %273 = arith.addf %256, %272 : vector<12x20xf32>
    %274 = vector.extract_strided_slice %1 {offsets = [0, 91], sizes = [12, 1], strides = [1, 1]} : vector<12x108xf32> to vector<12x1xf32>
    %275 = vector.broadcast %274 : vector<12x1xf32> to vector<12x20xf32>
    %276 = arith.mulf %261, %275 : vector<12x20xf32>
    %277 = arith.addf %260, %276 : vector<12x20xf32>
    %278 = vector.extract_strided_slice %110 {offsets = [0, 3], sizes = [12, 20], strides = [1, 1]} : vector<12x24xf32> to vector<12x20xf32>
    %279 = vector.extract_strided_slice %1 {offsets = [0, 32], sizes = [12, 1], strides = [1, 1]} : vector<12x108xf32> to vector<12x1xf32>
    %280 = vector.broadcast %279 : vector<12x1xf32> to vector<12x20xf32>
    %281 = arith.mulf %278, %280 : vector<12x20xf32>
    %282 = arith.addf %265, %281 : vector<12x20xf32>
    %283 = vector.extract_strided_slice %1 {offsets = [0, 52], sizes = [12, 1], strides = [1, 1]} : vector<12x108xf32> to vector<12x1xf32>
    %284 = vector.broadcast %283 : vector<12x1xf32> to vector<12x20xf32>
    %285 = arith.mulf %278, %284 : vector<12x20xf32>
    %286 = arith.addf %269, %285 : vector<12x20xf32>
    %287 = vector.extract_strided_slice %1 {offsets = [0, 72], sizes = [12, 1], strides = [1, 1]} : vector<12x108xf32> to vector<12x1xf32>
    %288 = vector.broadcast %287 : vector<12x1xf32> to vector<12x20xf32>
    %289 = arith.mulf %278, %288 : vector<12x20xf32>
    %290 = arith.addf %273, %289 : vector<12x20xf32>
    %291 = vector.extract_strided_slice %1 {offsets = [0, 92], sizes = [12, 1], strides = [1, 1]} : vector<12x108xf32> to vector<12x1xf32>
    %292 = vector.broadcast %291 : vector<12x1xf32> to vector<12x20xf32>
    %293 = arith.mulf %278, %292 : vector<12x20xf32>
    %294 = arith.addf %277, %293 : vector<12x20xf32>
    %295 = vector.extract_strided_slice %110 {offsets = [0, 4], sizes = [12, 20], strides = [1, 1]} : vector<12x24xf32> to vector<12x20xf32>
    %296 = vector.extract_strided_slice %1 {offsets = [0, 33], sizes = [12, 1], strides = [1, 1]} : vector<12x108xf32> to vector<12x1xf32>
    %297 = vector.broadcast %296 : vector<12x1xf32> to vector<12x20xf32>
    %298 = arith.mulf %295, %297 : vector<12x20xf32>
    %299 = arith.addf %282, %298 : vector<12x20xf32>
    %300 = vector.extract_strided_slice %1 {offsets = [0, 53], sizes = [12, 1], strides = [1, 1]} : vector<12x108xf32> to vector<12x1xf32>
    %301 = vector.broadcast %300 : vector<12x1xf32> to vector<12x20xf32>
    %302 = arith.mulf %295, %301 : vector<12x20xf32>
    %303 = arith.addf %286, %302 : vector<12x20xf32>
    %304 = vector.extract_strided_slice %1 {offsets = [0, 73], sizes = [12, 1], strides = [1, 1]} : vector<12x108xf32> to vector<12x1xf32>
    %305 = vector.broadcast %304 : vector<12x1xf32> to vector<12x20xf32>
    %306 = arith.mulf %295, %305 : vector<12x20xf32>
    %307 = arith.addf %290, %306 : vector<12x20xf32>
    %308 = vector.extract_strided_slice %1 {offsets = [0, 93], sizes = [12, 1], strides = [1, 1]} : vector<12x108xf32> to vector<12x1xf32>
    %309 = vector.broadcast %308 : vector<12x1xf32> to vector<12x20xf32>
    %310 = arith.mulf %295, %309 : vector<12x20xf32>
    %311 = arith.addf %294, %310 : vector<12x20xf32>
    %312 = vector.extract_strided_slice %124 {offsets = [0, 0], sizes = [12, 20], strides = [1, 1]} : vector<12x24xf32> to vector<12x20xf32>
    %313 = vector.extract_strided_slice %1 {offsets = [0, 34], sizes = [12, 1], strides = [1, 1]} : vector<12x108xf32> to vector<12x1xf32>
    %314 = vector.broadcast %313 : vector<12x1xf32> to vector<12x20xf32>
    %315 = arith.mulf %312, %314 : vector<12x20xf32>
    %316 = arith.addf %299, %315 : vector<12x20xf32>
    %317 = vector.extract_strided_slice %1 {offsets = [0, 54], sizes = [12, 1], strides = [1, 1]} : vector<12x108xf32> to vector<12x1xf32>
    %318 = vector.broadcast %317 : vector<12x1xf32> to vector<12x20xf32>
    %319 = arith.mulf %312, %318 : vector<12x20xf32>
    %320 = arith.addf %303, %319 : vector<12x20xf32>
    %321 = vector.extract_strided_slice %1 {offsets = [0, 74], sizes = [12, 1], strides = [1, 1]} : vector<12x108xf32> to vector<12x1xf32>
    %322 = vector.broadcast %321 : vector<12x1xf32> to vector<12x20xf32>
    %323 = arith.mulf %312, %322 : vector<12x20xf32>
    %324 = arith.addf %307, %323 : vector<12x20xf32>
    %325 = vector.extract_strided_slice %1 {offsets = [0, 94], sizes = [12, 1], strides = [1, 1]} : vector<12x108xf32> to vector<12x1xf32>
    %326 = vector.broadcast %325 : vector<12x1xf32> to vector<12x20xf32>
    %327 = arith.mulf %312, %326 : vector<12x20xf32>
    %328 = arith.addf %311, %327 : vector<12x20xf32>
    %329 = vector.extract_strided_slice %124 {offsets = [0, 1], sizes = [12, 20], strides = [1, 1]} : vector<12x24xf32> to vector<12x20xf32>
    %330 = vector.extract_strided_slice %1 {offsets = [0, 35], sizes = [12, 1], strides = [1, 1]} : vector<12x108xf32> to vector<12x1xf32>
    %331 = vector.broadcast %330 : vector<12x1xf32> to vector<12x20xf32>
    %332 = arith.mulf %329, %331 : vector<12x20xf32>
    %333 = arith.addf %316, %332 : vector<12x20xf32>
    %334 = vector.extract_strided_slice %1 {offsets = [0, 55], sizes = [12, 1], strides = [1, 1]} : vector<12x108xf32> to vector<12x1xf32>
    %335 = vector.broadcast %334 : vector<12x1xf32> to vector<12x20xf32>
    %336 = arith.mulf %329, %335 : vector<12x20xf32>
    %337 = arith.addf %320, %336 : vector<12x20xf32>
    %338 = vector.extract_strided_slice %1 {offsets = [0, 75], sizes = [12, 1], strides = [1, 1]} : vector<12x108xf32> to vector<12x1xf32>
    %339 = vector.broadcast %338 : vector<12x1xf32> to vector<12x20xf32>
    %340 = arith.mulf %329, %339 : vector<12x20xf32>
    %341 = arith.addf %324, %340 : vector<12x20xf32>
    %342 = vector.extract_strided_slice %1 {offsets = [0, 95], sizes = [12, 1], strides = [1, 1]} : vector<12x108xf32> to vector<12x1xf32>
    %343 = vector.broadcast %342 : vector<12x1xf32> to vector<12x20xf32>
    %344 = arith.mulf %329, %343 : vector<12x20xf32>
    %345 = arith.addf %328, %344 : vector<12x20xf32>
    %346 = vector.extract_strided_slice %124 {offsets = [0, 2], sizes = [12, 20], strides = [1, 1]} : vector<12x24xf32> to vector<12x20xf32>
    %347 = vector.extract_strided_slice %1 {offsets = [0, 36], sizes = [12, 1], strides = [1, 1]} : vector<12x108xf32> to vector<12x1xf32>
    %348 = vector.broadcast %347 : vector<12x1xf32> to vector<12x20xf32>
    %349 = arith.mulf %346, %348 : vector<12x20xf32>
    %350 = arith.addf %333, %349 : vector<12x20xf32>
    %351 = vector.extract_strided_slice %1 {offsets = [0, 56], sizes = [12, 1], strides = [1, 1]} : vector<12x108xf32> to vector<12x1xf32>
    %352 = vector.broadcast %351 : vector<12x1xf32> to vector<12x20xf32>
    %353 = arith.mulf %346, %352 : vector<12x20xf32>
    %354 = arith.addf %337, %353 : vector<12x20xf32>
    %355 = vector.extract_strided_slice %1 {offsets = [0, 76], sizes = [12, 1], strides = [1, 1]} : vector<12x108xf32> to vector<12x1xf32>
    %356 = vector.broadcast %355 : vector<12x1xf32> to vector<12x20xf32>
    %357 = arith.mulf %346, %356 : vector<12x20xf32>
    %358 = arith.addf %341, %357 : vector<12x20xf32>
    %359 = vector.extract_strided_slice %1 {offsets = [0, 96], sizes = [12, 1], strides = [1, 1]} : vector<12x108xf32> to vector<12x1xf32>
    %360 = vector.broadcast %359 : vector<12x1xf32> to vector<12x20xf32>
    %361 = arith.mulf %346, %360 : vector<12x20xf32>
    %362 = arith.addf %345, %361 : vector<12x20xf32>
    %363 = vector.extract_strided_slice %124 {offsets = [0, 3], sizes = [12, 20], strides = [1, 1]} : vector<12x24xf32> to vector<12x20xf32>
    %364 = vector.extract_strided_slice %1 {offsets = [0, 37], sizes = [12, 1], strides = [1, 1]} : vector<12x108xf32> to vector<12x1xf32>
    %365 = vector.broadcast %364 : vector<12x1xf32> to vector<12x20xf32>
    %366 = arith.mulf %363, %365 : vector<12x20xf32>
    %367 = arith.addf %350, %366 : vector<12x20xf32>
    %368 = vector.extract_strided_slice %1 {offsets = [0, 57], sizes = [12, 1], strides = [1, 1]} : vector<12x108xf32> to vector<12x1xf32>
    %369 = vector.broadcast %368 : vector<12x1xf32> to vector<12x20xf32>
    %370 = arith.mulf %363, %369 : vector<12x20xf32>
    %371 = arith.addf %354, %370 : vector<12x20xf32>
    %372 = vector.extract_strided_slice %1 {offsets = [0, 77], sizes = [12, 1], strides = [1, 1]} : vector<12x108xf32> to vector<12x1xf32>
    %373 = vector.broadcast %372 : vector<12x1xf32> to vector<12x20xf32>
    %374 = arith.mulf %363, %373 : vector<12x20xf32>
    %375 = arith.addf %358, %374 : vector<12x20xf32>
    %376 = vector.extract_strided_slice %1 {offsets = [0, 97], sizes = [12, 1], strides = [1, 1]} : vector<12x108xf32> to vector<12x1xf32>
    %377 = vector.broadcast %376 : vector<12x1xf32> to vector<12x20xf32>
    %378 = arith.mulf %363, %377 : vector<12x20xf32>
    %379 = arith.addf %362, %378 : vector<12x20xf32>
    %380 = vector.extract_strided_slice %124 {offsets = [0, 4], sizes = [12, 20], strides = [1, 1]} : vector<12x24xf32> to vector<12x20xf32>
    %381 = vector.extract_strided_slice %1 {offsets = [0, 38], sizes = [12, 1], strides = [1, 1]} : vector<12x108xf32> to vector<12x1xf32>
    %382 = vector.broadcast %381 : vector<12x1xf32> to vector<12x20xf32>
    %383 = arith.mulf %380, %382 : vector<12x20xf32>
    %384 = arith.addf %367, %383 : vector<12x20xf32>
    %385 = vector.extract_strided_slice %1 {offsets = [0, 58], sizes = [12, 1], strides = [1, 1]} : vector<12x108xf32> to vector<12x1xf32>
    %386 = vector.broadcast %385 : vector<12x1xf32> to vector<12x20xf32>
    %387 = arith.mulf %380, %386 : vector<12x20xf32>
    %388 = arith.addf %371, %387 : vector<12x20xf32>
    %389 = vector.extract_strided_slice %1 {offsets = [0, 78], sizes = [12, 1], strides = [1, 1]} : vector<12x108xf32> to vector<12x1xf32>
    %390 = vector.broadcast %389 : vector<12x1xf32> to vector<12x20xf32>
    %391 = arith.mulf %380, %390 : vector<12x20xf32>
    %392 = arith.addf %375, %391 : vector<12x20xf32>
    %393 = vector.extract_strided_slice %1 {offsets = [0, 98], sizes = [12, 1], strides = [1, 1]} : vector<12x108xf32> to vector<12x1xf32>
    %394 = vector.broadcast %393 : vector<12x1xf32> to vector<12x20xf32>
    %395 = arith.mulf %380, %394 : vector<12x20xf32>
    %396 = arith.addf %379, %395 : vector<12x20xf32>
    %397 = vector.extract_strided_slice %138 {offsets = [0, 0], sizes = [12, 20], strides = [1, 1]} : vector<12x24xf32> to vector<12x20xf32>
    %398 = vector.extract_strided_slice %1 {offsets = [0, 39], sizes = [12, 1], strides = [1, 1]} : vector<12x108xf32> to vector<12x1xf32>
    %399 = vector.broadcast %398 : vector<12x1xf32> to vector<12x20xf32>
    %400 = arith.mulf %397, %399 : vector<12x20xf32>
    %401 = arith.addf %384, %400 : vector<12x20xf32>
    %402 = vector.extract_strided_slice %1 {offsets = [0, 59], sizes = [12, 1], strides = [1, 1]} : vector<12x108xf32> to vector<12x1xf32>
    %403 = vector.broadcast %402 : vector<12x1xf32> to vector<12x20xf32>
    %404 = arith.mulf %397, %403 : vector<12x20xf32>
    %405 = arith.addf %388, %404 : vector<12x20xf32>
    %406 = vector.extract_strided_slice %1 {offsets = [0, 79], sizes = [12, 1], strides = [1, 1]} : vector<12x108xf32> to vector<12x1xf32>
    %407 = vector.broadcast %406 : vector<12x1xf32> to vector<12x20xf32>
    %408 = arith.mulf %397, %407 : vector<12x20xf32>
    %409 = arith.addf %392, %408 : vector<12x20xf32>
    %410 = vector.extract_strided_slice %1 {offsets = [0, 99], sizes = [12, 1], strides = [1, 1]} : vector<12x108xf32> to vector<12x1xf32>
    %411 = vector.broadcast %410 : vector<12x1xf32> to vector<12x20xf32>
    %412 = arith.mulf %397, %411 : vector<12x20xf32>
    %413 = arith.addf %396, %412 : vector<12x20xf32>
    %414 = vector.extract_strided_slice %138 {offsets = [0, 1], sizes = [12, 20], strides = [1, 1]} : vector<12x24xf32> to vector<12x20xf32>
    %415 = vector.extract_strided_slice %1 {offsets = [0, 40], sizes = [12, 1], strides = [1, 1]} : vector<12x108xf32> to vector<12x1xf32>
    %416 = vector.broadcast %415 : vector<12x1xf32> to vector<12x20xf32>
    %417 = arith.mulf %414, %416 : vector<12x20xf32>
    %418 = arith.addf %401, %417 : vector<12x20xf32>
    %419 = vector.extract_strided_slice %1 {offsets = [0, 60], sizes = [12, 1], strides = [1, 1]} : vector<12x108xf32> to vector<12x1xf32>
    %420 = vector.broadcast %419 : vector<12x1xf32> to vector<12x20xf32>
    %421 = arith.mulf %414, %420 : vector<12x20xf32>
    %422 = arith.addf %405, %421 : vector<12x20xf32>
    %423 = vector.extract_strided_slice %1 {offsets = [0, 80], sizes = [12, 1], strides = [1, 1]} : vector<12x108xf32> to vector<12x1xf32>
    %424 = vector.broadcast %423 : vector<12x1xf32> to vector<12x20xf32>
    %425 = arith.mulf %414, %424 : vector<12x20xf32>
    %426 = arith.addf %409, %425 : vector<12x20xf32>
    %427 = vector.extract_strided_slice %1 {offsets = [0, 100], sizes = [12, 1], strides = [1, 1]} : vector<12x108xf32> to vector<12x1xf32>
    %428 = vector.broadcast %427 : vector<12x1xf32> to vector<12x20xf32>
    %429 = arith.mulf %414, %428 : vector<12x20xf32>
    %430 = arith.addf %413, %429 : vector<12x20xf32>
    %431 = vector.extract_strided_slice %138 {offsets = [0, 2], sizes = [12, 20], strides = [1, 1]} : vector<12x24xf32> to vector<12x20xf32>
    %432 = vector.extract_strided_slice %1 {offsets = [0, 41], sizes = [12, 1], strides = [1, 1]} : vector<12x108xf32> to vector<12x1xf32>
    %433 = vector.broadcast %432 : vector<12x1xf32> to vector<12x20xf32>
    %434 = arith.mulf %431, %433 : vector<12x20xf32>
    %435 = arith.addf %418, %434 : vector<12x20xf32>
    %436 = vector.extract_strided_slice %1 {offsets = [0, 61], sizes = [12, 1], strides = [1, 1]} : vector<12x108xf32> to vector<12x1xf32>
    %437 = vector.broadcast %436 : vector<12x1xf32> to vector<12x20xf32>
    %438 = arith.mulf %431, %437 : vector<12x20xf32>
    %439 = arith.addf %422, %438 : vector<12x20xf32>
    %440 = vector.extract_strided_slice %1 {offsets = [0, 81], sizes = [12, 1], strides = [1, 1]} : vector<12x108xf32> to vector<12x1xf32>
    %441 = vector.broadcast %440 : vector<12x1xf32> to vector<12x20xf32>
    %442 = arith.mulf %431, %441 : vector<12x20xf32>
    %443 = arith.addf %426, %442 : vector<12x20xf32>
    %444 = vector.extract_strided_slice %1 {offsets = [0, 101], sizes = [12, 1], strides = [1, 1]} : vector<12x108xf32> to vector<12x1xf32>
    %445 = vector.broadcast %444 : vector<12x1xf32> to vector<12x20xf32>
    %446 = arith.mulf %431, %445 : vector<12x20xf32>
    %447 = arith.addf %430, %446 : vector<12x20xf32>
    %448 = vector.extract_strided_slice %138 {offsets = [0, 3], sizes = [12, 20], strides = [1, 1]} : vector<12x24xf32> to vector<12x20xf32>
    %449 = vector.extract_strided_slice %1 {offsets = [0, 42], sizes = [12, 1], strides = [1, 1]} : vector<12x108xf32> to vector<12x1xf32>
    %450 = vector.broadcast %449 : vector<12x1xf32> to vector<12x20xf32>
    %451 = arith.mulf %448, %450 : vector<12x20xf32>
    %452 = arith.addf %435, %451 : vector<12x20xf32>
    %453 = vector.extract_strided_slice %1 {offsets = [0, 62], sizes = [12, 1], strides = [1, 1]} : vector<12x108xf32> to vector<12x1xf32>
    %454 = vector.broadcast %453 : vector<12x1xf32> to vector<12x20xf32>
    %455 = arith.mulf %448, %454 : vector<12x20xf32>
    %456 = arith.addf %439, %455 : vector<12x20xf32>
    %457 = vector.extract_strided_slice %1 {offsets = [0, 82], sizes = [12, 1], strides = [1, 1]} : vector<12x108xf32> to vector<12x1xf32>
    %458 = vector.broadcast %457 : vector<12x1xf32> to vector<12x20xf32>
    %459 = arith.mulf %448, %458 : vector<12x20xf32>
    %460 = arith.addf %443, %459 : vector<12x20xf32>
    %461 = vector.extract_strided_slice %1 {offsets = [0, 102], sizes = [12, 1], strides = [1, 1]} : vector<12x108xf32> to vector<12x1xf32>
    %462 = vector.broadcast %461 : vector<12x1xf32> to vector<12x20xf32>
    %463 = arith.mulf %448, %462 : vector<12x20xf32>
    %464 = arith.addf %447, %463 : vector<12x20xf32>
    %465 = vector.extract_strided_slice %138 {offsets = [0, 4], sizes = [12, 20], strides = [1, 1]} : vector<12x24xf32> to vector<12x20xf32>
    %466 = vector.extract_strided_slice %1 {offsets = [0, 43], sizes = [12, 1], strides = [1, 1]} : vector<12x108xf32> to vector<12x1xf32>
    %467 = vector.broadcast %466 : vector<12x1xf32> to vector<12x20xf32>
    %468 = arith.mulf %465, %467 : vector<12x20xf32>
    %469 = arith.addf %452, %468 : vector<12x20xf32>
    %470 = vector.extract_strided_slice %1 {offsets = [0, 63], sizes = [12, 1], strides = [1, 1]} : vector<12x108xf32> to vector<12x1xf32>
    %471 = vector.broadcast %470 : vector<12x1xf32> to vector<12x20xf32>
    %472 = arith.mulf %465, %471 : vector<12x20xf32>
    %473 = arith.addf %456, %472 : vector<12x20xf32>
    %474 = vector.extract_strided_slice %1 {offsets = [0, 83], sizes = [12, 1], strides = [1, 1]} : vector<12x108xf32> to vector<12x1xf32>
    %475 = vector.broadcast %474 : vector<12x1xf32> to vector<12x20xf32>
    %476 = arith.mulf %465, %475 : vector<12x20xf32>
    %477 = arith.addf %460, %476 : vector<12x20xf32>
    %478 = vector.extract_strided_slice %1 {offsets = [0, 103], sizes = [12, 1], strides = [1, 1]} : vector<12x108xf32> to vector<12x1xf32>
    %479 = vector.broadcast %478 : vector<12x1xf32> to vector<12x20xf32>
    %480 = arith.mulf %465, %479 : vector<12x20xf32>
    %481 = arith.addf %464, %480 : vector<12x20xf32>
    %482 = vector.extract_strided_slice %1 {offsets = [0, 104], sizes = [12, 1], strides = [1, 1]} : vector<12x108xf32> to vector<12x1xf32>
    %483 = vector.broadcast %482 : vector<12x1xf32> to vector<12x20xf32>
    %484 = arith.addf %469, %483 : vector<12x20xf32>
    %cst_7 = arith.constant 0.000000e+00 : f32
    %485 = vector.broadcast %cst_7 : f32 to vector<12x20xf32>
    %486 = arith.maximumf %484, %485 : vector<12x20xf32>
    %487 = vector.extract_strided_slice %486 {offsets = [0, 0], sizes = [12, 16], strides = [1, 1]} : vector<12x20xf32> to vector<12x16xf32>
    %488 = vector.extract_strided_slice %486 {offsets = [0, 1], sizes = [12, 16], strides = [1, 1]} : vector<12x20xf32> to vector<12x16xf32>
    %489 = arith.maximumf %487, %488 : vector<12x16xf32>
    %490 = vector.extract_strided_slice %486 {offsets = [0, 2], sizes = [12, 16], strides = [1, 1]} : vector<12x20xf32> to vector<12x16xf32>
    %491 = arith.maximumf %489, %490 : vector<12x16xf32>
    %492 = vector.extract_strided_slice %486 {offsets = [0, 3], sizes = [12, 16], strides = [1, 1]} : vector<12x20xf32> to vector<12x16xf32>
    %493 = arith.maximumf %491, %492 : vector<12x16xf32>
    %494 = vector.extract_strided_slice %486 {offsets = [0, 4], sizes = [12, 16], strides = [1, 1]} : vector<12x20xf32> to vector<12x16xf32>
    %495 = arith.maximumf %493, %494 : vector<12x16xf32>
    %496 = vector.extract_strided_slice %1 {offsets = [0, 105], sizes = [12, 1], strides = [1, 1]} : vector<12x108xf32> to vector<12x1xf32>
    %497 = vector.broadcast %496 : vector<12x1xf32> to vector<12x20xf32>
    %498 = arith.addf %473, %497 : vector<12x20xf32>
    %cst_8 = arith.constant 0.000000e+00 : f32
    %499 = vector.broadcast %cst_8 : f32 to vector<12x20xf32>
    %500 = arith.maximumf %498, %499 : vector<12x20xf32>
    %501 = vector.extract_strided_slice %500 {offsets = [0, 0], sizes = [12, 16], strides = [1, 1]} : vector<12x20xf32> to vector<12x16xf32>
    %502 = vector.extract_strided_slice %500 {offsets = [0, 1], sizes = [12, 16], strides = [1, 1]} : vector<12x20xf32> to vector<12x16xf32>
    %503 = arith.maximumf %501, %502 : vector<12x16xf32>
    %504 = vector.extract_strided_slice %500 {offsets = [0, 2], sizes = [12, 16], strides = [1, 1]} : vector<12x20xf32> to vector<12x16xf32>
    %505 = arith.maximumf %503, %504 : vector<12x16xf32>
    %506 = vector.extract_strided_slice %500 {offsets = [0, 3], sizes = [12, 16], strides = [1, 1]} : vector<12x20xf32> to vector<12x16xf32>
    %507 = arith.maximumf %505, %506 : vector<12x16xf32>
    %508 = vector.extract_strided_slice %500 {offsets = [0, 4], sizes = [12, 16], strides = [1, 1]} : vector<12x20xf32> to vector<12x16xf32>
    %509 = arith.maximumf %507, %508 : vector<12x16xf32>
    %510 = vector.extract_strided_slice %1 {offsets = [0, 106], sizes = [12, 1], strides = [1, 1]} : vector<12x108xf32> to vector<12x1xf32>
    %511 = vector.broadcast %510 : vector<12x1xf32> to vector<12x20xf32>
    %512 = arith.addf %477, %511 : vector<12x20xf32>
    %cst_9 = arith.constant 0.000000e+00 : f32
    %513 = vector.broadcast %cst_9 : f32 to vector<12x20xf32>
    %514 = arith.maximumf %512, %513 : vector<12x20xf32>
    %515 = vector.extract_strided_slice %514 {offsets = [0, 0], sizes = [12, 16], strides = [1, 1]} : vector<12x20xf32> to vector<12x16xf32>
    %516 = vector.extract_strided_slice %514 {offsets = [0, 1], sizes = [12, 16], strides = [1, 1]} : vector<12x20xf32> to vector<12x16xf32>
    %517 = arith.maximumf %515, %516 : vector<12x16xf32>
    %518 = vector.extract_strided_slice %514 {offsets = [0, 2], sizes = [12, 16], strides = [1, 1]} : vector<12x20xf32> to vector<12x16xf32>
    %519 = arith.maximumf %517, %518 : vector<12x16xf32>
    %520 = vector.extract_strided_slice %514 {offsets = [0, 3], sizes = [12, 16], strides = [1, 1]} : vector<12x20xf32> to vector<12x16xf32>
    %521 = arith.maximumf %519, %520 : vector<12x16xf32>
    %522 = vector.extract_strided_slice %514 {offsets = [0, 4], sizes = [12, 16], strides = [1, 1]} : vector<12x20xf32> to vector<12x16xf32>
    %523 = arith.maximumf %521, %522 : vector<12x16xf32>
    %524 = vector.extract_strided_slice %1 {offsets = [0, 107], sizes = [12, 1], strides = [1, 1]} : vector<12x108xf32> to vector<12x1xf32>
    %525 = vector.broadcast %524 : vector<12x1xf32> to vector<12x20xf32>
    %526 = arith.addf %481, %525 : vector<12x20xf32>
    %cst_10 = arith.constant 0.000000e+00 : f32
    %527 = vector.broadcast %cst_10 : f32 to vector<12x20xf32>
    %528 = arith.maximumf %526, %527 : vector<12x20xf32>
    %529 = vector.extract_strided_slice %528 {offsets = [0, 0], sizes = [12, 16], strides = [1, 1]} : vector<12x20xf32> to vector<12x16xf32>
    %530 = vector.extract_strided_slice %528 {offsets = [0, 1], sizes = [12, 16], strides = [1, 1]} : vector<12x20xf32> to vector<12x16xf32>
    %531 = arith.maximumf %529, %530 : vector<12x16xf32>
    %532 = vector.extract_strided_slice %528 {offsets = [0, 2], sizes = [12, 16], strides = [1, 1]} : vector<12x20xf32> to vector<12x16xf32>
    %533 = arith.maximumf %531, %532 : vector<12x16xf32>
    %534 = vector.extract_strided_slice %528 {offsets = [0, 3], sizes = [12, 16], strides = [1, 1]} : vector<12x20xf32> to vector<12x16xf32>
    %535 = arith.maximumf %533, %534 : vector<12x16xf32>
    %536 = vector.extract_strided_slice %528 {offsets = [0, 4], sizes = [12, 16], strides = [1, 1]} : vector<12x20xf32> to vector<12x16xf32>
    %537 = arith.maximumf %535, %536 : vector<12x16xf32>
    %538 = arith.maximumf %495, %509 : vector<12x16xf32>
    %539 = arith.maximumf %538, %523 : vector<12x16xf32>
    %540 = arith.maximumf %539, %537 : vector<12x16xf32>
    %541 = vector.shape_cast %540 : vector<12x16xf32> to vector<1x12x16xf32>
    %cst_11 = arith.constant dense<0xFF800000> : vector<1xf32>
    %542 = vector.multi_reduction <maximumf>, %541, %cst_11 [1, 2] : vector<1x12x16xf32> to vector<1xf32>
    %543 = vector.shape_cast %542 : vector<1xf32> to vector<1x1x1xf32>
    %544 = vector.extract %543[0, 0, 0] : f32 from vector<1x1x1xf32>
    %545 = tpu.concatenate %495, %509, %523, %537 in 1 : vector<12x16xf32>, vector<12x16xf32>, vector<12x16xf32>, vector<12x16xf32> -> vector<12x64xf32>
    %546 = vector.extract_strided_slice %545 {offsets = [0, 0], sizes = [6, 64], strides = [1, 1]} : vector<12x64xf32> to vector<6x64xf32>
    %547 = vector.extract_strided_slice %545 {offsets = [6, 0], sizes = [6, 64], strides = [1, 1]} : vector<12x64xf32> to vector<6x64xf32>
    %548 = tpu.concatenate %546, %547 in 1 : vector<6x64xf32>, vector<6x64xf32> -> vector<6x128xf32>
    %c0_12 = arith.constant 0 : index
    %c0_13 = arith.constant 0 : index
    %549 = vector.load %arg5[%c0_12, %c0_13] : memref<160x48xf32, #tpu.memory_space<vmem>>, vector<128x48xf32>
    %c128 = arith.constant 128 : index
    %c0_14 = arith.constant 0 : index
    %550 = vector.load %arg5[%c128, %c0_14] : memref<160x48xf32, #tpu.memory_space<vmem>>, vector<16x48xf32>
    %c144 = arith.constant 144 : index
    %c0_15 = arith.constant 0 : index
    %551 = vector.load %arg5[%c144, %c0_15] : memref<160x48xf32, #tpu.memory_space<vmem>>, vector<1x48xf32>
    %c145 = arith.constant 145 : index
    %c0_16 = arith.constant 0 : index
    %552 = vector.load %arg5[%c145, %c0_16] : memref<160x48xf32, #tpu.memory_space<vmem>>, vector<1x48xf32>
    %cst_17 = arith.constant dense<0.000000e+00> : vector<6x48xf32>
    %553 = tpu.matmul %548, %549, %cst_17 {dimension_numbers = #tpu.dot_dimension_numbers<[1], [0], [0], [1], [0, 0, 1, 1], [], []>} : vector<6x128xf32>, vector<128x48xf32>, vector<6x48xf32> -> vector<6x48xf32>
    %554 = vector.broadcast %551 : vector<1x48xf32> to vector<6x48xf32>
    %555 = arith.addf %553, %554 : vector<6x48xf32>
    %c0_18 = arith.constant 0 : index
    %c0_19 = arith.constant 0 : index
    %c0_20 = arith.constant 0 : index
    %556 = vector.load %arg1[%c0_18, %c0_19, %c0_20] : memref<1x2x16xf32, #tpu.memory_space<vmem>>, vector<1x2x16xf32>
    %557 = vector.shape_cast %556 : vector<1x2x16xf32> to vector<2x16xf32>
    %558 = vector.extract_strided_slice %555 {offsets = [0, 0], sizes = [2, 48], strides = [1, 1]} : vector<6x48xf32> to vector<2x48xf32>
    %cst_21 = arith.constant dense<0.000000e+00> : vector<2x48xf32>
    %559 = tpu.matmul %557, %550, %cst_21 {dimension_numbers = #tpu.dot_dimension_numbers<[1], [0], [0], [1], [0, 0, 1, 1], [], []>} : vector<2x16xf32>, vector<16x48xf32>, vector<2x48xf32> -> vector<2x48xf32>
    %560 = vector.broadcast %552 : vector<1x48xf32> to vector<2x48xf32>
    %561 = arith.addf %559, %560 : vector<2x48xf32>
    %562 = vector.extract_strided_slice %558 {offsets = [0, 0], sizes = [2, 16], strides = [1, 1]} : vector<2x48xf32> to vector<2x16xf32>
    %563 = vector.extract_strided_slice %561 {offsets = [0, 0], sizes = [2, 16], strides = [1, 1]} : vector<2x48xf32> to vector<2x16xf32>
    %564 = arith.addf %562, %563 : vector<2x16xf32>
    %565 = arith.negf %564 : vector<2x16xf32>
    %566 = math.exp %565 : vector<2x16xf32>
    %cst_22 = arith.constant 1.000000e+00 : f32
    %567 = vector.broadcast %cst_22 : f32 to vector<2x16xf32>
    %568 = arith.addf %567, %566 : vector<2x16xf32>
    %569 = arith.divf %567, %568 : vector<2x16xf32>
    %570 = vector.extract_strided_slice %558 {offsets = [0, 16], sizes = [2, 16], strides = [1, 1]} : vector<2x48xf32> to vector<2x16xf32>
    %571 = vector.extract_strided_slice %561 {offsets = [0, 16], sizes = [2, 16], strides = [1, 1]} : vector<2x48xf32> to vector<2x16xf32>
    %572 = arith.addf %570, %571 : vector<2x16xf32>
    %573 = arith.negf %572 : vector<2x16xf32>
    %574 = math.exp %573 : vector<2x16xf32>
    %cst_23 = arith.constant 1.000000e+00 : f32
    %575 = vector.broadcast %cst_23 : f32 to vector<2x16xf32>
    %576 = arith.addf %575, %574 : vector<2x16xf32>
    %577 = arith.divf %575, %576 : vector<2x16xf32>
    %578 = vector.extract_strided_slice %558 {offsets = [0, 32], sizes = [2, 16], strides = [1, 1]} : vector<2x48xf32> to vector<2x16xf32>
    %579 = vector.extract_strided_slice %561 {offsets = [0, 32], sizes = [2, 16], strides = [1, 1]} : vector<2x48xf32> to vector<2x16xf32>
    %580 = arith.mulf %569, %579 : vector<2x16xf32>
    %581 = arith.addf %578, %580 : vector<2x16xf32>
    %582 = math.tanh %581 : vector<2x16xf32>
    %cst_24 = arith.constant 1.000000e+00 : f32
    %583 = vector.broadcast %cst_24 : f32 to vector<2x16xf32>
    %584 = arith.subf %583, %577 : vector<2x16xf32>
    %585 = arith.mulf %584, %582 : vector<2x16xf32>
    %586 = arith.mulf %577, %557 : vector<2x16xf32>
    %587 = arith.addf %585, %586 : vector<2x16xf32>
    %c0_25 = arith.constant 0 : index
    %c0_26 = arith.constant 0 : index
    %588 = vector.load %arg9[%c0_25, %c0_26] : memref<6x16xf32, #tpu.memory_space<vmem>>, vector<2x16xf32>
    tpu.vector_store %arg9[%c0_25, %c0_26], %587 {strides = array<i32>} : memref<6x16xf32, #tpu.memory_space<vmem>>, vector<2x16xf32>,
    %589 = vector.extract_strided_slice %555 {offsets = [2, 0], sizes = [2, 48], strides = [1, 1]} : vector<6x48xf32> to vector<2x48xf32>
    %cst_27 = arith.constant dense<0.000000e+00> : vector<2x48xf32>
    %590 = tpu.matmul %587, %550, %cst_27 {dimension_numbers = #tpu.dot_dimension_numbers<[1], [0], [0], [1], [0, 0, 1, 1], [], []>} : vector<2x16xf32>, vector<16x48xf32>, vector<2x48xf32> -> vector<2x48xf32>
    %591 = vector.broadcast %552 : vector<1x48xf32> to vector<2x48xf32>
    %592 = arith.addf %590, %591 : vector<2x48xf32>
    %593 = vector.extract_strided_slice %589 {offsets = [0, 0], sizes = [2, 16], strides = [1, 1]} : vector<2x48xf32> to vector<2x16xf32>
    %594 = vector.extract_strided_slice %592 {offsets = [0, 0], sizes = [2, 16], strides = [1, 1]} : vector<2x48xf32> to vector<2x16xf32>
    %595 = arith.addf %593, %594 : vector<2x16xf32>
    %596 = arith.negf %595 : vector<2x16xf32>
    %597 = math.exp %596 : vector<2x16xf32>
    %cst_28 = arith.constant 1.000000e+00 : f32
    %598 = vector.broadcast %cst_28 : f32 to vector<2x16xf32>
    %599 = arith.addf %598, %597 : vector<2x16xf32>
    %600 = arith.divf %598, %599 : vector<2x16xf32>
    %601 = vector.extract_strided_slice %589 {offsets = [0, 16], sizes = [2, 16], strides = [1, 1]} : vector<2x48xf32> to vector<2x16xf32>
    %602 = vector.extract_strided_slice %592 {offsets = [0, 16], sizes = [2, 16], strides = [1, 1]} : vector<2x48xf32> to vector<2x16xf32>
    %603 = arith.addf %601, %602 : vector<2x16xf32>
    %604 = arith.negf %603 : vector<2x16xf32>
    %605 = math.exp %604 : vector<2x16xf32>
    %cst_29 = arith.constant 1.000000e+00 : f32
    %606 = vector.broadcast %cst_29 : f32 to vector<2x16xf32>
    %607 = arith.addf %606, %605 : vector<2x16xf32>
    %608 = arith.divf %606, %607 : vector<2x16xf32>
    %609 = vector.extract_strided_slice %589 {offsets = [0, 32], sizes = [2, 16], strides = [1, 1]} : vector<2x48xf32> to vector<2x16xf32>
    %610 = vector.extract_strided_slice %592 {offsets = [0, 32], sizes = [2, 16], strides = [1, 1]} : vector<2x48xf32> to vector<2x16xf32>
    %611 = arith.mulf %600, %610 : vector<2x16xf32>
    %612 = arith.addf %609, %611 : vector<2x16xf32>
    %613 = math.tanh %612 : vector<2x16xf32>
    %cst_30 = arith.constant 1.000000e+00 : f32
    %614 = vector.broadcast %cst_30 : f32 to vector<2x16xf32>
    %615 = arith.subf %614, %608 : vector<2x16xf32>
    %616 = arith.mulf %615, %613 : vector<2x16xf32>
    %617 = arith.mulf %608, %587 : vector<2x16xf32>
    %618 = arith.addf %616, %617 : vector<2x16xf32>
    %c2 = arith.constant 2 : index
    %c0_31 = arith.constant 0 : index
    %619 = vector.load %arg9[%c2, %c0_31] : memref<6x16xf32, #tpu.memory_space<vmem>>, vector<2x16xf32>
    tpu.vector_store %arg9[%c2, %c0_31], %618 {strides = array<i32>} : memref<6x16xf32, #tpu.memory_space<vmem>>, vector<2x16xf32>,
    %620 = vector.extract_strided_slice %555 {offsets = [4, 0], sizes = [2, 48], strides = [1, 1]} : vector<6x48xf32> to vector<2x48xf32>
    %cst_32 = arith.constant dense<0.000000e+00> : vector<2x48xf32>
    %621 = tpu.matmul %618, %550, %cst_32 {dimension_numbers = #tpu.dot_dimension_numbers<[1], [0], [0], [1], [0, 0, 1, 1], [], []>} : vector<2x16xf32>, vector<16x48xf32>, vector<2x48xf32> -> vector<2x48xf32>
    %622 = vector.broadcast %552 : vector<1x48xf32> to vector<2x48xf32>
    %623 = arith.addf %621, %622 : vector<2x48xf32>
    %624 = vector.extract_strided_slice %620 {offsets = [0, 0], sizes = [2, 16], strides = [1, 1]} : vector<2x48xf32> to vector<2x16xf32>
    %625 = vector.extract_strided_slice %623 {offsets = [0, 0], sizes = [2, 16], strides = [1, 1]} : vector<2x48xf32> to vector<2x16xf32>
    %626 = arith.addf %624, %625 : vector<2x16xf32>
    %627 = arith.negf %626 : vector<2x16xf32>
    %628 = math.exp %627 : vector<2x16xf32>
    %cst_33 = arith.constant 1.000000e+00 : f32
    %629 = vector.broadcast %cst_33 : f32 to vector<2x16xf32>
    %630 = arith.addf %629, %628 : vector<2x16xf32>
    %631 = arith.divf %629, %630 : vector<2x16xf32>
    %632 = vector.extract_strided_slice %620 {offsets = [0, 16], sizes = [2, 16], strides = [1, 1]} : vector<2x48xf32> to vector<2x16xf32>
    %633 = vector.extract_strided_slice %623 {offsets = [0, 16], sizes = [2, 16], strides = [1, 1]} : vector<2x48xf32> to vector<2x16xf32>
    %634 = arith.addf %632, %633 : vector<2x16xf32>
    %635 = arith.negf %634 : vector<2x16xf32>
    %636 = math.exp %635 : vector<2x16xf32>
    %cst_34 = arith.constant 1.000000e+00 : f32
    %637 = vector.broadcast %cst_34 : f32 to vector<2x16xf32>
    %638 = arith.addf %637, %636 : vector<2x16xf32>
    %639 = arith.divf %637, %638 : vector<2x16xf32>
    %640 = vector.extract_strided_slice %620 {offsets = [0, 32], sizes = [2, 16], strides = [1, 1]} : vector<2x48xf32> to vector<2x16xf32>
    %641 = vector.extract_strided_slice %623 {offsets = [0, 32], sizes = [2, 16], strides = [1, 1]} : vector<2x48xf32> to vector<2x16xf32>
    %642 = arith.mulf %631, %641 : vector<2x16xf32>
    %643 = arith.addf %640, %642 : vector<2x16xf32>
    %644 = math.tanh %643 : vector<2x16xf32>
    %cst_35 = arith.constant 1.000000e+00 : f32
    %645 = vector.broadcast %cst_35 : f32 to vector<2x16xf32>
    %646 = arith.subf %645, %639 : vector<2x16xf32>
    %647 = arith.mulf %646, %644 : vector<2x16xf32>
    %648 = arith.mulf %639, %618 : vector<2x16xf32>
    %649 = arith.addf %647, %648 : vector<2x16xf32>
    %c4 = arith.constant 4 : index
    %c0_36 = arith.constant 0 : index
    %650 = vector.load %arg9[%c4, %c0_36] : memref<6x16xf32, #tpu.memory_space<vmem>>, vector<2x16xf32>
    tpu.vector_store %arg9[%c4, %c0_36], %649 {strides = array<i32>} : memref<6x16xf32, #tpu.memory_space<vmem>>, vector<2x16xf32>,
    %c0_37 = arith.constant 0 : index
    %c0_38 = arith.constant 0 : index
    %c0_39 = arith.constant 0 : index
    %651 = vector.load %arg7[%c0_37, %c0_38, %c0_39] : memref<1x2x16xf32, #tpu.memory_space<vmem>>, vector<1x2x16xf32>
    %652 = vector.shape_cast %651 : vector<1x2x16xf32> to vector<2x16xf32>
    %653 = vector.shape_cast %649 : vector<2x16xf32> to vector<1x2x16xf32>
    tpu.vector_store %arg7[%c0_37, %c0_38, %c0_39], %653 {strides = array<i32>} : memref<1x2x16xf32, #tpu.memory_space<vmem>>, vector<1x2x16xf32>,
    %c0_40 = arith.constant 0 : index
    %c0_41 = arith.constant 0 : index
    %654 = vector.load %arg9[%c0_40, %c0_41] : memref<6x16xf32, #tpu.memory_space<vmem>>, vector<6x16xf32>
    %655 = math.absf %654 : vector<6x16xf32>
    %656 = vector.shape_cast %655 : vector<6x16xf32> to vector<1x6x16xf32>
    %cst_42 = arith.constant dense<0xFF800000> : vector<1xf32>
    %657 = vector.multi_reduction <maximumf>, %656, %cst_42 [1, 2] : vector<1x6x16xf32> to vector<1xf32>
    %658 = vector.shape_cast %657 : vector<1xf32> to vector<1x1x1xf32>
    %659 = vector.extract %658[0, 0, 0] : f32 from vector<1x1x1xf32>
    %c152 = arith.constant 152 : index
    %c0_43 = arith.constant 0 : index
    %660 = vector.load %arg5[%c152, %c0_43] : memref<160x48xf32, #tpu.memory_space<vmem>>, vector<1x48xf32>
    %661 = vector.extract_strided_slice %660 {offsets = [0, 0], sizes = [1, 16], strides = [1, 1]} : vector<1x48xf32> to vector<1x16xf32>
    %662 = vector.broadcast %661 : vector<1x16xf32> to vector<2x16xf32>
    %663 = arith.mulf %649, %662 : vector<2x16xf32>
    %cst_44 = arith.constant dense<0.000000e+00> : vector<2xf32>
    %664 = vector.multi_reduction <add>, %663, %cst_44 [1] : vector<2x16xf32> to vector<2xf32>
    %665 = vector.shape_cast %664 : vector<2xf32> to vector<2x1xf32>
    %c0_45 = arith.constant 0 : index
    %c0_46 = arith.constant 0 : index
    %666 = vector.load %arg2[%c0_45, %c0_46] : memref<2x1xf32, #tpu.memory_space<vmem>>, vector<2x1xf32>
    %667 = vector.extract_strided_slice %660 {offsets = [0, 17], sizes = [1, 1], strides = [1, 1]} : vector<1x48xf32> to vector<1x1xf32>
    %668 = vector.broadcast %667 : vector<1x1xf32> to vector<2x1xf32>
    %669 = arith.mulf %666, %668 : vector<2x1xf32>
    %670 = arith.addf %665, %669 : vector<2x1xf32>
    %671 = vector.extract_strided_slice %660 {offsets = [0, 16], sizes = [1, 1], strides = [1, 1]} : vector<1x48xf32> to vector<1x1xf32>
    %672 = vector.broadcast %671 : vector<1x1xf32> to vector<2x1xf32>
    %673 = arith.addf %670, %672 : vector<2x1xf32>
    %674 = math.absf %673 : vector<2x1xf32>
    %675 = vector.shape_cast %674 : vector<2x1xf32> to vector<1x2x1xf32>
    %cst_47 = arith.constant dense<0xFF800000> : vector<1xf32>
    %676 = vector.multi_reduction <maximumf>, %675, %cst_47 [1, 2] : vector<1x2x1xf32> to vector<1xf32>
    %677 = vector.shape_cast %676 : vector<1xf32> to vector<1x1x1xf32>
    %678 = vector.extract %677[0, 0, 0] : f32 from vector<1x1x1xf32>
    %679 = arith.negf %673 : vector<2x1xf32>
    %680 = math.exp %679 : vector<2x1xf32>
    %cst_48 = arith.constant 1.000000e+00 : f32
    %681 = vector.broadcast %cst_48 : f32 to vector<2x1xf32>
    %682 = arith.addf %681, %680 : vector<2x1xf32>
    %683 = arith.divf %681, %682 : vector<2x1xf32>
    %c0_49 = arith.constant 0 : index
    %c0_50 = arith.constant 0 : index
    %684 = vector.load %arg6[%c0_49, %c0_50] : memref<2x1xf32, #tpu.memory_space<vmem>>, vector<2x1xf32>
    tpu.vector_store %arg6[%c0_49, %c0_50], %683 {strides = array<i32>} : memref<2x1xf32, #tpu.memory_space<vmem>>, vector<2x1xf32>,
    %c0_51 = arith.constant 0 : index
    %c0_52 = arith.constant 0 : index
    %685 = memref.load %arg3[%c0_51, %c0_52] : memref<1x1xf32, #tpu.memory_space<smem>>
    %686 = arith.maximumf %685, %145 : f32
    %687 = arith.maximumf %686, %544 : f32
    %688 = arith.maximumf %687, %659 : f32
    %689 = arith.maximumf %688, %678 : f32
    %c0_53 = arith.constant 0 : index
    %c0_54 = arith.constant 0 : index
    %690 = memref.load %arg8[%c0_53, %c0_54] : memref<1x1xf32, #tpu.memory_space<smem>>
    memref.store %689, %arg8[%c0_53, %c0_54] : memref<1x1xf32, #tpu.memory_space<smem>>
    return
  }
}

</mosaic_0001>

<bundles_post_ra>
// kernel: tpu_custom_call.1
= control target key start
LH: loop header
LB: loop body
LE: loop exit
PB: predicated region body
PF: predicated region fallthrough
CT: control target
= control target key end

     0   :  { %15 = vsyncpa [#allocation5], 0  ;;  %v3361_v1 = vmov 2   ;;  %v3362_v2 = vmov 1   ;;  %s5439_s0 = inlined_call_operand.vmem [shape: f32[12,32], index: 0, kind: input, shape index: {}]   ;;  %s5440_s1 = inlined_call_operand.vmem [shape: f32[1,2,16], index: 1, kind: input, shape index: {}]   ;;  %s5441_s2 = inlined_call_operand.vmem [shape: f32[2,1], index: 2, kind: input, shape index: {}]   ;;  %s5442_s3 = inlined_call_operand.<no memory space> [shape: f32[1,1], index: 3, kind: input, shape index: {}]   ;;  %s5443_s4 = inlined_call_operand.vmem [shape: f32[12,108], index: 4, kind: input, shape index: {}]   ;;  %s5444_s5 = inlined_call_operand.vmem [shape: f32[160,48], index: 5, kind: input, shape index: {}]   ;;  %s5445_s6 = inlined_call_operand.vmem [shape: f32[2,1], index: 6, kind: output, shape index: {0}]   ;;  %s5446_s7 = inlined_call_operand.hbm [shape: f32[1,2,16], index: 7, kind: output, shape index: {1}]   ;;  %s5447_s8 = inlined_call_operand.hbm [shape: f32[1,1], index: 8, kind: output, shape index: {2}]  }
   0x1   :  { %v3533_v0 = vld [vmem:[%s5443_s4] sm:$0xff]  ;;  %3095 = vset.pattern.permute.xlu1 %v3361_v1  ;;  %3094 = vset.pattern.permute.xlu0 %v3362_v2  ;;  %v3540_v3 = vld [vmem:[%s5443_s4 + $0x8] sm:$0xf] }
   0x2   :  { %156 = vperm.xlu1 %3095, %v3533_v0   ;;  %76 = vperm.xlu0 %3094, %v3533_v0  }
   0x3   :  { %16 = vsyncpa [#allocation6], 0  ;;  %v3363_v4 = vmov 3   ;;  %v3364_v5 = vmov 4   ;;  %v3365_v6 = vmov 6   ;;  %v3366_v7 = vmov 7  }
   0x4   :  { %v3367_v8 = vmov 8   ;;  %v3368_v9 = vmov 11   ;;  %v3369_v10 = vmov 12   ;;  %v3370_v11 = vmov 9   ;;  %v3585_v24 = vld [vmem:[%s5439_s0] sm:$0xff]  ;;  %s3383_s13 = smov 127  }
   0x5   :  { %v3371_v12 = vmov 14   ;;  %v3372_v13 = vmov 16   ;;  %v3373_v14 = vmov 18   ;;  %v3374_v15 = vmov 19   ;;  %v3591_v28 = vld [vmem:[%s5439_s0 + $0x8] sm:$0xf] }
   0x6   :  { %160 = vperm.xlu1 %3095, %v3540_v3   ;;  %80 = vperm.xlu0 %3094, %v3540_v3   ;;  %v3375_v16 = vmov 13   ;;  %v3376_v17 = vmov 5   ;;  %v3377_v18 = vmov 20   ;;  %v3378_v19 = vmov 10   ;;  %s3384_s14 = smov 126   ;;  %s3385_s0 = smov 125  }
   0x7   :  { %v3379_v20 = vmov 21   ;;  %v3380_v21 = vmov 17   ;;  %v3381_v22 = vmov 15   ;;  %v3382_v23 = vmov 0   ;;  %s3386_s15 = smov 124   ;;  %s3479_s18 = smov 64  }
   0x8   :  { %v3387_v1 = vmov 22   ;;  %vm3475_vm0 = vmmov 0   ;;  %vm2253_vm1 = vcmask 130048   ;;  %vm2255_vm2 = vcmask 125952   ;;  %s3480_s20 = smov 96   ;;  %s3481_s23 = smov 112  }
   0x9   :  { %vm2293_vm3 = vcmask 261120   ;;  %vm2296_vm4 = vcmask 392192   ;;  %vm2301_vm5 = vcmask 1041408   ;;  %vm2308_vm6 = vcmask 523264   ;;  %s3483_s27 = smov [#allocation4]  }
   0xa   :  { %3097 = vset.pattern.permute.xlu1 %v3363_v4  ;;  %3096 = vset.pattern.permute.xlu0 %v3363_v4  ;;  %vm2515_vm7 = vcmask 123904   ;;  %vm585_vm8 = vcmask 195584   ;;  %vm587_vm9 = vcmask 191488   ;;  %vm2734_vm10 = vcmask 128004   ;;  %s2814_s28 = sshll.u32 %s3483_s27, 4  ;;  %s2815_s28 = int_to_ptr.vmem [resolvable:$true] %s2814_s28 }
   0xb   :  { %240 = vperm.xlu1 %3097, %v3540_v3   ;;  %236 = vperm.xlu0 %3096, %v3533_v0   ;;  %vm2623_vm11 = vcmask 125954   ;;  %vm2739_vm12 = vcmask 128000   ;;  %vm2781_vm13 = vcmask 5124   ;;  %s3325_s29 = scalar_lea.vmem %s2815_s28, 32  ;;  %p3330_p1 = scmp.lt.s32.totalorder %s2815_s28, %s2815_s28 }
   0xc   :  { %p3326_p0 = scmp.ne.s32.totalorder %s2815_s28, %s3325_s29  ;;  %p3331_p2 = scmp.lt.s32.totalorder %s3325_s29, %s3325_s29 }
   0xe   :  { %p3332_p3 = por %p3331_p2, %p3330_p1 }
   0xf   :  { %3098 = vset.pattern.permute.xlu1 %v3364_v5  ;;  %3099 = vset.pattern.permute.xlu0 %v3364_v5 }
  0x10   :  { %316 = vperm.xlu1 %3098, %v3533_v0   ;;  %320 = vperm.xlu0 %3099, %v3540_v3   ;;  %p3333_p4 = pnand %p3332_p3, %p3326_p0 }
  0x14   :  { %3100 = vset.pattern.permute.xlu1 %v3365_v6  ;;  %3101 = vset.pattern.permute.xlu0 %v3366_v7  ;;  %v3388_v6 = vmov 23  }
  0x15   :  { %96 = vperm.xlu1 %3100, %v3533_v0   ;;  %176 = vperm.xlu0 %3101, %v3533_v0  }
  0x19   :  { %100 = vperm.xlu1 %3100, %v3540_v3   ;;  %3104 = vset.pattern.permute.xlu0 %v3367_v8 }
  0x1a   :  { %260 = vperm.xlu0 %3104, %v3540_v3  }
  0x1d   :  { %3102 = vset.pattern.permute.xlu1 %v3366_v7 }
  0x1e   :  { %180 = vperm.xlu1 %3102, %v3540_v3   ;;  %3106 = vset.pattern.permute.xlu0 %v3368_v9 }
  0x1f   :  { %116 = vperm.xlu0 %3106, %v3533_v0  }
  0x22   :  { %3103 = vset.pattern.permute.xlu1 %v3367_v8 }
  0x23   :  { %256 = vperm.xlu1 %3103, %v3533_v0   ;;  %3109 = vset.pattern.permute.xlu0 %v3369_v10 }
  0x24   :  { %200 = vperm.xlu0 %3109, %v3540_v3  }
  0x27   :  { %3105 = vset.pattern.permute.xlu1 %v3370_v11 }
  0x28   :  { %336 = vperm.xlu1 %3105, %v3533_v0   ;;  %3111 = vset.pattern.permute.xlu0 %v3371_v12 }
  0x29   :  { %356 = vperm.xlu0 %3111, %v3533_v0  }
  0x2c   :  { %340 = vperm.xlu1 %3105, %v3540_v3  }
  0x2d   :  { %3114 = vset.pattern.permute.xlu0 %v3372_v13 }
  0x2e   :  { %140 = vperm.xlu0 %3114, %v3540_v3  }
  0x30   :  { %3107 = vset.pattern.permute.xlu1 %v3368_v9 }
  0x31   :  { %120 = vperm.xlu1 %3107, %v3540_v3  }
  0x32   :  { %3116 = vset.pattern.permute.xlu0 %v3373_v14 }
  0x33   :  { %296 = vperm.xlu0 %3116, %v3533_v0  }
  0x35   :  { %3108 = vset.pattern.permute.xlu1 %v3369_v10 }
  0x36   :  { %196 = vperm.xlu1 %3108, %v3533_v0  }
  0x37   :  { %3119 = vset.pattern.permute.xlu0 %v3374_v15 }
  0x38   :  { %380 = vperm.xlu0 %3119, %v3540_v3  }
  0x3a   :  { %3110 = vset.pattern.permute.xlu1 %v3375_v16 }
  0x3b   :  { %276 = vperm.xlu1 %3110, %v3533_v0  }
  0x3c   :  { %3121 = vset.pattern.permute.xlu0 %v3376_v17 }
  0x3d   :  { %46 = vperm.xlu0 %3121, %v3533_v0  }
  0x3f   :  { %280 = vperm.xlu1 %3110, %v3540_v3  }
  0x41   :  { %3124 = vset.pattern.permute.xlu0 %v3377_v18 }
  0x42   :  { %400 = vperm.xlu0 %3124, %v3540_v3  }
  0x43   :  { %3112 = vset.pattern.permute.xlu1 %v3371_v12 }
  0x44   :  { %360 = vperm.xlu1 %3112, %v3540_v3  }
  0x46   :  { %3125 = vset.pattern.permute.xlu0 %v3378_v19 }
  0x47   :  { %56 = vperm.xlu0 %3125, %v3533_v0  }
  0x48   :  { %3113 = vset.pattern.permute.xlu1 %v3372_v13 }
  0x49   :  { %136 = vperm.xlu1 %3113, %v3533_v0  }
  0x4b   :  { %3128 = vset.pattern.permute.xlu0 %v3379_v20 }
  0x4c   :  { %446 = vperm.xlu0 %3128, %v3540_v3  }
  0x4d   :  { %3115 = vset.pattern.permute.xlu1 %v3380_v21 }
  0x4e   :  { %216 = vperm.xlu1 %3115, %v3533_v0  }
  0x50   :  { %3129 = vset.pattern.permute.xlu0 %v3381_v22 }
  0x52   :  { %220 = vperm.xlu1 %3115, %v3540_v3  }
  0x56   :  { %3117 = vset.pattern.permute.xlu1 %v3373_v14 }
  0x57   :  { %300 = vperm.xlu1 %3117, %v3540_v3  }
  0x5b   :  { %3118 = vset.pattern.permute.xlu1 %v3374_v15 }
  0x5c   :  { %376 = vperm.xlu1 %3118, %v3533_v0  }
  0x60   :  { %3120 = vset.pattern.permute.xlu1 %v3382_v23 }
  0x61   :  { %35 = vperm.xlu1 %3120, %v3533_v0  }
  0x65   :  { %40 = vperm.xlu1 %3120, %v3540_v3  }
  0x69   :  { %3122 = vset.pattern.permute.xlu1 %v3376_v17 }
  0x6a   :  { %50 = vperm.xlu1 %3122, %v3540_v3  }
  0x6e   :  { %3123 = vset.pattern.permute.xlu1 %v3377_v18 }
  0x6f   :  { %396 = vperm.xlu1 %3123, %v3533_v0  }
  0x73   :  { %3126 = vset.pattern.permute.xlu1 %v3378_v19 }
  0x74   :  { %60 = vperm.xlu1 %3126, %v3540_v3  }
  0x78   :  { %3127 = vset.pattern.permute.xlu1 %v3379_v20 }
  0x79   :  { %442 = vperm.xlu1 %3127, %v3533_v0  }
  0x7d   :  { %3130 = vset.pattern.permute.xlu1 %v3381_v22  ;;  %v3389_v22 = vmov 45  }
  0x81   :  { %v157_v25 = vpop.permute.xlu1 %156  ;;  %v77_v26 = vpop.permute.xlu0 %76 }
  0x82   :  { %v83_v27 = vmul.f32 %v77_v26, %v3585_v24  ;;  %v163_v32 = vmul.f32 %v157_v25, %v3585_v24 }
  0x84   :  { %87 = vrot.lane.b32.xlu0 %v83_v27, %s3383_s13 }
  0x85   :  { %v161_v29 = vpop.permute.xlu1 %160  ;;  %v81_v30 = vpop.permute.xlu0 %80 }
  0x86   :  { %v84_v31 = vmul.f32 %v81_v30, %v3591_v28  ;;  %v164_v36 = vmul.f32 %v161_v29, %v3591_v28 }
  0x88   :  { %89 = vrot.lane.b32.xlu1 %v84_v31, %s3383_s13 }
  0x8a   :  { %v241_v33 = vpop.permute.xlu1 %240  ;;  %v237_v34 = vpop.permute.xlu0 %236 }
  0x8b   :  { %v243_v35 = vmul.f32 %v237_v34, %v3585_v24  ;;  %v244_v40 = vmul.f32 %v241_v33, %v3591_v28 }
  0x8c   :  { %167 = vrot.lane.b32.xlu1 %v163_v32, %s3384_s14 }
  0x8d   :  { %247 = vrot.lane.b32.xlu0 %v243_v35, %s3385_s0  ;;  %v3390_v35 = vmov 65  }
  0x8f   :  { %v317_v37 = vpop.permute.xlu1 %316  ;;  %v321_v39 = vpop.permute.xlu0 %320 }
  0x90   :  { %v323_v38 = vmul.f32 %v317_v37, %v3585_v24  ;;  %169 = vrot.lane.b32.xlu1 %v164_v36, %s3384_s14  ;;  %v324_v42 = vmul.f32 %v321_v39, %v3591_v28 }
  0x92   :  { %327 = vrot.lane.b32.xlu0 %v323_v38, %s3386_s15  ;;  %v3391_v38 = vmov 85  }
  0x94   :  { %v97_v41 = vpop.permute.xlu1 %96  ;;  %249 = vrot.lane.b32.xlu1 %v244_v40, %s3385_s0  ;;  %v177_v46 = vpop.permute.xlu0 %176 }
  0x95   :  { %v103_v43 = vmul.f32 %v97_v41, %v3585_v24  ;;  %v183_v47 = vmul.f32 %v177_v46, %v3585_v24  ;;  %v3392_v41 = vmov 66  }
  0x97   :  { %107 = vrot.lane.b32.xlu0 %v103_v43, %s3383_s13 }
  0x98   :  { %v101_v44 = vpop.permute.xlu1 %100  ;;  %329 = vrot.lane.b32.xlu1 %v324_v42, %s3386_s15  ;;  %v3393_v42 = vmov 46  }
  0x99   :  { %v104_v45 = vmul.f32 %v101_v44, %v3591_v28  ;;  %v261_v49 = vpop.permute.xlu0 %260 }
  0x9a   :  { %v264_v53 = vmul.f32 %v261_v49, %v3591_v28 }
  0x9c   :  { %109 = vrot.lane.b32.xlu1 %v104_v45, %s3383_s13  ;;  %v3394_v45 = vmov 86  }
  0x9d   :  { %v181_v48 = vpop.permute.xlu1 %180 }
  0x9e   :  { %v184_v50 = vmul.f32 %v181_v48, %v3591_v28  ;;  %v117_v55 = vpop.permute.xlu0 %116 }
  0x9f   :  { %v123_v57 = vmul.f32 %v117_v55, %v3585_v24 }
  0xa0   :  { %187 = vrot.lane.b32.xlu1 %v183_v47, %s3384_s14  ;;  %v3395_v47 = vmov 67  }
  0xa2   :  { %v257_v51 = vpop.permute.xlu1 %256 }
  0xa3   :  { %v263_v52 = vmul.f32 %v257_v51, %v3585_v24  ;;  %v201_v62 = vpop.permute.xlu0 %200 }
  0xa4   :  { %189 = vrot.lane.b32.xlu1 %v184_v50, %s3384_s14  ;;  %v204_v10 = vmul.f32 %v201_v62, %v3591_v28  ;;  %v3396_v50 = vmov 87  }
  0xa5   :  { %267 = vrot.lane.b32.xlu0 %v263_v52, %s3385_s0 }
  0xa7   :  { %v337_v54 = vpop.permute.xlu1 %336 }
  0xa8   :  { %v343_v56 = vmul.f32 %v337_v54, %v3585_v24  ;;  %269 = vrot.lane.b32.xlu1 %v264_v53, %s3385_s0  ;;  %v357_v4 = vpop.permute.xlu0 %356 }
  0xa9   :  { %v363_v7 = vmul.f32 %v357_v4, %v3585_v24 }
  0xaa   :  { %347 = vrot.lane.b32.xlu0 %v343_v56, %s3386_s15 }
  0xab   :  { %v341_v58 = vpop.permute.xlu1 %340 }
  0xac   :  { %v344_v59 = vmul.f32 %v341_v58, %v3591_v28 }
  0xad   :  { %v141_v15 = vpop.permute.xlu0 %140 }
  0xae   :  { %349 = vrot.lane.b32.xlu1 %v344_v59, %s3386_s15  ;;  %127 = vrot.lane.b32.xlu0 %v123_v57, %s3383_s13  ;;  %v144_v17 = vmul.f32 %v141_v15, %v3591_v28  ;;  %v3397_v59 = vmov 47  }
  0xb0   :  { %v121_v60 = vpop.permute.xlu1 %120 }
  0xb1   :  { %v124_v61 = vmul.f32 %v121_v60, %v3591_v28 }
  0xb2   :  { %66 = vperm.xlu0 %3129, %v3533_v0   ;;  %v297_v21 = vpop.permute.xlu0 %296 }
  0xb3   :  { %129 = vrot.lane.b32.xlu1 %v124_v61, %s3383_s13  ;;  %v303_v29 = vmul.f32 %v297_v21, %v3585_v24 }
  0xb5   :  { %v197_v63 = vpop.permute.xlu1 %196 }
  0xb6   :  { %3132 = vset.pattern.permute.xlu0 %v3387_v1  ;;  %v203_v8 = vmul.f32 %v197_v63, %v3585_v24 }
  0xb7   :  { %70 = vperm.xlu1 %3130, %v3540_v3   ;;  %492 = vperm.xlu0 %3132, %v3540_v3   ;;  %v381_v26 = vpop.permute.xlu0 %380 }
  0xb8   :  { %v384_v30 = vmul.f32 %v381_v26, %v3591_v28  ;;  %v3400_v26 = vmov 88  }
  0xba   :  { %v277_v2 = vpop.permute.xlu1 %276 }
  0xbb   :  { %v283_v5 = vmul.f32 %v277_v2, %v3585_v24  ;;  %3131 = vset.pattern.permute.xlu1 %v3387_v1  ;;  %3133 = vset.pattern.permute.xlu0 %v3388_v6 }
  0xbc   :  { %488 = vperm.xlu1 %3131, %v3533_v0   ;;  %v3665_v36 = vpop.permute.xlu0 %46 }
  0xbd   :  { %287 = vrot.lane.b32.xlu0 %v283_v5, %s3385_s0 }
  0xbe   :  { %v281_v9 = vpop.permute.xlu1 %280 }
  0xbf   :  { %v284_v12 = vmul.f32 %v281_v9, %v3591_v28 }
  0xc0   :  { %207 = vrot.lane.b32.xlu1 %v203_v8, %s3384_s14 }
  0xc1   :  { %367 = vrot.lane.b32.xlu0 %v363_v7, %s3386_s15  ;;  %3134 = vset.pattern.permute.xlu1 %v3388_v6  ;;  %v401_v39 = vpop.permute.xlu0 %400 }
  0xc3   :  { %v361_v11 = vpop.permute.xlu1 %360 }
  0xc4   :  { %209 = vrot.lane.b32.xlu1 %v204_v10, %s3384_s14  ;;  %v364_v16 = vmul.f32 %v361_v11, %v3591_v28 }
  0xc6   :  { %v3676_v44 = vpop.permute.xlu0 %56 }
  0xc8   :  { %v137_v13 = vpop.permute.xlu1 %136  ;;  %289 = vrot.lane.b32.xlu1 %v284_v12, %s3385_s0 }
  0xc9   :  { %v143_v14 = vmul.f32 %v137_v13, %v3585_v24 }
  0xcb   :  { %147 = vrot.lane.b32.xlu0 %v143_v14, %s3383_s13  ;;  %v3682_v48 = vpop.permute.xlu0 %446  ;;  %v3398_v14 = vmov 48  }
  0xcc   :  { %369 = vrot.lane.b32.xlu1 %v364_v16, %s3386_s15 }
  0xcd   :  { %v217_v18 = vpop.permute.xlu1 %216 }
  0xce   :  { %v223_v23 = vmul.f32 %v217_v18, %v3585_v24  ;;  %v3399_v18 = vmov 68  }
  0xcf   :  { %534 = vperm.xlu0 %3133, %v3533_v0  }
  0xd0   :  { %149 = vrot.lane.b32.xlu1 %v144_v17, %s3383_s13 }
  0xd1   :  { %v221_v19 = vpop.permute.xlu1 %220 }
  0xd2   :  { %v224_v20 = vmul.f32 %v221_v19, %v3591_v28 }
  0xd3   :  { %3136 = vset.pattern.permute.xlu0 %v3389_v22 }
  0xd4   :  { %538 = vperm.xlu1 %3134, %v3540_v3   ;;  %229 = vrot.lane.b32.xlu0 %v224_v20, %s3384_s14 }
  0xd6   :  { %v301_v25 = vpop.permute.xlu1 %300 }
  0xd7   :  { %v304_v27 = vmul.f32 %v301_v25, %v3591_v28 }
  0xd8   :  { %227 = vrot.lane.b32.xlu1 %v223_v23, %s3384_s14 }
  0xd9   :  { %309 = vrot.lane.b32.xlu0 %v304_v27, %s3385_s0  ;;  %3135 = vset.pattern.permute.xlu1 %v3389_v22  ;;  %v53_v27 = vmul.f32 %v3665_v36, %v3585_v24  ;;  %v3402_v36 = vmov 70  }
  0xdb   :  { %v377_v31 = vpop.permute.xlu1 %376 }
  0xdc   :  { %307 = vrot.lane.b32.xlu1 %v303_v29, %s3385_s0  ;;  %v383_v32 = vmul.f32 %v377_v31, %v3585_v24  ;;  %v3401_v31 = vmov 50  }
  0xdd   :  { %389 = vrot.lane.b32.xlu0 %v384_v30, %s3386_s15 }
  0xe0   :  { %387 = vrot.lane.b32.xlu1 %v383_v32, %s3386_s15  ;;  %v36_v33 = vpop.permute.xlu1 %35 }
  0xe1   :  { %664 = vperm.xlu0 %3136, %v3540_v3   ;;  %v43_v53 = vmul.f32 %v36_v33, %v3585_v24 }
  0xe4   :  { %660 = vperm.xlu1 %3135, %v3533_v0   ;;  %v41_v34 = vpop.permute.xlu1 %40 }
  0xe5   :  { %3137 = vset.pattern.permute.xlu0 %v3390_v35  ;;  %v44_v57 = vmul.f32 %v41_v34, %v3591_v28 }
  0xe6   :  { %680 = vperm.xlu0 %3137, %v3533_v0  }
  0xe8   :  { %3138 = vset.pattern.permute.xlu1 %v3390_v35 }
  0xe9   :  { %684 = vperm.xlu1 %3138, %v3540_v3   ;;  %v3668_v37 = vpop.permute.xlu1 %50 }
  0xea   :  { %3140 = vset.pattern.permute.xlu0 %v3391_v38  ;;  %v54_v16 = vmul.f32 %v3668_v37, %v3591_v28 }
  0xeb   :  { %704 = vperm.xlu0 %3140, %v3540_v3  }
  0xed   :  { %3139 = vset.pattern.permute.xlu1 %v3391_v38 }
  0xee   :  { %700 = vperm.xlu1 %3139, %v3533_v0   ;;  %v397_v40 = vpop.permute.xlu1 %396 }
  0xef   :  { %3142 = vset.pattern.permute.xlu0 %v3392_v41 }
  0xf0   :  { %760 = vperm.xlu0 %3142, %v3533_v0  }
  0xf2   :  { %3141 = vset.pattern.permute.xlu1 %v3393_v42 }
  0xf3   :  { %740 = vperm.xlu1 %3141, %v3533_v0   ;;  %v3674_v43 = vpop.permute.xlu1 %60 }
  0xf4   :  { %3145 = vset.pattern.permute.xlu0 %v3394_v45 }
  0xf5   :  { %784 = vperm.xlu0 %3145, %v3540_v3  }
  0xf6   :  { %v88_v51 = vpop.permute.xlu0 %87 }
  0xf7   :  { %744 = vperm.xlu1 %3141, %v3540_v3   ;;  %v93_v54 = vadd.f32 %v88_v51, %v43_v53 }
  0xf8   :  { %v3680_v46 = vpop.permute.xlu1 %442 }
  0xf9   :  { %3147 = vset.pattern.permute.xlu0 %v3395_v47 }
  0xfa   :  { %840 = vperm.xlu0 %3147, %v3533_v0  }
  0xfb   :  { %3143 = vset.pattern.permute.xlu1 %v3392_v41 }
  0xfc   :  { %v90_v49 = vpop.permute.xlu1 %89  ;;  %764 = vperm.xlu1 %3143, %v3540_v3  }
  0xfd   :  { %v94_v60 = vadd.f32 %v90_v49, %v44_v57 }
  0xfe   :  { %3150 = vset.pattern.permute.xlu0 %v3396_v50 }
  0xff   :  { %v248_v55 = vpop.permute.xlu0 %247 }
 0x100   :  { %3144 = vset.pattern.permute.xlu1 %v3394_v45  ;;  %v168_v52 = vpop.permute.xlu1 %167  ;;  %v3403_v45 = vmov 51  }
 0x101   :  { %780 = vperm.xlu1 %3144, %v3533_v0   ;;  %v173_v58 = vadd.f32 %v168_v52, %v93_v54  ;;  %v3405_v54 = vmov 52  }
 0x103   :  { %v253_v62 = vadd.f32 %v248_v55, %v173_v58  ;;  %v63_v55 = vmul.f32 %v3676_v44, %v3585_v24 }
 0x104   :  { %v170_v56 = vpop.permute.xlu1 %169  ;;  %v328_v1 = vpop.permute.xlu0 %327 }
 0x105   :  { %3146 = vset.pattern.permute.xlu1 %v3397_v59  ;;  %v174_v63 = vadd.f32 %v170_v56, %v94_v60  ;;  %v333_v5 = vadd.f32 %v328_v1, %v253_v62  ;;  %v3406_v60 = vmov 72  }
 0x106   :  { %820 = vperm.xlu1 %3146, %v3533_v0  }
 0x107   :  { %v403_v9 = vadd.f32 %v397_v40, %v333_v5 }
 0x108   :  { %v250_v61 = vpop.permute.xlu1 %249 }
 0x109   :  { %v254_v2 = vadd.f32 %v250_v61, %v174_v63  ;;  %v3697_v12 = vmax.f32 %v403_v9, 0.0  ;;  %v108_v19 = vpop.permute.xlu0 %107  ;;  %v3407_v63 = vmov 90  }
 0x10a   :  { %824 = vperm.xlu1 %3146, %v3540_v3   ;;  %v113_v29 = vadd.f32 %v108_v19, %v53_v27  ;;  %v3410_v19 = vmov 55  }
 0x10c   :  { %v330_v4 = vpop.permute.xlu1 %329 }
 0x10d   :  { %v334_v6 = vadd.f32 %v330_v4, %v254_v2  ;;  %v64_v2 = vmul.f32 %v3674_v43, %v3591_v28 }
 0x10e   :  { %3148 = vset.pattern.permute.xlu1 %v3395_v47 }
 0x10f   :  { %v404_v7 = vadd.f32 %v401_v39, %v334_v6  ;;  %844 = vperm.xlu1 %3148, %v3540_v3   ;;  %v3408_v6 = vmov 53  }
 0x110   :  { %v110_v8 = vpop.permute.xlu1 %109 }
 0x111   :  { %v3692_v10 = vmax.f32 %v404_v7, 0.0  ;;  %v114_v17 = vadd.f32 %v110_v8, %v54_v16 }
 0x113   :  { %3149 = vset.pattern.permute.xlu1 %v3396_v50  ;;  %411 = vrot.lane.b32.xlu0 %v3692_v10, %s3383_s13 }
 0x114   :  { %860 = vperm.xlu1 %3149, %v3533_v0   ;;  %v188_v11 = vpop.permute.xlu1 %187 }
 0x115   :  { %v193_v32 = vadd.f32 %v188_v11, %v113_v29  ;;  %v3412_v29 = vmov 91  }
 0x117   :  { %425 = vrot.lane.b32.xlu0 %v3697_v12, %s3385_s0  ;;  %v268_v23 = vpop.permute.xlu0 %267 }
 0x118   :  { %409 = vrot.lane.b32.xlu1 %v3697_v12, %s3383_s13  ;;  %v190_v13 = vpop.permute.xlu1 %189  ;;  %v273_v35 = vadd.f32 %v268_v23, %v193_v32  ;;  %v3413_v32 = vmov 56  }
 0x119   :  { %3151 = vset.pattern.permute.xlu1 %v3398_v14  ;;  %v194_v20 = vadd.f32 %v190_v13, %v114_v17  ;;  %v3409_v13 = vmov 73  }
 0x11b   :  { %433 = vrot.lane.b32.xlu0 %v3697_v12, %s3386_s15 }
 0x11c   :  { %417 = vrot.lane.b32.xlu1 %v3697_v12, %s3384_s14  ;;  %v270_v15 = vpop.permute.xlu1 %269  ;;  %v348_v33 = vpop.permute.xlu0 %347 }
 0x11d   :  { %v274_v22 = vadd.f32 %v270_v15, %v194_v20  ;;  %v353_v38 = vadd.f32 %v348_v33, %v273_v35 }
 0x11f   :  { %864 = vperm.xlu0 %3150, %v3540_v3   ;;  %v449_v41 = vadd.f32 %v3680_v46, %v353_v38  ;;  %v3404_v46 = vmov 71  }
 0x120   :  { %419 = vrot.lane.b32.xlu1 %v3692_v10, %s3384_s14  ;;  %v350_v21 = vpop.permute.xlu1 %349  ;;  %v128_v39 = vpop.permute.xlu0 %127 }
 0x121   :  { %v354_v25 = vadd.f32 %v350_v21, %v274_v22  ;;  %v133_v56 = vadd.f32 %v128_v39, %v63_v55 }
 0x123   :  { %3152 = vset.pattern.permute.xlu0 %v3399_v18  ;;  %v450_v30 = vadd.f32 %v3682_v48, %v354_v25  ;;  %v3737_v48 = vmax.f32 %v449_v41, 0.0  ;;  %v3415_v41 = vmov 57  }
 0x124   :  { %920 = vperm.xlu0 %3152, %v3533_v0   ;;  %427 = vrot.lane.b32.xlu1 %v3692_v10, %s3385_s0 }
 0x125   :  { %v3723_v34 = vmax.f32 %v450_v30, 0.0  ;;  %v130_v37 = vpop.permute.xlu1 %129 }
 0x126   :  { %v134_v7 = vadd.f32 %v130_v37, %v64_v2  ;;  %v3414_v37 = vmov 76  }
 0x128   :  { %3155 = vset.pattern.permute.xlu0 %v3400_v26  ;;  %900 = vperm.xlu1 %3151, %v3533_v0  }
 0x129   :  { %944 = vperm.xlu0 %3155, %v3540_v3  }
 0x12c   :  { %435 = vrot.lane.b32.xlu1 %v3692_v10, %s3386_s15 }
 0x12d   :  { %3156 = vset.pattern.permute.xlu0 %v3401_v31 }
 0x12e   :  { %1028 = vperm.xlu0 %3156, %v3533_v0  }
 0x130   :  { %904 = vperm.xlu1 %3151, %v3540_v3  }
 0x131   :  { %v3733_v42 = vpop.permute.xlu0 %66 }
 0x132   :  { %465 = vrot.lane.b32.xlu0 %v3723_v34, %s3384_s14 }
 0x133   :  { %3159 = vset.pattern.permute.xlu0 %v3402_v36 }
 0x134   :  { %3153 = vset.pattern.permute.xlu1 %v3399_v18 }
 0x135   :  { %924 = vperm.xlu1 %3153, %v3540_v3  }
 0x136   :  { %v3729_v40 = vpop.permute.xlu1 %70  ;;  %1052 = vperm.xlu0 %3159, %v3540_v3   ;;  %v493_v49 = vpop.permute.xlu0 %492 }
 0x139   :  { %3154 = vset.pattern.permute.xlu1 %v3400_v26  ;;  %v3411_v26 = vmov 75  }
 0x13a   :  { %3161 = vset.pattern.permute.xlu0 %v3403_v45  ;;  %940 = vperm.xlu1 %3154, %v3533_v0   ;;  %v288_v52 = vpop.permute.xlu0 %287 }
 0x13b   :  { %v489_v47 = vpop.permute.xlu1 %488  ;;  %1108 = vperm.xlu0 %3161, %v3533_v0  }
 0x13e   :  { %455 = vrot.lane.b32.xlu1 %v3737_v48, %s3383_s13  ;;  %v368_v57 = vpop.permute.xlu0 %367 }
 0x13f   :  { %v208_v50 = vpop.permute.xlu1 %207  ;;  %473 = vrot.lane.b32.xlu0 %v3723_v34, %s3385_s0  ;;  %3157 = vset.pattern.permute.xlu1 %v3401_v31 }
 0x140   :  { %3164 = vset.pattern.permute.xlu0 %v3404_v46  ;;  %v213_v59 = vadd.f32 %v208_v50, %v133_v56 }
 0x142   :  { %457 = vrot.lane.b32.xlu1 %v3723_v34, %s3383_s13  ;;  %v293_v44 = vadd.f32 %v288_v52, %v213_v59  ;;  %v3759_v62 = vpop.permute.xlu0 %147 }
 0x143   :  { %v210_v51 = vpop.permute.xlu1 %209  ;;  %1132 = vperm.xlu0 %3164, %v3540_v3  }
 0x144   :  { %v373_v4 = vadd.f32 %v368_v57, %v293_v44  ;;  %v214_v11 = vadd.f32 %v210_v51, %v134_v7 }
 0x146   :  { %1032 = vperm.xlu1 %3157, %v3540_v3   ;;  %v495_v9 = vadd.f32 %v489_v47, %v373_v4  ;;  %v73_v47 = vmul.f32 %v3733_v42, %v3585_v24  ;;  %v3420_v4 = vmov 93  }
 0x147   :  { %v290_v53 = vpop.permute.xlu1 %289  ;;  %3166 = vset.pattern.permute.xlu0 %v3405_v54 }
 0x148   :  { %1188 = vperm.xlu0 %3166, %v3533_v0   ;;  %v294_v14 = vadd.f32 %v290_v53, %v214_v11  ;;  %v3780_v16 = vmax.f32 %v495_v9, 0.0  ;;  %v153_v51 = vadd.f32 %v3759_v62, %v73_v47  ;;  %v74_v53 = vmul.f32 %v3729_v40, %v3591_v28 }
 0x14a   :  { %463 = vrot.lane.b32.xlu1 %v3737_v48, %s3384_s14 }
 0x14b   :  { %v370_v58 = vpop.permute.xlu1 %369  ;;  %3158 = vset.pattern.permute.xlu1 %v3402_v36 }
 0x14c   :  { %481 = vrot.lane.b32.xlu0 %v3723_v34, %s3386_s15  ;;  %v374_v17 = vadd.f32 %v370_v58, %v294_v14  ;;  %v5461_v58 = vmov 58  }
 0x14d   :  { %3169 = vset.pattern.permute.xlu0 %v3406_v60 }
 0x14e   :  { %1048 = vperm.xlu1 %3158, %v3533_v0   ;;  %v3767_v5 = vpop.permute.xlu0 %534  ;;  %v496_v20 = vadd.f32 %v493_v49, %v374_v17  ;;  %v3416_v49 = vmov 92   ;;  %v3915_v17 = vld [vmem:[%s5443_s4] sm:$0xff] }
 0x14f   :  { %v3757_v61 = vpop.permute.xlu1 %149 }
 0x150   :  { %1212 = vperm.xlu0 %3169, %v3540_v3   ;;  %v3793_v23 = vmax.f32 %v496_v20, 0.0  ;;  %v154_v55 = vadd.f32 %v3757_v61, %v74_v53 }
 0x152   :  { %3160 = vset.pattern.permute.xlu1 %v3407_v63  ;;  %v3775_v43 = vpop.permute.xlu0 %229 }
 0x153   :  { %v3762_v1 = vpop.permute.xlu1 %538  ;;  %1068 = vperm.xlu1 %3160, %v3533_v0   ;;  %v234_v28 = vadd.f32 %v3775_v43, %v154_v55  ;;  %v5450_v55 = vmov 82  }
 0x154   :  { %3171 = vset.pattern.permute.xlu0 %v3408_v6 }
 0x155   :  { %1268 = vperm.xlu0 %3171, %v3533_v0  }
 0x156   :  { %v3786_v21 = vpop.permute.xlu0 %309 }
 0x157   :  { %v3771_v8 = vpop.permute.xlu1 %227  ;;  %1072 = vperm.xlu1 %3160, %v3540_v3   ;;  %v314_v61 = vadd.f32 %v3786_v21, %v234_v28  ;;  %v5452_v21 = vmov 81   ;;  %v5448_v28 = vmov 63  }
 0x158   :  { %v233_v24 = vadd.f32 %v3771_v8, %v153_v51 }
 0x159   :  { %3174 = vset.pattern.permute.xlu0 %v3409_v13 }
 0x15a   :  { %1292 = vperm.xlu0 %3174, %v3540_v3   ;;  %v3796_v25 = vpop.permute.xlu0 %389 }
 0x15b   :  { %v3778_v15 = vpop.permute.xlu1 %307  ;;  %3162 = vset.pattern.permute.xlu1 %v3403_v45  ;;  %v394_v63 = vadd.f32 %v3796_v25, %v314_v61  ;;  %v3425_v25 = vmov 95  }
 0x15c   :  { %1112 = vperm.xlu1 %3162, %v3540_v3  }
 0x15d   :  { %v542_v7 = vadd.f32 %v3762_v1, %v394_v63  ;;  %v5456_v1 = vmov 80   ;;  %v3429_v63 = vmov 96  }
 0x15e   :  { %501 = vrot.lane.b32.xlu0 %v3780_v16, %s3383_s13 }
 0x15f   :  { %v388_v18 = vpop.permute.xlu1 %387  ;;  %3176 = vset.pattern.permute.xlu0 %v3410_v19  ;;  %v3891_v11 = vmax.f32 %v542_v7, 0.0 }
 0x160   :  { %471 = vrot.lane.b32.xlu1 %v3737_v48, %s3385_s0  ;;  %v3805_v30 = vpop.permute.xlu0 %664 }
 0x161   :  { %3163 = vset.pattern.permute.xlu1 %v3404_v46  ;;  %v3417_v46 = vmov 77  }
 0x162   :  { %1396 = vperm.xlu0 %3176, %v3533_v0  }
 0x163   :  { %v3791_v22 = vpop.permute.xlu1 %660 }
 0x164   :  { %1128 = vperm.xlu1 %3163, %v3533_v0  }
 0x165   :  { %v3812_v33 = vpop.permute.xlu0 %680 }
 0x166   :  { %511 = vrot.lane.b32.xlu0 %v3793_v23, %s3384_s14 }
 0x167   :  { %3179 = vset.pattern.permute.xlu0 %v3411_v26 }
 0x168   :  { %v3801_v27 = vpop.permute.xlu1 %684  ;;  %3165 = vset.pattern.permute.xlu1 %v3412_v29 }
 0x169   :  { %1148 = vperm.xlu1 %3165, %v3533_v0  }
 0x16a   :  { %1420 = vperm.xlu0 %3179, %v3540_v3   ;;  %v3821_v36 = vpop.permute.xlu0 %704 }
 0x16d   :  { %v3807_v31 = vpop.permute.xlu1 %700  ;;  %1152 = vperm.xlu1 %3165, %v3540_v3  }
 0x16e   :  { %3181 = vset.pattern.permute.xlu0 %v3413_v32 }
 0x16f   :  { %1476 = vperm.xlu0 %3181, %v3533_v0   ;;  %v3833_v45 = vpop.permute.xlu0 %760 }
 0x171   :  { %3167 = vset.pattern.permute.xlu1 %v3405_v54  ;;  %v313_v54 = vadd.f32 %v3778_v15, %v233_v24  ;;  %v5455_v15 = vmov 61  }
 0x172   :  { %v3815_v35 = vpop.permute.xlu1 %740  ;;  %1192 = vperm.xlu1 %3167, %v3540_v3  }
 0x173   :  { %519 = vrot.lane.b32.xlu0 %v3793_v23, %s3385_s0  ;;  %v393_v56 = vadd.f32 %v388_v18, %v313_v54 }
 0x174   :  { %3184 = vset.pattern.permute.xlu0 %v3414_v37  ;;  %v3845_v52 = vpop.permute.xlu0 %784 }
 0x175   :  { %v541_v40 = vadd.f32 %v3767_v5, %v393_v56 }
 0x176   :  { %v3823_v38 = vpop.permute.xlu1 %744  ;;  %479 = vrot.lane.b32.xlu1 %v3737_v48, %s3386_s15 }
 0x177   :  { %1500 = vperm.xlu0 %3184, %v3540_v3   ;;  %3168 = vset.pattern.permute.xlu1 %v3406_v60  ;;  %v5459_v60 = vmov 78   ;;  %v3876_v2 = vmax.f32 %v541_v40, 0.0 }
 0x179   :  { %v3857_v57 = vpop.permute.xlu0 %840 }
 0x17a   :  { %1208 = vperm.xlu1 %3168, %v3533_v0  }
 0x17b   :  { %v3830_v39 = vpop.permute.xlu1 %764  ;;  %3186 = vset.pattern.permute.xlu0 %v3415_v41 }
 0x17c   :  { %1556 = vperm.xlu0 %3186, %v3533_v0  }
 0x17e   :  { %3170 = vset.pattern.permute.xlu1 %v3416_v49  ;;  %v5451_v49 = vmov 62  }
 0x17f   :  { %1228 = vperm.xlu1 %3170, %v3533_v0  }
 0x180   :  { %v3839_v50 = vpop.permute.xlu1 %780  ;;  %527 = vrot.lane.b32.xlu0 %v3793_v23, %s3386_s15 }
 0x181   :  { %3189 = vset.pattern.permute.xlu0 %v3417_v46 }
 0x183   :  { %1232 = vperm.xlu1 %3170, %v3540_v3  }
 0x184   :  { %1580 = vperm.xlu0 %3189, %v3540_v3  }
 0x185   :  { %v3850_v42 = vpop.permute.xlu1 %820  ;;  %v3870_v44 = vpop.permute.xlu0 %411 }
 0x187   :  { %3172 = vset.pattern.permute.xlu1 %v3408_v6  ;;  %v5457_v6 = vmov 60  }
 0x188   :  { %3191 = vset.pattern.permute.xlu0 %v5461_v58  ;;  %1272 = vperm.xlu1 %3172, %v3540_v3   ;;  %v416_v58 = vmax.f32 %v3692_v10, %v3870_v44 }
 0x189   :  { %v3861_v59 = vpop.permute.xlu1 %824  ;;  %1636 = vperm.xlu0 %3191, %v3533_v0   ;;  %v3885_v8 = vpop.permute.xlu0 %425 }
 0x18c   :  { %3173 = vset.pattern.permute.xlu1 %v3409_v13 }
 0x18d   :  { %3194 = vset.pattern.permute.xlu0 %v5459_v60  ;;  %1288 = vperm.xlu1 %3173, %v3533_v0   ;;  %v3893_v13 = vpop.permute.xlu0 %433 }
 0x18e   :  { %v3872_v62 = vpop.permute.xlu1 %844  ;;  %1660 = vperm.xlu0 %3194, %v3540_v3  }
 0x191   :  { %3175 = vset.pattern.permute.xlu1 %v3420_v4  ;;  %v5449_v4 = vmov 83  }
 0x192   :  { %547 = vrot.lane.b32.xlu0 %v3876_v2, %s3383_s13  ;;  %1308 = vperm.xlu1 %3175, %v3533_v0  }
 0x193   :  { %v3881_v5 = vpop.permute.xlu1 %860  ;;  %3196 = vset.pattern.permute.xlu0 %v5457_v6  ;;  %v3435_v6 = vmov 97  }
 0x196   :  { %1764 = vperm.xlu0 %3196, %v3533_v0   ;;  %1312 = vperm.xlu1 %3175, %v3540_v3  }
 0x197   :  { %v3889_v9 = vpop.permute.xlu1 %409 }
 0x19a   :  { %557 = vrot.lane.b32.xlu0 %v3891_v11, %s3384_s14  ;;  %503 = vrot.lane.b32.xlu1 %v3793_v23, %s3383_s13 }
 0x19b   :  { %v3899_v14 = vpop.permute.xlu1 %417  ;;  %3199 = vset.pattern.permute.xlu0 %v5456_v1  ;;  %3177 = vset.pattern.permute.xlu1 %v3410_v19 }
 0x19e   :  { %1788 = vperm.xlu0 %3199, %v3540_v3   ;;  %1400 = vperm.xlu1 %3177, %v3540_v3   ;;  %v3905_v0 = vpop.permute.xlu0 %864 }
 0x19f   :  { %v3907_v43 = vpop.permute.xlu1 %419 }
 0x1a2   :  { %3201 = vset.pattern.permute.xlu0 %v5455_v15  ;;  %509 = vrot.lane.b32.xlu1 %v3780_v16, %s3384_s14  ;;  %v5460_v15 = vmov 26  }
 0x1a3   :  { %1844 = vperm.xlu0 %3201, %v3915_v17   ;;  %v3918_v18 = vpop.permute.xlu1 %427  ;;  %3178 = vset.pattern.permute.xlu1 %v3411_v26  ;;  %v3921_v3 = vpop.permute.xlu0 %920  ;;  %v3934_v26 = vld [vmem:[%s5443_s4 + $0x8] sm:$0xf] }
 0x1a6   :  { %1416 = vperm.xlu1 %3178, %v3915_v17  }
 0x1a7   :  { %565 = vrot.lane.b32.xlu0 %v3891_v11, %s3385_s0  ;;  %v3926_v19 = vpop.permute.xlu1 %900 }
 0x1a8   :  { %v3928_v20 = vpop.permute.xlu0 %944  ;;  %3204 = vset.pattern.permute.xlu0 %v5452_v21 }
 0x1aa   :  { %3180 = vset.pattern.permute.xlu1 %v3425_v25 }
 0x1ab   :  { %1868 = vperm.xlu0 %3204, %v3934_v26   ;;  %1436 = vperm.xlu1 %3180, %v3915_v17   ;;  %v3938_v29 = vpop.permute.xlu1 %435 }
 0x1ad   :  { %v3940_v47 = vpop.permute.xlu0 %1028 }
 0x1af   :  { %3206 = vset.pattern.permute.xlu0 %v5451_v49  ;;  %1440 = vperm.xlu1 %3180, %v3934_v26   ;;  %v3944_v51 = vpop.permute.xlu1 %904 }
 0x1b0   :  { %1924 = vperm.xlu0 %3206, %v3915_v17  }
 0x1b1   :  { %v3947_v24 = vpop.permute.xlu0 %465 }
 0x1b3   :  { %3182 = vset.pattern.permute.xlu1 %v3413_v32 }
 0x1b4   :  { %573 = vrot.lane.b32.xlu0 %v3891_v11, %s3386_s15  ;;  %1480 = vperm.xlu1 %3182, %v3934_v26   ;;  %v3953_v53 = vpop.permute.xlu1 %924 }
 0x1b5   :  { %v3955_v54 = vpop.permute.xlu0 %1052  ;;  %3209 = vset.pattern.permute.xlu0 %v5450_v55  ;;  %v5454_v55 = vmov 25  }
 0x1b8   :  { %1948 = vperm.xlu0 %3209, %v3934_v26   ;;  %517 = vrot.lane.b32.xlu1 %v3780_v16, %s3385_s0 }
 0x1b9   :  { %v3961_v56 = vpop.permute.xlu1 %940  ;;  %3183 = vset.pattern.permute.xlu1 %v3414_v37 }
 0x1ba   :  { %v3964_v32 = vpop.permute.xlu0 %1108 }
 0x1bc   :  { %3211 = vset.pattern.permute.xlu0 %v5448_v28  ;;  %1496 = vperm.xlu1 %3183, %v3915_v17   ;;  %v5453_v28 = vmov 44  }
 0x1bd   :  { %2004 = vperm.xlu0 %3211, %v3915_v17   ;;  %v3969_v40 = vpop.permute.xlu1 %455 }
 0x1be   :  { %v3971_v61 = vpop.permute.xlu0 %473 }
 0x1c0   :  { %3185 = vset.pattern.permute.xlu1 %v3429_v63 }
 0x1c1   :  { %3214 = vset.pattern.permute.xlu0 %v5449_v4  ;;  %1516 = vperm.xlu1 %3185, %v3915_v17   ;;  %v3975_v37 = vpop.permute.xlu1 %457 }
 0x1c2   :  { %2028 = vperm.xlu0 %3214, %v3934_v26   ;;  %v3978_v7 = vpop.permute.xlu0 %1132 }
 0x1c3   :  { %5492 = vst [vmem:[#allocation10_spill] sm:$0xff] %v3978_v7  ;;  %v5497_v7 = vmov 58  }
 0x1c5   :  { %1520 = vperm.xlu1 %3185, %v3934_v26   ;;  %v3981_v25 = vpop.permute.xlu1 %1032 }
 0x1c6   :  { %3216 = vset.pattern.permute.xlu0 %v5453_v28  ;;  %v5458_v28 = vmov 84  }
 0x1c7   :  { %610 = vperm.xlu0 %3216, %v3915_v17   ;;  %v3985_v63 = vpop.permute.xlu0 %1188 }
 0x1c8   :  { %5493 = vst [vmem:[#allocation11_spill] sm:$0xff] %v3985_v63  ;;  %v5466_v63 = vmov 49  }
 0x1c9   :  { %3187 = vset.pattern.permute.xlu1 %v3415_v41  ;;  %v3988_v4 = vpop.permute.xlu1 %463 }
 0x1ca   :  { %1560 = vperm.xlu1 %3187, %v3934_v26  }
 0x1cb   :  { %3219 = vset.pattern.permute.xlu0 %v5454_v55  ;;  %v3992_v49 = vpop.permute.xlu0 %481 }
 0x1cc   :  { %644 = vperm.xlu0 %3219, %v3934_v26  }
 0x1cd   :  { %v3995_v21 = vpop.permute.xlu1 %1048 }
 0x1ce   :  { %525 = vrot.lane.b32.xlu1 %v3780_v16, %s3386_s15 }
 0x1cf   :  { %3188 = vset.pattern.permute.xlu1 %v3417_v46  ;;  %v4002_v41 = vpop.permute.xlu0 %1212 }
 0x1d0   :  { %3221 = vset.pattern.permute.xlu0 %v5458_v28  ;;  %v5462_v28 = vmov 28  }
 0x1d1   :  { %630 = vperm.xlu0 %3221, %v3915_v17  }
 0x1d2   :  { %1576 = vperm.xlu1 %3188, %v3915_v17   ;;  %v4005_v55 = vpop.permute.xlu1 %1068 }
 0x1d4   :  { %v4008_v1 = vpop.permute.xlu0 %1268 }
 0x1d5   :  { %3224 = vset.pattern.permute.xlu0 %v5460_v15 }
 0x1d6   :  { %724 = vperm.xlu0 %3224, %v3934_v26   ;;  %3190 = vset.pattern.permute.xlu1 %v3435_v6  ;;  %v4011_v46 = vpop.permute.xlu1 %1072  ;;  %v424_v6 = vmax.f32 %v416_v58, %v3907_v43  ;;  %v5465_v43 = vmov 69  }
 0x1d7   :  { %5494 = vst [vmem:[#allocation12_spill] sm:$0xff] %v4011_v46  ;;  %1596 = vperm.xlu1 %3190, %v3915_v17  }
 0x1d9   :  { %v4019_v15 = vpop.permute.xlu0 %1292 }
 0x1da   :  { %3226 = vset.pattern.permute.xlu0 %v5462_v28  ;;  %5496 = vst [vmem:[#allocation14_spill] sm:$0xff] %v4019_v15  ;;  %v415_v28 = vmax.f32 %v3697_v12, %v3889_v9  ;;  %v432_v15 = vmax.f32 %v424_v6, %v3918_v18  ;;  %v3439_v18 = vmov 98  }
 0x1db   :  { %880 = vperm.xlu0 %3226, %v3915_v17   ;;  %1600 = vperm.xlu1 %3190, %v3934_v26   ;;  %v4017_v60 = vpop.permute.xlu1 %1112 }
 0x1dc   :  { %5495 = vst [vmem:[#allocation13_spill] sm:$0xff] %v4017_v60  ;;  %v423_v10 = vmax.f32 %v415_v28, %v3899_v14  ;;  %v4037_v58 = vmax.f32 %v432_v15, %v3938_v29  ;;  %v5464_v29 = vmov 89  }
 0x1dd   :  { %v4033_v60 = vpop.permute.xlu0 %501 }
 0x1de   :  { %v431_v12 = vmax.f32 %v423_v10, %v3885_v8  ;;  %v688_v9 = vmul.f32 %v3801_v27, %v4037_v58 }
 0x1df   :  { %3229 = vset.pattern.permute.xlu0 %v5466_v63  ;;  %3192 = vset.pattern.permute.xlu1 %v5497_v7  ;;  %v4026_v46 = vpop.permute.xlu1 %471  ;;  %v5498_v7 = vmov 78  }
 0x1e0   :  { %976 = vperm.xlu0 %3229, %v3934_v26   ;;  %1640 = vperm.xlu1 %3192, %v3934_v26   ;;  %v4056_v28 = vmax.f32 %v431_v12, %v3893_v13  ;;  %v5463_v13 = vmov 31  }
 0x1e1   :  { %v4048_v14 = vpop.permute.xlu0 %1396 }
 0x1e2   :  { %5499 = vst [vmem:[#allocation15_spill] sm:$0xff] %v4048_v14  ;;  %v707_v6 = vmul.f32 %v3807_v31, %v4056_v28  ;;  %v747_v12 = vmul.f32 %v3815_v35, %v4056_v28  ;;  %v5501_v35 = vmov 80  }
 0x1e3   :  { %v4039_v44 = vpop.permute.xlu1 %1128 }
 0x1e4   :  { %3230 = vset.pattern.permute.xlu0 %v5465_v43  ;;  %3193 = vset.pattern.permute.xlu1 %v5498_v7  ;;  %v5500_v7 = vmov 60   ;;  %v5467_v43 = vmov 32  }
 0x1e5   :  { %984 = vperm.xlu0 %3230, %v3915_v17   ;;  %1656 = vperm.xlu1 %3193, %v3915_v17   ;;  %v4061_v27 = vpop.permute.xlu0 %511 }
 0x1e8   :  { %v4050_v15 = vpop.permute.xlu1 %1148 }
 0x1e9   :  { %3195 = vset.pattern.permute.xlu1 %v3439_v18  ;;  %693 = vrot.lane.b32.xlu0 %v688_v9, %s3383_s13  ;;  %v4075_v9 = vpop.permute.xlu0 %1420  ;;  %v767_v18 = vmul.f32 %v3833_v45, %v4056_v28  ;;  %v788_v45 = vmul.f32 %v3845_v52, %v4037_v58 }
 0x1ea   :  { %1676 = vperm.xlu1 %3195, %v3915_v17   ;;  %3233 = vset.pattern.permute.xlu0 %v5464_v29 }
 0x1ec   :  { %v4058_v8 = vpop.permute.xlu1 %1152 }
 0x1ed   :  { %1000 = vperm.xlu0 %3233, %v3934_v26  }
 0x1ee   :  { %1680 = vperm.xlu1 %3195, %v3934_v26  }
 0x1f1   :  { %711 = vrot.lane.b32.xlu0 %v707_v6, %s3383_s13  ;;  %v4067_v10 = vpop.permute.xlu1 %1192 }
 0x1f2   :  { %549 = vrot.lane.b32.xlu1 %v3891_v11, %s3383_s13  ;;  %3235 = vset.pattern.permute.xlu0 %v5463_v13  ;;  %v4086_v13 = vpop.permute.xlu0 %1476 }
 0x1f3   :  { %3197 = vset.pattern.permute.xlu1 %v5500_v7 }
 0x1f5   :  { %751 = vrot.lane.b32.xlu0 %v747_v12, %s3384_s14  ;;  %v4078_v31 = vpop.permute.xlu1 %479 }
 0x1f6   :  { %1768 = vperm.xlu1 %3197, %v3934_v26   ;;  %v4097_v12 = vpop.permute.xlu0 %519 }
 0x1f9   :  { %771 = vrot.lane.b32.xlu0 %v767_v18, %s3384_s14  ;;  %v4084_v6 = vpop.permute.xlu1 %1208  ;;  %v3442_v18 = vmov 100  }
 0x1fa   :  { %555 = vrot.lane.b32.xlu1 %v3876_v2, %s3384_s14  ;;  %v4107_v63 = vpop.permute.xlu0 %1500 }
 0x1fb   :  { %3198 = vset.pattern.permute.xlu1 %v5501_v35  ;;  %v828_v35 = vmul.f32 %v3861_v59, %v4037_v58  ;;  %5503 = vst [vmem:[#allocation17_spill] sm:$0xff] %v4107_v63  ;;  %v927_v63 = vmul.f32 %v3921_v3, %v4056_v28  ;;  %v948_v3 = vmul.f32 %v3928_v20, %v4037_v58 }
 0x1fd   :  { %1088 = vperm.xlu0 %3235, %v3915_v17  }
 0x1fe   :  { %1784 = vperm.xlu1 %3198, %v3915_v17   ;;  %v4093_v7 = vpop.permute.xlu1 %1228 }
 0x201   :  { %793 = vrot.lane.b32.xlu0 %v788_v45, %s3384_s14  ;;  %v848_v45 = vmul.f32 %v3872_v62, %v4037_v58 }
 0x202   :  { %3200 = vset.pattern.permute.xlu1 %v3442_v18  ;;  %v4100_v29 = vpop.permute.xlu1 %1232  ;;  %3238 = vset.pattern.permute.xlu0 %v5467_v43  ;;  %v5505_v18 = vmov 61   ;;  %v4116_v43 = vpop.permute.xlu0 %1556 }
 0x203   :  { %5502 = vst [vmem:[#allocation16_spill] sm:$0xff] %v4100_v29  ;;  %1804 = vperm.xlu1 %3200, %v3915_v17   ;;  %5506 = vst [vmem:[#allocation19_spill] sm:$0xff] %v4116_v43  ;;  %v5468_v43 = vmov 33   ;;  %v5510_v29 = vmov 62  }
 0x205   :  { %833 = vrot.lane.b32.xlu0 %v828_v35, %s3385_s0  ;;  %v907_v35 = vmul.f32 %v3926_v19, %v4056_v28 }
 0x207   :  { %1808 = vperm.xlu1 %3200, %v3934_v26   ;;  %v4110_v52 = vpop.permute.xlu1 %1272 }
 0x208   :  { %5504 = vst [vmem:[#allocation18_spill] sm:$0xff] %v4110_v52  ;;  %v5472_v52 = vmov 54  }
 0x209   :  { %853 = vrot.lane.b32.xlu0 %v848_v45, %s3385_s0  ;;  %v5508_v45 = vmov 81  }
 0x20b   :  { %3202 = vset.pattern.permute.xlu1 %v5505_v18  ;;  %v4130_v18 = vpop.permute.xlu0 %527 }
 0x20c   :  { %1848 = vperm.xlu1 %3202, %v3934_v26   ;;  %v4119_v59 = vpop.permute.xlu1 %1288 }
 0x20d   :  { %1172 = vperm.xlu0 %3238, %v3934_v26  }
 0x20f   :  { %v4139_v14 = vpop.permute.xlu0 %1580 }
 0x210   :  { %563 = vrot.lane.b32.xlu1 %v3876_v2, %s3385_s0 }
 0x211   :  { %911 = vrot.lane.b32.xlu0 %v907_v35, %s3386_s15  ;;  %v4127_v62 = vpop.permute.xlu1 %1308  ;;  %3203 = vset.pattern.permute.xlu1 %v5508_v45  ;;  %v3445_v35 = vmov 101  }
 0x212   :  { %5507 = vst [vmem:[#allocation20_spill] sm:$0xff] %v4127_v62  ;;  %3239 = vset.pattern.permute.xlu0 %v5468_v43  ;;  %v462_v43 = vmax.f32 %v3723_v34, %v3975_v37 }
 0x213   :  { %v4149_v62 = vpop.permute.xlu0 %1636 }
 0x214   :  { %1864 = vperm.xlu1 %3203, %v3915_v17  }
 0x215   :  { %931 = vrot.lane.b32.xlu0 %v927_v63, %s3386_s15  ;;  %v4137_v19 = vpop.permute.xlu1 %1312 }
 0x217   :  { %v4162_v37 = vpop.permute.xlu0 %1660 }
 0x218   :  { %3205 = vset.pattern.permute.xlu1 %v3445_v35  ;;  %v470_v35 = vmax.f32 %v462_v43, %v3947_v24  ;;  %5511 = vst [vmem:[#allocation22_spill] sm:$0xff] %v4162_v37  ;;  %v461_v43 = vmax.f32 %v3737_v48, %v3969_v40  ;;  %v5469_v40 = vmov 94   ;;  %v5520_v37 = vmov 25  }
 0x219   :  { %1248 = vperm.xlu0 %3239, %v3915_v17   ;;  %1884 = vperm.xlu1 %3205, %v3915_v17   ;;  %v4143_v45 = vpop.permute.xlu1 %503 }
 0x21a   :  { %v478_v20 = vmax.f32 %v470_v35, %v3971_v61  ;;  %v5513_v61 = vmov 82  }
 0x21b   :  { %v4178_v35 = vpop.permute.xlu0 %547 }
 0x21d   :  { %953 = vrot.lane.b32.xlu0 %v948_v3, %s3386_s15  ;;  %1888 = vperm.xlu1 %3205, %v3934_v26   ;;  %v4153_v63 = vpop.permute.xlu1 %1400  ;;  %v4166_v3 = vmax.f32 %v478_v20, %v3992_v49 }
 0x21e   :  { %5509 = vst [vmem:[#allocation21_spill] sm:$0xff] %v4153_v63  ;;  %3242 = vset.pattern.permute.xlu0 %v5472_v52  ;;  %v5471_v63 = vmov 74  }
 0x21f   :  { %5512 = vst [vmem:[#allocation23_spill] sm:$0xff] %v4166_v3  ;;  %v1056_v49 = vmul.f32 %v3955_v54, %v4166_v3 }
 0x221   :  { %1344 = vperm.xlu0 %3242, %v3934_v26   ;;  %3207 = vset.pattern.permute.xlu1 %v5510_v29  ;;  %v4159_v34 = vpop.permute.xlu1 %509  ;;  %v469_v29 = vmax.f32 %v461_v43, %v3988_v4  ;;  %v4191_v4 = vpop.permute.xlu0 %1764  ;;  %v3449_v43 = vmov 102  }
 0x222   :  { %1928 = vperm.xlu1 %3207, %v3934_v26   ;;  %5514 = vst [vmem:[#allocation24_spill] sm:$0xff] %v4191_v4 }
 0x223   :  { %v477_v20 = vmax.f32 %v469_v29, %v4026_v46 }
 0x225   :  { %3243 = vset.pattern.permute.xlu0 %v5471_v63  ;;  %v4169_v24 = vpop.permute.xlu1 %1416  ;;  %v5517_v63 = vmov 83  }
 0x226   :  { %1352 = vperm.xlu0 %3243, %v3915_v17   ;;  %571 = vrot.lane.b32.xlu1 %v3876_v2, %s3386_s15 }
 0x227   :  { %3208 = vset.pattern.permute.xlu1 %v5513_v61  ;;  %v4189_v61 = vmax.f32 %v477_v20, %v4078_v31  ;;  %v5470_v31 = vmov 36  }
 0x229   :  { %v1075_v46 = vmul.f32 %v4005_v55, %v4189_v61  ;;  %v1115_v20 = vmul.f32 %v3964_v32, %v4189_v61  ;;  %v1135_v55 = vmul.f32 %v4039_v44, %v4189_v61  ;;  %v1156_v32 = vmul.f32 %v4058_v8, %v4166_v3 }
 0x22a   :  { %1061 = vrot.lane.b32.xlu0 %v1056_v49, %s3383_s13  ;;  %1944 = vperm.xlu1 %3208, %v3915_v17   ;;  %v4185_v48 = vpop.permute.xlu1 %1436  ;;  %v4204_v49 = vpop.permute.xlu0 %557  ;;  %v3451_v44 = vmov 103   ;;  %v1216_v8 = vmul.f32 %v4002_v41, %v4166_v3  ;;  %v1275_v41 = vmul.f32 %v4008_v1, %v4189_v61 }
 0x22b   :  { %3246 = vset.pattern.permute.xlu0 %v5469_v40 }
 0x22e   :  { %1368 = vperm.xlu0 %3246, %v3934_v26   ;;  %3210 = vset.pattern.permute.xlu1 %v3449_v43  ;;  %v4194_v54 = vpop.permute.xlu1 %1440  ;;  %v5516_v43 = vmov 63  }
 0x22f   :  { %1964 = vperm.xlu1 %3210, %v3915_v17  }
 0x232   :  { %1079 = vrot.lane.b32.xlu0 %v1075_v46, %s3383_s13  ;;  %v4215_v46 = vpop.permute.xlu0 %1788 }
 0x233   :  { %1968 = vperm.xlu1 %3210, %v3934_v26   ;;  %v4201_v29 = vpop.permute.xlu1 %1480  ;;  %3248 = vset.pattern.permute.xlu0 %v5470_v31 }
 0x234   :  { %5515 = vst [vmem:[#allocation25_spill] sm:$0xff] %v4201_v29  ;;  %v3454_v29 = vmov 64  }
 0x236   :  { %1119 = vrot.lane.b32.xlu0 %v1115_v20, %s3384_s14  ;;  %v4225_v20 = vpop.permute.xlu0 %1844 }
 0x237   :  { %3212 = vset.pattern.permute.xlu1 %v5516_v43  ;;  %v4210_v40 = vpop.permute.xlu1 %517 }
 0x238   :  { %2008 = vperm.xlu1 %3212, %v3934_v26  }
 0x23a   :  { %1139 = vrot.lane.b32.xlu0 %v1135_v55, %s3384_s14  ;;  %v5473_v55 = vmov 37   ;;  %v4236_v4 = vpop.permute.xlu0 %565 }
 0x23b   :  { %v4218_v31 = vpop.permute.xlu1 %1496 }
 0x23c   :  { %3213 = vset.pattern.permute.xlu1 %v5517_v63  ;;  %v1196_v63 = vmul.f32 %v4067_v10, %v4166_v3 }
 0x23d   :  { %2024 = vperm.xlu1 %3213, %v3915_v17  }
 0x23e   :  { %1456 = vperm.xlu0 %3248, %v3915_v17   ;;  %v4247_v10 = vpop.permute.xlu0 %1868 }
 0x240   :  { %v4227_v43 = vpop.permute.xlu1 %1516 }
 0x241   :  { %5518 = vst [vmem:[#allocation26_spill] sm:$0xff] %v4227_v43  ;;  %3215 = vset.pattern.permute.xlu1 %v3451_v44 }
 0x242   :  { %2044 = vperm.xlu1 %3215, %v3915_v17   ;;  %1161 = vrot.lane.b32.xlu0 %v1156_v32, %s3384_s14  ;;  %v5519_v32 = vmov 44   ;;  %v4256_v43 = vpop.permute.xlu0 %1924 }
 0x243   :  { %3251 = vset.pattern.permute.xlu0 %v5473_v55 }
 0x244   :  { %v4234_v52 = vpop.permute.xlu1 %1520 }
 0x246   :  { %2048 = vperm.xlu1 %3215, %v3934_v26   ;;  %1201 = vrot.lane.b32.xlu0 %v1196_v63, %s3385_s0  ;;  %v4266_v1 = vpop.permute.xlu0 %573 }
 0x249   :  { %v4242_v44 = vpop.permute.xlu1 %1560 }
 0x24a   :  { %3217 = vset.pattern.permute.xlu1 %v5519_v32  ;;  %1221 = vrot.lane.b32.xlu0 %v1216_v8, %s3385_s0  ;;  %v5474_v8 = vmov 38   ;;  %v1295_v32 = vmul.f32 %v4119_v59, %v4189_v61  ;;  %v1316_v59 = vmul.f32 %v4137_v19, %v4166_v3  ;;  %v5525_v19 = vmov 26  }
 0x24b   :  { %614 = vperm.xlu1 %3217, %v3934_v26  }
 0x24d   :  { %v526_v55 = vpop.permute.xlu1 %525 }
 0x24e   :  { %1540 = vperm.xlu0 %3251, %v3934_v26  }
 0x24f   :  { %3218 = vset.pattern.permute.xlu1 %v5520_v37 }
 0x250   :  { %640 = vperm.xlu1 %3218, %v3915_v17  }
 0x251   :  { %v4254_v63 = vpop.permute.xlu1 %1576 }
 0x252   :  { %5521 = vst [vmem:[#allocation27_spill] sm:$0xff] %v4254_v63  ;;  %1279 = vrot.lane.b32.xlu0 %v1275_v41, %s3386_s15  ;;  %v508_v63 = vmax.f32 %v3793_v23, %v4143_v45  ;;  %v5475_v45 = vmov 59  }
 0x253   :  { %3252 = vset.pattern.permute.xlu0 %v5474_v8  ;;  %v5524_v8 = vmov 84  }
 0x254   :  { %3220 = vset.pattern.permute.xlu1 %v3454_v29  ;;  %v4276_v29 = vpop.permute.xlu0 %1948 }
 0x255   :  { %620 = vperm.xlu1 %3220, %v3915_v17  }
 0x256   :  { %1299 = vrot.lane.b32.xlu0 %v1295_v32, %s3386_s15  ;;  %v4264_v37 = vpop.permute.xlu1 %1596  ;;  %v516_v32 = vmax.f32 %v508_v63, %v4061_v27 }
 0x257   :  { %5522 = vst [vmem:[#allocation28_spill] sm:$0xff] %v4264_v37 }
 0x258   :  { %v4286_v37 = vpop.permute.xlu0 %2004 }
 0x259   :  { %624 = vperm.xlu1 %3220, %v3934_v26  }
 0x25a   :  { %1616 = vperm.xlu0 %3252, %v3915_v17   ;;  %v4272_v41 = vpop.permute.xlu1 %1600 }
 0x25b   :  { %5523 = vst [vmem:[#allocation29_spill] sm:$0xff] %v4272_v41  ;;  %v524_v41 = vmax.f32 %v516_v32, %v4097_v12  ;;  %v3457_v12 = vmov 27  }
 0x25c   :  { %v4300_v32 = vpop.permute.xlu0 %2028 }
 0x25d   :  { %3222 = vset.pattern.permute.xlu1 %v5524_v8  ;;  %v4294_v63 = vmax.f32 %v524_v41, %v4130_v18  ;;  %v5476_v8 = vmov 79  }
 0x25e   :  { %634 = vperm.xlu1 %3222, %v3934_v26   ;;  %1321 = vrot.lane.b32.xlu0 %v1316_v59, %s3386_s15  ;;  %v507_v59 = vmax.f32 %v3780_v16, %v4033_v60  ;;  %v5478_v16 = vmov 99  }
 0x25f   :  { %v4282_v23 = vpop.permute.xlu1 %1640  ;;  %3255 = vset.pattern.permute.xlu0 %v5475_v45  ;;  %v1424_v18 = vmul.f32 %v4075_v9, %v4294_v63 }
 0x262   :  { %3223 = vset.pattern.permute.xlu1 %v5525_v19  ;;  %1712 = vperm.xlu0 %3255, %v3934_v26   ;;  %v515_v19 = vmax.f32 %v507_v59, %v4159_v34  ;;  %v5526_v34 = vmov 28  }
 0x263   :  { %720 = vperm.xlu1 %3223, %v3915_v17  }
 0x264   :  { %v4291_v27 = vpop.permute.xlu1 %1656  ;;  %v523_v41 = vmax.f32 %v515_v19, %v4210_v40  ;;  %v5527_v19 = vmov 49  }
 0x266   :  { %3256 = vset.pattern.permute.xlu0 %v5476_v8  ;;  %v4312_v60 = vmax.f32 %v523_v41, %v526_v55  ;;  %v4316_v8 = vpop.permute.xlu0 %610  ;;  %v5477_v55 = vmov 41  }
 0x267   :  { %3225 = vset.pattern.permute.xlu1 %v3457_v12  ;;  %1720 = vperm.xlu0 %3256, %v3915_v17  }
 0x268   :  { %800 = vperm.xlu1 %3225, %v3915_v17   ;;  %v1443_v40 = vmul.f32 %v4185_v48, %v4312_v60  ;;  %v1483_v41 = vmul.f32 %v4086_v13, %v4312_v60  ;;  %v667_v48 = vmul.f32 %v3791_v22, %v4056_v28  ;;  %v668_v13 = vmul.f32 %v3805_v30, %v4037_v58 }
 0x269   :  { %v4304_v45 = vpop.permute.xlu1 %1676  ;;  %v687_v30 = vmul.f32 %v3812_v33, %v4056_v28 }
 0x26a   :  { %v4324_v59 = vpop.permute.xlu0 %644 }
 0x26b   :  { %1429 = vrot.lane.b32.xlu0 %v1424_v18, %s3383_s13 }
 0x26c   :  { %804 = vperm.xlu1 %3225, %v3934_v26   ;;  %3259 = vset.pattern.permute.xlu0 %v5478_v16  ;;  %v5530_v16 = vmov 89  }
 0x26d   :  { %v4314_v12 = vpop.permute.xlu1 %1680 }
 0x26f   :  { %1736 = vperm.xlu0 %3259, %v3934_v26  }
 0x270   :  { %3227 = vset.pattern.permute.xlu1 %v5526_v34 }
 0x271   :  { %884 = vperm.xlu1 %3227, %v3934_v26   ;;  %v550_v9 = vpop.permute.xlu1 %549 }
 0x273   :  { %1447 = vrot.lane.b32.xlu0 %v1443_v40, %s3383_s13  ;;  %v1503_v40 = vmul.f32 %v4218_v31, %v4312_v60  ;;  %v1524_v31 = vmul.f32 %v4234_v52, %v4294_v63 }
 0x274   :  { %3261 = vset.pattern.permute.xlu0 %v5477_v55  ;;  %v4340_v55 = vpop.permute.xlu0 %630 }
 0x275   :  { %3228 = vset.pattern.permute.xlu1 %v5527_v19  ;;  %v4328_v18 = vpop.permute.xlu1 %1768  ;;  %5528 = vst [vmem:[#allocation30_spill] sm:$0xff] %v4340_v55  ;;  %v5529_v19 = vmov 69  }
 0x276   :  { %972 = vperm.xlu1 %3228, %v3915_v17  }
 0x277   :  { %1487 = vrot.lane.b32.xlu0 %v1483_v41, %s3384_s14 }
 0x278   :  { %v4351_v22 = vpop.permute.xlu0 %724 }
 0x279   :  { %v4336_v34 = vpop.permute.xlu1 %555 }
 0x27a   :  { %671 = vrot.lane.b32.xlu1 %v667_v48, %s3383_s13 }
 0x27b   :  { %1507 = vrot.lane.b32.xlu0 %v1503_v40, %s3384_s14  ;;  %3231 = vset.pattern.permute.xlu1 %v5529_v19  ;;  %v5479_v40 = vmov 42   ;;  %v1564_v19 = vmul.f32 %v4242_v44, %v4294_v63 }
 0x27d   :  { %v4347_v41 = vpop.permute.xlu1 %1784 }
 0x27e   :  { %673 = vrot.lane.b32.xlu1 %v668_v13, %s3383_s13  ;;  %v4364_v13 = vpop.permute.xlu0 %880 }
 0x27f   :  { %1824 = vperm.xlu0 %3261, %v3915_v17  }
 0x282   :  { %988 = vperm.xlu1 %3231, %v3934_v26   ;;  %v4356_v48 = vpop.permute.xlu1 %1804  ;;  %v4377_v44 = vpop.permute.xlu0 %976 }
 0x283   :  { %1529 = vrot.lane.b32.xlu0 %v1524_v31, %s3384_s14  ;;  %v1584_v31 = vmul.f32 %v4139_v14, %v4294_v63  ;;  %5531 = vst [vmem:[#allocation31_spill] sm:$0xff] %v4377_v44  ;;  %v1643_v14 = vmul.f32 %v4149_v62, %v4312_v60  ;;  %v5480_v44 = vmov 43  }
 0x284   :  { %3264 = vset.pattern.permute.xlu0 %v5479_v40  ;;  %v3461_v40 = vmov 30  }
 0x286   :  { %691 = vrot.lane.b32.xlu1 %v687_v30, %s3383_s13  ;;  %v4367_v52 = vpop.permute.xlu1 %1808 }
 0x287   :  { %1569 = vrot.lane.b32.xlu0 %v1564_v19, %s3385_s0  ;;  %3232 = vset.pattern.permute.xlu1 %v5530_v16  ;;  %v554_v16 = vmax.f32 %v3891_v11, %v550_v9  ;;  %v4384_v19 = vpop.permute.xlu0 %984  ;;  %v708_v11 = vmul.f32 %v3821_v36, %v4037_v58 }
 0x289   :  { %v562_v55 = vmax.f32 %v554_v16, %v4204_v49  ;;  %v1684_v49 = vmul.f32 %v4314_v12, %v4294_v63 }
 0x28a   :  { %996 = vperm.xlu1 %3232, %v3915_v17  }
 0x28b   :  { %1589 = vrot.lane.b32.xlu0 %v1584_v31, %s3385_s0  ;;  %v4375_v33 = vpop.permute.xlu1 %1848  ;;  %v4398_v62 = vpop.permute.xlu0 %693 }
 0x28c   :  { %5532 = vst [vmem:[#allocation32_spill] sm:$0xff] %v4398_v62 }
 0x28e   :  { %3234 = vset.pattern.permute.xlu1 %v3461_v40  ;;  %v1663_v40 = vmul.f32 %v4291_v27, %v4312_v60  ;;  %v748_v27 = vmul.f32 %v3823_v38, %v4037_v58  ;;  %v5487_v38 = vmov 105  }
 0x28f   :  { %1008 = vperm.xlu1 %3234, %v3915_v17   ;;  %1908 = vperm.xlu0 %3264, %v3934_v26   ;;  %v564_v30 = vpop.permute.xlu1 %563 }
 0x293   :  { %1012 = vperm.xlu1 %3234, %v3934_v26   ;;  %1647 = vrot.lane.b32.xlu0 %v1643_v14, %s3386_s15  ;;  %v4388_v31 = vpop.permute.xlu1 %1864  ;;  %v5533_v14 = vmov 31  }
 0x294   :  { %3265 = vset.pattern.permute.xlu0 %v5480_v44  ;;  %v570_v44 = vmax.f32 %v562_v55, %v4236_v4 }
 0x296   :  { %v4413_v16 = vmax.f32 %v570_v44, %v4266_v1  ;;  %v553_v1 = vmax.f32 %v3876_v2, %v4178_v35  ;;  %v5535_v2 = vmov 32  }
 0x297   :  { %713 = vrot.lane.b32.xlu1 %v708_v11, %s3383_s13  ;;  %1667 = vrot.lane.b32.xlu0 %v1663_v40, %s3386_s15  ;;  %v768_v40 = vmul.f32 %v3830_v39, %v4037_v58  ;;  %v4417_v11 = vpop.permute.xlu0 %1000 }
 0x298   :  { %v4400_v9 = vpop.permute.xlu1 %1884  ;;  %3236 = vset.pattern.permute.xlu1 %v5533_v14  ;;  %5534 = vst [vmem:[#allocation33_spill] sm:$0xff] %v4417_v11  ;;  %v1772_v4 = vmul.f32 %v4328_v18, %v4413_v16  ;;  %v561_v12 = vmax.f32 %v553_v1, %v4336_v34  ;;  %v787_v14 = vmul.f32 %v3839_v50, %v4056_v28 }
 0x299   :  { %v1792_v18 = vmul.f32 %v4215_v46, %v4413_v16  ;;  %v827_v34 = vmul.f32 %v3850_v42, %v4056_v28  ;;  %v847_v50 = vmul.f32 %v3857_v57, %v4056_v28  ;;  %v5486_v42 = vmov 106  }
 0x29a   :  { %v867_v57 = vmul.f32 %v3881_v5, %v4056_v28 }
 0x29b   :  { %753 = vrot.lane.b32.xlu1 %v748_v27, %s3384_s14  ;;  %1984 = vperm.xlu0 %3265, %v3915_v17   ;;  %v4430_v39 = vpop.permute.xlu0 %711  ;;  %v569_v27 = vmax.f32 %v561_v12, %v564_v30 }
 0x29c   :  { %v4408_v36 = vpop.permute.xlu1 %1888 }
 0x29f   :  { %773 = vrot.lane.b32.xlu1 %v768_v40, %s3384_s14  ;;  %1689 = vrot.lane.b32.xlu0 %v1684_v49, %s3386_s15  ;;  %v4444_v40 = vpop.permute.xlu0 %751 }
 0x2a0   :  { %3268 = vset.pattern.permute.xlu0 %v5487_v38 }
 0x2a1   :  { %v4424_v55 = vpop.permute.xlu1 %1928 }
 0x2a3   :  { %1092 = vperm.xlu1 %3236, %v3934_v26   ;;  %1777 = vrot.lane.b32.xlu0 %v1772_v4, %s3383_s13  ;;  %v4454_v4 = vpop.permute.xlu0 %771 }
 0x2a5   :  { %v572_v44 = vpop.permute.xlu1 %571 }
 0x2a6   :  { %v4440_v35 = vmax.f32 %v569_v27, %v572_v44  ;;  %v868_v27 = vmul.f32 %v3905_v0, %v4037_v58  ;;  %v928_v0 = vmul.f32 %v3953_v53, %v4037_v58  ;;  %v947_v53 = vmul.f32 %v3961_v56, %v4056_v28 }
 0x2a7   :  { %791 = vrot.lane.b32.xlu1 %v787_v14, %s3384_s14  ;;  %1797 = vrot.lane.b32.xlu0 %v1792_v18, %s3383_s13  ;;  %v4465_v12 = vpop.permute.xlu0 %1088  ;;  %v5484_v14 = vmov 107   ;;  %v5536_v18 = vmov 33  }
 0x2a8   :  { %3237 = vset.pattern.permute.xlu1 %v5535_v2  ;;  %v1851_v46 = vmul.f32 %v4225_v20, %v4440_v35  ;;  %v1872_v20 = vmul.f32 %v4247_v10, %v4413_v16  ;;  %v908_v2 = vmul.f32 %v3944_v51, %v4037_v58 }
 0x2a9   :  { %v1945_v49 = vpop.permute.xlu1 %1944 }
 0x2ab   :  { %831 = vrot.lane.b32.xlu1 %v827_v34, %s3385_s0  ;;  %2114 = vperm.xlu0 %3268, %v3934_v26   ;;  %v4477_v5 = vpop.permute.xlu0 %793  ;;  %v1931_v34 = vmul.f32 %v4256_v43, %v4440_v35 }
 0x2ac   :  { %5537 = vst [vmem:[#allocation34_spill] sm:$0xff] %v4477_v5 }
 0x2ae   :  { %v1965_v30 = vpop.permute.xlu1 %1964 }
 0x2af   :  { %851 = vrot.lane.b32.xlu1 %v847_v50, %s3385_s0  ;;  %1855 = vrot.lane.b32.xlu0 %v1851_v46, %s3384_s14  ;;  %v5482_v50 = vmov 24   ;;  %v1951_v46 = vmul.f32 %v1945_v49, %v4440_v35  ;;  %v1971_v51 = vmul.f32 %v1965_v30, %v4440_v35  ;;  %v2011_v49 = vmul.f32 %v4286_v37, %v4440_v35 }
 0x2b0   :  { %3269 = vset.pattern.permute.xlu0 %v5486_v42  ;;  %v5541_v30 = vmov 54  }
 0x2b2   :  { %v4457_v1 = vpop.permute.xlu1 %1968 }
 0x2b3   :  { %1168 = vperm.xlu1 %3237, %v3915_v17   ;;  %2156 = vperm.xlu0 %3269, %v3915_v17  }
 0x2b7   :  { %871 = vrot.lane.b32.xlu1 %v867_v57, %s3385_s0  ;;  %1877 = vrot.lane.b32.xlu0 %v1872_v20, %s3384_s14  ;;  %v4469_v44 = vpop.permute.xlu1 %2008  ;;  %v4489_v20 = vpop.permute.xlu0 %833 }
 0x2b8   :  { %3272 = vset.pattern.permute.xlu0 %v5484_v14  ;;  %3240 = vset.pattern.permute.xlu1 %v5536_v18  ;;  %5538 = vst [vmem:[#allocation35_spill] sm:$0xff] %v4489_v20 }
 0x2bb   :  { %873 = vrot.lane.b32.xlu1 %v868_v27, %s3385_s0  ;;  %2206 = vperm.xlu0 %3272, %v3934_v26   ;;  %v4498_v18 = vpop.permute.xlu0 %853 }
 0x2bc   :  { %v2025_v10 = vpop.permute.xlu1 %2024  ;;  %5539 = vst [vmem:[#allocation36_spill] sm:$0xff] %v4498_v18 }
 0x2bf   :  { %913 = vrot.lane.b32.xlu1 %v908_v2, %s3386_s15  ;;  %1935 = vrot.lane.b32.xlu0 %v1931_v34, %s3385_s0  ;;  %v2031_v2 = vmul.f32 %v2025_v10, %v4440_v35  ;;  %v4510_v34 = vpop.permute.xlu0 %1172 }
 0x2c0   :  { %3273 = vset.pattern.permute.xlu0 %v5482_v50  ;;  %v3469_v50 = vmov 35  }
 0x2c1   :  { %v2045_v57 = vpop.permute.xlu1 %2044 }
 0x2c2   :  { %v2051_v37 = vmul.f32 %v2045_v57, %v4440_v35 }
 0x2c3   :  { %933 = vrot.lane.b32.xlu1 %v928_v0, %s3386_s15  ;;  %1955 = vrot.lane.b32.xlu0 %v1951_v46, %s3385_s0  ;;  %v1035_v0 = vmul.f32 %v3940_v47, %v4189_v61  ;;  %v4521_v46 = vpop.permute.xlu0 %911 }
 0x2c5   :  { %v4494_v43 = vpop.permute.xlu1 %2048 }
 0x2c7   :  { %1252 = vperm.xlu1 %3240, %v3934_v26   ;;  %1975 = vrot.lane.b32.xlu0 %v1971_v51, %s3385_s0  ;;  %v5542_v51 = vmov 74   ;;  %v4532_v47 = vpop.permute.xlu0 %931 }
 0x2ca   :  { %v4504_v27 = vpop.permute.xlu1 %614 }
 0x2cb   :  { %5540 = vst [vmem:[#allocation37_spill] sm:$0xff] %v4504_v27  ;;  %951 = vrot.lane.b32.xlu1 %v947_v53, %s3386_s15  ;;  %2015 = vrot.lane.b32.xlu0 %v2011_v49, %s3386_s15  ;;  %v1036_v53 = vmul.f32 %v3981_v25, %v4166_v3  ;;  %v5481_v49 = vmov 29   ;;  %v1055_v25 = vmul.f32 %v3995_v21, %v4189_v61 }
 0x2cc   :  { %3241 = vset.pattern.permute.xlu1 %v5541_v30 }
 0x2cf   :  { %1340 = vperm.xlu1 %3241, %v3915_v17   ;;  %2035 = vrot.lane.b32.xlu0 %v2031_v2, %s3386_s15  ;;  %v4514_v56 = vpop.permute.xlu1 %640  ;;  %v4542_v2 = vpop.permute.xlu0 %1248 }
 0x2d3   :  { %1039 = vrot.lane.b32.xlu1 %v1035_v0, %s3383_s13  ;;  %2055 = vrot.lane.b32.xlu0 %v2051_v37, %s3386_s15  ;;  %v5545_v37 = vmov 94   ;;  %v5483_v0 = vmov 34  }
 0x2d4   :  { %v4523_v10 = vpop.permute.xlu1 %620  ;;  %3244 = vset.pattern.permute.xlu1 %v5542_v51 }
 0x2d7   :  { %1041 = vrot.lane.b32.xlu1 %v1036_v53, %s3383_s13  ;;  %600 = vperm.xlu0 %3273, %v3915_v17  }
 0x2d8   :  { %v4530_v57 = vpop.permute.xlu1 %624 }
 0x2d9   :  { %5543 = vst [vmem:[#allocation38_spill] sm:$0xff] %v4530_v57 }
 0x2db   :  { %1356 = vperm.xlu1 %3244, %v3934_v26   ;;  %3276 = vset.pattern.permute.xlu0 %v5481_v49  ;;  %v4549_v49 = vpop.permute.xlu0 %953 }
 0x2dc   :  { %964 = vperm.xlu0 %3276, %v3934_v26   ;;  %5546 = vst [vmem:[#allocation40_spill] sm:$0xff] %v4549_v49 }
 0x2dd   :  { %v4537_v30 = vpop.permute.xlu1 %634 }
 0x2de   :  { %5544 = vst [vmem:[#allocation39_spill] sm:$0xff] %v4537_v30 }
 0x2df   :  { %1059 = vrot.lane.b32.xlu1 %v1055_v25, %s3383_s13 }
 0x2e0   :  { %3245 = vset.pattern.permute.xlu1 %v5545_v37  ;;  %3277 = vset.pattern.permute.xlu0 %v5483_v0  ;;  %v4558_v0 = vpop.permute.xlu0 %1344 }
 0x2e1   :  { %5547 = vst [vmem:[#allocation41_spill] sm:$0xff] %v4558_v0  ;;  %v5488_v0 = vmov 39  }
 0x2e2   :  { %v721_v51 = vpop.permute.xlu1 %720 }
 0x2e3   :  { %v727_v53 = vmul.f32 %v721_v51, %v4056_v28  ;;  %1364 = vperm.xlu1 %3245, %v3915_v17   ;;  %v887_v51 = vmul.f32 %v4364_v13, %v4056_v28 }
 0x2e4   :  { %v4570_v38 = vpop.permute.xlu0 %1352 }
 0x2e5   :  { %731 = vrot.lane.b32.xlu0 %v727_v53, %s3384_s14  ;;  %v5548_v53 = vld [vmem:[#allocation12_spill] sm:$0xff] }
 0x2e6   :  { %v1076_v14 = vmul.f32 %v5548_v53, %v4166_v3  ;;  %5551 = vst [vmem:[#allocation12_spill] sm:$0xff] %v4570_v38  ;;  %v5552_v53 = vld [vmem:[#allocation10_spill] sm:$0xff]  ;;  %v5580_v38 = vld [vmem:[#allocation25_spill] sm:$0xff] }
 0x2e7   :  { %3247 = vset.pattern.permute.xlu1 %v3469_v50  ;;  %v801_v21 = vpop.permute.xlu1 %800 }
 0x2e8   :  { %v807_v25 = vmul.f32 %v801_v21, %v4056_v28  ;;  %1376 = vperm.xlu1 %3247, %v3915_v17   ;;  %v5549_v21 = vmov 36  }
 0x2ea   :  { %811 = vrot.lane.b32.xlu0 %v807_v25, %s3385_s0  ;;  %v5550_v25 = vld [vmem:[#allocation13_spill] sm:$0xff] }
 0x2eb   :  { %v4554_v37 = vpop.permute.xlu1 %804  ;;  %v1116_v42 = vmul.f32 %v5550_v25, %v4166_v3  ;;  %v5555_v25 = vmov 37  }
 0x2ec   :  { %1380 = vperm.xlu1 %3247, %v3934_v26  }
 0x2ee   :  { %891 = vrot.lane.b32.xlu0 %v887_v51, %s3386_s15  ;;  %v1136_v51 = vmul.f32 %v5552_v53, %v4166_v3  ;;  %v5556_v53 = vld [vmem:[#allocation11_spill] sm:$0xff] }
 0x2f0   :  { %1081 = vrot.lane.b32.xlu1 %v1076_v14, %s3383_s13  ;;  %v4565_v50 = vpop.permute.xlu1 %884 }
 0x2f1   :  { %3249 = vset.pattern.permute.xlu1 %v5549_v21 }
 0x2f2   :  { %1328 = vperm.xlu0 %3277, %v3915_v17   ;;  %v1155_v17 = vmul.f32 %v4050_v15, %v4189_v61  ;;  %v4604_v15 = vld [vmem:[%s5443_s4] sm:$0xff] }
 0x2f4   :  { %1121 = vrot.lane.b32.xlu1 %v1116_v42, %s3384_s14 }
 0x2f5   :  { %v4574_v13 = vpop.permute.xlu1 %972 }
 0x2f6   :  { %3280 = vset.pattern.permute.xlu0 %v5488_v0  ;;  %v1195_v0 = vmul.f32 %v5556_v53, %v4189_v61 }
 0x2f8   :  { %1141 = vrot.lane.b32.xlu1 %v1136_v51, %s3384_s14 }
 0x2f9   :  { %v4580_v14 = vpop.permute.xlu1 %671 }
 0x2fc   :  { %1460 = vperm.xlu1 %3249, %v3934_v26   ;;  %v1215_v26 = vmul.f32 %v4084_v6, %v4189_v61  ;;  %v5559_v6 = vld [vmem:[#allocation16_spill] sm:$0xff] }
 0x2fd   :  { %v4583_v21 = vpop.permute.xlu1 %673  ;;  %v1236_v53 = vmul.f32 %v5559_v6, %v4166_v3 }
 0x2fe   :  { %5553 = vst [vmem:[#allocation13_spill] sm:$0xff] %v4583_v21 }
 0x300   :  { %1159 = vrot.lane.b32.xlu1 %v1155_v17, %s3384_s14  ;;  %v1235_v17 = vmul.f32 %v4093_v7, %v4189_v61  ;;  %v5561_v7 = vld [vmem:[#allocation18_spill] sm:$0xff] }
 0x301   :  { %v4588_v42 = vpop.permute.xlu1 %988  ;;  %3250 = vset.pattern.permute.xlu1 %v5555_v25  ;;  %v5558_v25 = vmov 38   ;;  %v1276_v5 = vmul.f32 %v5561_v7, %v4166_v3 }
 0x302   :  { %5554 = vst [vmem:[#allocation10_spill] sm:$0xff] %v4588_v42  ;;  %v4617_v42 = vpop.permute.xlu0 %1061 }
 0x303   :  { %5560 = vst [vmem:[#allocation16_spill] sm:$0xff] %v4617_v42 }
 0x304   :  { %1199 = vrot.lane.b32.xlu1 %v1195_v0, %s3385_s0 }
 0x305   :  { %v4594_v51 = vpop.permute.xlu1 %691 }
 0x306   :  { %v4640_v42 = vpop.permute.xlu0 %1368 }
 0x308   :  { %1219 = vrot.lane.b32.xlu1 %v1215_v26, %s3385_s0 }
 0x309   :  { %v4599_v11 = vpop.permute.xlu1 %996 }
 0x30a   :  { %5557 = vst [vmem:[#allocation11_spill] sm:$0xff] %v4599_v11 }
 0x30c   :  { %1536 = vperm.xlu1 %3250, %v4604_v15  }
 0x30e   :  { %v4609_v0 = vpop.permute.xlu1 %1008 }
 0x310   :  { %1239 = vrot.lane.b32.xlu1 %v1235_v17, %s3385_s0  ;;  %v5563_v17 = vld [vmem:[#allocation14_spill] sm:$0xff] }
 0x311   :  { %3253 = vset.pattern.permute.xlu1 %v5558_v25  ;;  %v1296_v25 = vmul.f32 %v5563_v17, %v4166_v3 }
 0x312   :  { %v1013_v26 = vpop.permute.xlu1 %1012 }
 0x313   :  { %v1016_v49 = vmul.f32 %v1013_v26, %v4166_v3 }
 0x314   :  { %1241 = vrot.lane.b32.xlu1 %v1236_v53, %s3385_s0  ;;  %v5566_v53 = vld [vmem:[#allocation20_spill] sm:$0xff] }
 0x315   :  { %1021 = vrot.lane.b32.xlu0 %v1016_v49, %s3383_s13  ;;  %v4635_v49 = vld [vmem:[%s5443_s4 + $0x8] sm:$0xf]  ;;  %v1315_v7 = vmul.f32 %v5566_v53, %v4189_v61  ;;  %5567 = vst [vmem:[#allocation20_spill] sm:$0xff] %v4640_v42  ;;  %s3473_s4 = smov 16  }
 0x316   :  { %v4622_v20 = vpop.permute.xlu1 %713 }
 0x317   :  { %5562 = vst [vmem:[#allocation18_spill] sm:$0xff] %v4622_v20  ;;  %v1176_v20 = vmul.f32 %v4510_v34, %v4166_v3 }
 0x318   :  { %1281 = vrot.lane.b32.xlu1 %v1276_v5, %s3386_s15 }
 0x31a   :  { %v4627_v6 = vpop.permute.xlu1 %753 }
 0x31b   :  { %5564 = vst [vmem:[#allocation14_spill] sm:$0xff] %v4627_v6  ;;  %v4651_v6 = vpop.permute.xlu0 %1079 }
 0x31c   :  { %1301 = vrot.lane.b32.xlu1 %v1296_v25, %s3386_s15  ;;  %v5568_v25 = vmov 59   ;;  %5569 = vst [vmem:[#allocation43_spill] sm:$0xff] %v4651_v6 }
 0x31e   :  { %v4630_v26 = vpop.permute.xlu1 %773 }
 0x31f   :  { %5565 = vst [vmem:[#allocation42_spill] sm:$0xff] %v4630_v26  ;;  %v3471_v26 = vmov 40  }
 0x320   :  { %1620 = vperm.xlu1 %3253, %v4635_v49  }
 0x322   :  { %v1093_v5 = vpop.permute.xlu1 %1092 }
 0x323   :  { %v1096_v17 = vmul.f32 %v1093_v5, %v4166_v3  ;;  %v5570_v5 = vld [vmem:[#allocation15_spill] sm:$0xff] }
 0x324   :  { %1319 = vrot.lane.b32.xlu1 %v1315_v7, %s3386_s15  ;;  %v1403_v7 = vmul.f32 %v5570_v5, %v4312_v60  ;;  %v1423_v5 = vmul.f32 %v4169_v24, %v4312_v60 }
 0x325   :  { %1101 = vrot.lane.b32.xlu0 %v1096_v17, %s3384_s14  ;;  %3254 = vset.pattern.permute.xlu1 %v5568_v25  ;;  %v5571_v17 = vmov 79   ;;  %v5572_v25 = vld [vmem:[#allocation21_spill] sm:$0xff] }
 0x326   :  { %v4646_v18 = vpop.permute.xlu1 %791  ;;  %v1404_v42 = vmul.f32 %v5572_v25, %v4294_v63 }
 0x328   :  { %1708 = vperm.xlu1 %3254, %v4604_v15  }
 0x329   :  { %1181 = vrot.lane.b32.xlu0 %v1176_v20, %s3385_s0 }
 0x32a   :  { %v4654_v53 = vpop.permute.xlu1 %831 }
 0x32c   :  { %1407 = vrot.lane.b32.xlu1 %v1403_v7, %s3383_s13  ;;  %v4673_v7 = vpop.permute.xlu0 %1119 }
 0x32d   :  { %3257 = vset.pattern.permute.xlu1 %v5571_v17  ;;  %v5573_v17 = vmov 99  }
 0x32e   :  { %v4662_v30 = vpop.permute.xlu1 %851 }
 0x330   :  { %1409 = vrot.lane.b32.xlu1 %v1404_v42, %s3383_s13  ;;  %v4681_v6 = vpop.permute.xlu0 %1139 }
 0x331   :  { %5576 = vst [vmem:[#allocation44_spill] sm:$0xff] %v4681_v6 }
 0x332   :  { %v4665_v34 = vpop.permute.xlu1 %1168 }
 0x334   :  { %1724 = vperm.xlu1 %3257, %v4635_v49   ;;  %v1457_v24 = vpop.permute.xlu0 %1456 }
 0x336   :  { %v4668_v20 = vpop.permute.xlu1 %871 }
 0x338   :  { %1427 = vrot.lane.b32.xlu1 %v1423_v5, %s3383_s13  ;;  %v4697_v62 = vpop.permute.xlu0 %1161 }
 0x339   :  { %3258 = vset.pattern.permute.xlu1 %v5573_v17  ;;  %v1444_v17 = vmul.f32 %v4194_v54, %v4294_v63  ;;  %5581 = vst [vmem:[#allocation25_spill] sm:$0xff] %v4697_v62 }
 0x33a   :  { %v4676_v25 = vpop.permute.xlu1 %873 }
 0x33b   :  { %5574 = vst [vmem:[#allocation15_spill] sm:$0xff] %v4676_v25 }
 0x33c   :  { %1732 = vperm.xlu1 %3258, %v4604_v15  }
 0x33e   :  { %v4679_v42 = vpop.permute.xlu1 %913 }
 0x33f   :  { %5575 = vst [vmem:[#allocation21_spill] sm:$0xff] %v4679_v42 }
 0x340   :  { %3260 = vset.pattern.permute.xlu1 %v3471_v26  ;;  %v5579_v26 = vmov 41  }
 0x341   :  { %1744 = vperm.xlu1 %3260, %v4604_v15  }
 0x342   :  { %v4684_v21 = vpop.permute.xlu1 %933 }
 0x343   :  { %5577 = vst [vmem:[#allocation45_spill] sm:$0xff] %v4684_v21  ;;  %v1484_v21 = vmul.f32 %v5580_v38, %v4294_v63 }
 0x345   :  { %1748 = vperm.xlu1 %3260, %v4635_v49  }
 0x346   :  { %v1253_v5 = vpop.permute.xlu1 %1252 }
 0x347   :  { %v1256_v25 = vmul.f32 %v1253_v5, %v4166_v3  ;;  %v1463_v5 = vmul.f32 %v1457_v24, %v4312_v60  ;;  %v4706_v3 = vpop.permute.xlu0 %1201  ;;  %v5586_v24 = vld [vmem:[#allocation26_spill] sm:$0xff] }
 0x349   :  { %1449 = vrot.lane.b32.xlu1 %v1444_v17, %s3383_s13  ;;  %1261 = vrot.lane.b32.xlu0 %v1256_v25, %s3386_s15  ;;  %v5582_v17 = vld [vmem:[#allocation17_spill] sm:$0xff] }
 0x34a   :  { %v4692_v42 = vpop.permute.xlu1 %951  ;;  %3262 = vset.pattern.permute.xlu1 %v5579_v26  ;;  %v1504_v25 = vmul.f32 %v5582_v17, %v4294_v63  ;;  %5583 = vst [vmem:[#allocation17_spill] sm:$0xff] %v4706_v3  ;;  %v5491_v26 = vmov 104   ;;  %v1523_v17 = vmul.f32 %v5586_v24, %v4312_v60 }
 0x34b   :  { %5578 = vst [vmem:[#allocation46_spill] sm:$0xff] %v4692_v42  ;;  %v4716_v62 = vpop.permute.xlu0 %1221 }
 0x34c   :  { %5585 = vst [vmem:[#allocation48_spill] sm:$0xff] %v4716_v62  ;;  %v5591_v62 = vld [vmem:[#allocation27_spill] sm:$0xff] }
 0x34d   :  { %1489 = vrot.lane.b32.xlu1 %v1484_v21, %s3384_s14  ;;  %1700 = vperm.xlu0 %3280, %v4635_v49  }
 0x34e   :  { %v4701_v54 = vpop.permute.xlu1 %1340 }
 0x34f   :  { %v4726_v11 = vpop.permute.xlu0 %1540 }
 0x351   :  { %1509 = vrot.lane.b32.xlu1 %v1504_v25, %s3384_s14  ;;  %1467 = vrot.lane.b32.xlu0 %v1463_v5, %s3384_s14  ;;  %v5588_v25 = vmov 42   ;;  %v5589_v5 = vld [vmem:[#allocation19_spill] sm:$0xff] }
 0x352   :  { %v4710_v38 = vpop.permute.xlu1 %1039  ;;  %3281 = vset.pattern.permute.xlu0 %v5491_v26  ;;  %v1563_v27 = vmul.f32 %v5589_v5, %v4312_v60  ;;  %5590 = vst [vmem:[#allocation19_spill] sm:$0xff] %v4726_v11 }
 0x355   :  { %1828 = vperm.xlu1 %3262, %v4635_v49  }
 0x356   :  { %v4714_v21 = vpop.permute.xlu1 %1041 }
 0x357   :  { %5584 = vst [vmem:[#allocation47_spill] sm:$0xff] %v4714_v21  ;;  %v1583_v21 = vmul.f32 %v5591_v62, %v4312_v60  ;;  %v5596_v62 = vld [vmem:[#allocation29_spill] sm:$0xff] }
 0x359   :  { %1527 = vrot.lane.b32.xlu1 %v1523_v17, %s3384_s14  ;;  %v4736_v17 = vpop.permute.xlu0 %1279 }
 0x35a   :  { %v4721_v3 = vpop.permute.xlu1 %1356  ;;  %3263 = vset.pattern.permute.xlu1 %v5588_v25  ;;  %v5593_v25 = vld [vmem:[#allocation28_spill] sm:$0xff] }
 0x35b   :  { %5587 = vst [vmem:[#allocation26_spill] sm:$0xff] %v4721_v3  ;;  %v1603_v5 = vmul.f32 %v5593_v25, %v4312_v60 }
 0x35d   :  { %1567 = vrot.lane.b32.xlu1 %v1563_v27, %s3385_s0  ;;  %v4743_v11 = vpop.permute.xlu0 %1299  ;;  %v5595_v27 = vmov 43  }
 0x35e   :  { %v4729_v26 = vpop.permute.xlu1 %1059  ;;  %5594 = vst [vmem:[#allocation28_spill] sm:$0xff] %v4743_v11 }
 0x361   :  { %1587 = vrot.lane.b32.xlu1 %v1583_v21, %s3385_s0  ;;  %v1604_v21 = vmul.f32 %v5596_v62, %v4294_v63  ;;  %v1617_v57 = vpop.permute.xlu0 %1616 }
 0x362   :  { %v4734_v24 = vpop.permute.xlu1 %1364 }
 0x363   :  { %5592 = vst [vmem:[#allocation27_spill] sm:$0xff] %v4734_v24  ;;  %v1644_v24 = vmul.f32 %v4282_v23, %v4294_v63  ;;  %v1683_v23 = vmul.f32 %v4304_v45, %v4312_v60  ;;  %v1791_v45 = vmul.f32 %v4347_v41, %v4440_v35  ;;  %v5609_v41 = vmov 106  }
 0x365   :  { %1904 = vperm.xlu1 %3263, %v4604_v15   ;;  %v4761_v6 = vpop.permute.xlu0 %1321 }
 0x367   :  { %v4741_v3 = vpop.permute.xlu1 %1376 }
 0x369   :  { %1607 = vrot.lane.b32.xlu1 %v1603_v5, %s3385_s0  ;;  %v5599_v5 = vld [vmem:[#allocation22_spill] sm:$0xff] }
 0x36a   :  { %3266 = vset.pattern.permute.xlu1 %v5595_v27  ;;  %v1664_v27 = vmul.f32 %v5599_v5, %v4294_v63  ;;  %5600 = vst [vmem:[#allocation22_spill] sm:$0xff] %v4761_v6  ;;  %v5605_v6 = vld [vmem:[#allocation24_spill] sm:$0xff] }
 0x36b   :  { %v4749_v42 = vpop.permute.xlu1 %1380 }
 0x36d   :  { %1609 = vrot.lane.b32.xlu1 %v1604_v21, %s3385_s0  ;;  %v4769_v21 = vpop.permute.xlu0 %1712 }
 0x36e   :  { %5602 = vst [vmem:[#allocation51_spill] sm:$0xff] %v4769_v21 }
 0x36f   :  { %v4754_v25 = vpop.permute.xlu1 %1081 }
 0x370   :  { %5597 = vst [vmem:[#allocation29_spill] sm:$0xff] %v4754_v25 }
 0x371   :  { %1649 = vrot.lane.b32.xlu1 %v1644_v24, %s3386_s15  ;;  %v5603_v24 = vmov 105  }
 0x373   :  { %v4757_v11 = vpop.permute.xlu1 %1121 }
 0x374   :  { %5598 = vst [vmem:[#allocation49_spill] sm:$0xff] %v4757_v11  ;;  %v4779_v11 = vpop.permute.xlu0 %1720 }
 0x375   :  { %1669 = vrot.lane.b32.xlu1 %v1664_v27, %s3386_s15  ;;  %v1771_v27 = vmul.f32 %v5605_v6, %v4440_v35  ;;  %5606 = vst [vmem:[#allocation24_spill] sm:$0xff] %v4779_v11  ;;  %v1811_v6 = vmul.f32 %v4356_v48, %v4440_v35  ;;  %v1852_v48 = vmul.f32 %v4375_v33, %v4413_v16  ;;  %v5614_v33 = vmov 107  }
 0x377   :  { %v4764_v62 = vpop.permute.xlu1 %1141 }
 0x378   :  { %5601 = vst [vmem:[#allocation50_spill] sm:$0xff] %v4764_v62  ;;  %v4787_v21 = vpop.permute.xlu0 %1429 }
 0x379   :  { %1988 = vperm.xlu1 %3266, %v4635_v49   ;;  %5607 = vst [vmem:[#allocation53_spill] sm:$0xff] %v4787_v21 }
 0x37b   :  { %v4771_v25 = vpop.permute.xlu1 %1460 }
 0x37d   :  { %1687 = vrot.lane.b32.xlu1 %v1683_v23, %s3386_s15 }
 0x37e   :  { %3267 = vset.pattern.permute.xlu1 %v5603_v24 }
 0x37f   :  { %v4775_v5 = vpop.permute.xlu1 %1159 }
 0x380   :  { %5604 = vst [vmem:[#allocation52_spill] sm:$0xff] %v4775_v5  ;;  %v1623_v5 = vmul.f32 %v1617_v57, %v4312_v60 }
 0x381   :  { %1775 = vrot.lane.b32.xlu1 %v1771_v27, %s3383_s13  ;;  %v4795_v27 = vpop.permute.xlu0 %1736 }
 0x382   :  { %5608 = vst [vmem:[#allocation54_spill] sm:$0xff] %v4795_v27  ;;  %v1891_v27 = vmul.f32 %v4400_v9, %v4440_v35 }
 0x383   :  { %v4782_v62 = vpop.permute.xlu1 %1199 }
 0x385   :  { %1795 = vrot.lane.b32.xlu1 %v1791_v45, %s3383_s13  ;;  %v1812_v45 = vmul.f32 %v4367_v52, %v4413_v16 }
 0x387   :  { %v4789_v23 = vpop.permute.xlu1 %1219 }
 0x389   :  { %2110 = vperm.xlu1 %3267, %v4604_v15  }
 0x38b   :  { %v1537_v24 = vpop.permute.xlu1 %1536 }
 0x38c   :  { %v1543_v11 = vmul.f32 %v1537_v24, %v4312_v60  ;;  %v4809_v24 = vpop.permute.xlu0 %1447 }
 0x38d   :  { %1815 = vrot.lane.b32.xlu1 %v1811_v6, %s3383_s13  ;;  %5610 = vst [vmem:[#allocation55_spill] sm:$0xff] %v4809_v24 }
 0x38e   :  { %1547 = vrot.lane.b32.xlu0 %v1543_v11, %s3385_s0  ;;  %3270 = vset.pattern.permute.xlu1 %v5609_v41 }
 0x38f   :  { %v4802_v21 = vpop.permute.xlu1 %1239 }
 0x390   :  { %v4816_v52 = vpop.permute.xlu0 %1487 }
 0x391   :  { %1817 = vrot.lane.b32.xlu1 %v1812_v45, %s3383_s13 }
 0x392   :  { %1627 = vrot.lane.b32.xlu0 %v1623_v5, %s3386_s15  ;;  %v1871_v5 = vmul.f32 %v4388_v31, %v4440_v35  ;;  %v5616_v31 = vmov 24  }
 0x393   :  { %v4811_v6 = vpop.permute.xlu1 %1241 }
 0x394   :  { %5611 = vst [vmem:[#allocation56_spill] sm:$0xff] %v4811_v6  ;;  %v4825_v41 = vpop.permute.xlu0 %1507 }
 0x395   :  { %1857 = vrot.lane.b32.xlu1 %v1852_v48, %s3384_s14  ;;  %5615 = vst [vmem:[#allocation59_spill] sm:$0xff] %v4825_v41 }
 0x397   :  { %v4814_v11 = vpop.permute.xlu1 %1281 }
 0x398   :  { %5612 = vst [vmem:[#allocation57_spill] sm:$0xff] %v4814_v11  ;;  %v4834_v6 = vpop.permute.xlu0 %1824  ;;  %v1932_v11 = vmul.f32 %v4424_v55, %v4413_v16  ;;  %v2012_v55 = vmul.f32 %v4469_v44, %v4413_v16 }
 0x399   :  { %2160 = vperm.xlu1 %3270, %v4635_v49  }
 0x39b   :  { %v4819_v57 = vpop.permute.xlu1 %1301 }
 0x39c   :  { %5613 = vst [vmem:[#allocation58_spill] sm:$0xff] %v4819_v57  ;;  %v4845_v24 = vpop.permute.xlu0 %1529 }
 0x39d   :  { %1875 = vrot.lane.b32.xlu1 %v1871_v5, %s3384_s14  ;;  %v1892_v5 = vmul.f32 %v4408_v36, %v4413_v16  ;;  %5617 = vst [vmem:[#allocation60_spill] sm:$0xff] %v4845_v24  ;;  %v1972_v36 = vmul.f32 %v4457_v1, %v4413_v16  ;;  %v2052_v1 = vmul.f32 %v4494_v43, %v4413_v16  ;;  %v5623_v43 = vmov 29  }
 0x39e   :  { %3271 = vset.pattern.permute.xlu1 %v5614_v33 }
 0x39f   :  { %v4827_v45 = vpop.permute.xlu1 %1620 }
 0x3a1   :  { %2202 = vperm.xlu1 %3271, %v4604_v15  }
 0x3a3   :  { %v4830_v48 = vpop.permute.xlu1 %1319 }
 0x3a5   :  { %1895 = vrot.lane.b32.xlu1 %v1891_v27, %s3384_s14  ;;  %v1952_v27 = vmul.f32 %v4276_v29, %v4413_v16 }
 0x3a6   :  { %3274 = vset.pattern.permute.xlu1 %v5616_v31  ;;  %v4854_v31 = vpop.permute.xlu0 %1569 }
 0x3a7   :  { %v4840_v57 = vpop.permute.xlu1 %1708  ;;  %5619 = vst [vmem:[#allocation62_spill] sm:$0xff] %v4854_v31 }
 0x3a9   :  { %1897 = vrot.lane.b32.xlu1 %v1892_v5, %s3384_s14 }
 0x3ab   :  { %v4847_v41 = vpop.permute.xlu1 %1407 }
 0x3ad   :  { %1937 = vrot.lane.b32.xlu1 %v1932_v11, %s3385_s0  ;;  %v4864_v11 = vpop.permute.xlu0 %1589 }
 0x3ae   :  { %5621 = vst [vmem:[#allocation64_spill] sm:$0xff] %v4864_v11  ;;  %v5625_v11 = vmov 34  }
 0x3af   :  { %v4850_v9 = vpop.permute.xlu1 %1409 }
 0x3b0   :  { %5618 = vst [vmem:[#allocation61_spill] sm:$0xff] %v4850_v9 }
 0x3b1   :  { %1957 = vrot.lane.b32.xlu1 %v1952_v27, %s3385_s0  ;;  %v2032_v27 = vmul.f32 %v4300_v32, %v4413_v16  ;;  %v1909_v31 = vpop.permute.xlu0 %1908 }
 0x3b3   :  { %v4859_v5 = vpop.permute.xlu1 %1724 }
 0x3b4   :  { %5620 = vst [vmem:[#allocation63_spill] sm:$0xff] %v4859_v5 }
 0x3b5   :  { %1977 = vrot.lane.b32.xlu1 %v1972_v36, %s3385_s0  ;;  %v4878_v5 = vpop.permute.xlu0 %1647 }
 0x3b7   :  { %v4866_v24 = vpop.permute.xlu1 %1427 }
 0x3b9   :  { %2017 = vrot.lane.b32.xlu1 %v2012_v55, %s3386_s15 }
 0x3bb   :  { %v4869_v29 = vpop.permute.xlu1 %1732 }
 0x3bd   :  { %2037 = vrot.lane.b32.xlu1 %v2032_v27, %s3386_s15  ;;  %v4887_v27 = vpop.permute.xlu0 %1667 }
 0x3c0   :  { %v1745_v36 = vpop.permute.xlu1 %1744 }
 0x3c1   :  { %v1751_v44 = vmul.f32 %v1745_v36, %v4440_v35  ;;  %2057 = vrot.lane.b32.xlu1 %v2052_v1, %s3386_s15  ;;  %v647_v1 = vmul.f32 %v4514_v56, %v4056_v28 }
 0x3c3   :  { %1755 = vrot.lane.b32.xlu0 %v1751_v44, %s3383_s13  ;;  %v4897_v44 = vpop.permute.xlu0 %1984 }
 0x3c4   :  { %v4881_v55 = vpop.permute.xlu1 %1748 }
 0x3c5   :  { %604 = vperm.xlu1 %3274, %v4635_v49  }
 0x3c7   :  { %2064 = vperm.xlu0 %3281, %v4604_v15   ;;  %v4907_v56 = vpop.permute.xlu0 %1689 }
 0x3c8   :  { %v4885_v32 = vpop.permute.xlu1 %1449 }
 0x3c9   :  { %5622 = vst [vmem:[#allocation65_spill] sm:$0xff] %v4885_v32  ;;  %3275 = vset.pattern.permute.xlu1 %v5623_v43  ;;  %v648_v32 = vmul.f32 %v4324_v59, %v4037_v58 }
 0x3ca   :  { %960 = vperm.xlu1 %3275, %v4604_v15  }
 0x3cb   :  { %3298 = vset.pattern.permute.xlu0 %v5614_v33  ;;  %v728_v33 = vmul.f32 %v4351_v22, %v4037_v58  ;;  %v4920_v22 = vpop.permute.xlu0 %1777 }
 0x3cc   :  { %v4894_v36 = vpop.permute.xlu1 %1489 }
 0x3cd   :  { %5624 = vst [vmem:[#allocation66_spill] sm:$0xff] %v4894_v36 }
 0x3ce   :  { %651 = vrot.lane.b32.xlu1 %v647_v1, %s3383_s13  ;;  %v1912_v1 = vmul.f32 %v1909_v31, %v4413_v16 }
 0x3cf   :  { %3278 = vset.pattern.permute.xlu1 %v5625_v11  ;;  %v808_v11 = vmul.f32 %v4554_v37, %v4037_v58 }
 0x3d0   :  { %v4902_v9 = vpop.permute.xlu1 %1509 }
 0x3d2   :  { %653 = vrot.lane.b32.xlu1 %v648_v32, %s3383_s13  ;;  %v617_v32 = vmul.f32 %v4316_v8, %v4056_v28  ;;  %v4932_v8 = vpop.permute.xlu0 %1797 }
 0x3d4   :  { %v1829_v43 = vpop.permute.xlu1 %1828 }
 0x3d5   :  { %v1832_v36 = vmul.f32 %v1829_v43, %v4413_v16 }
 0x3d6   :  { %733 = vrot.lane.b32.xlu1 %v728_v33, %s3384_s14  ;;  %v888_v33 = vmul.f32 %v4565_v50, %v4037_v58 }
 0x3d7   :  { %1837 = vrot.lane.b32.xlu0 %v1832_v36, %s3384_s14  ;;  %v677_v36 = vadd.f32 %v4580_v14, %v617_v32  ;;  %v4942_v32 = vpop.permute.xlu0 %2114 }
 0x3d8   :  { %v4914_v59 = vpop.permute.xlu1 %1527 }
 0x3d9   :  { %v757_v37 = vadd.f32 %v4444_v40, %v677_v36  ;;  %v5626_v40 = vmov 39  }
 0x3da   :  { %813 = vrot.lane.b32.xlu1 %v808_v11, %s3385_s0 }
 0x3db   :  { %1917 = vrot.lane.b32.xlu0 %v1912_v1, %s3385_s0  ;;  %v837_v11 = vadd.f32 %v4654_v53, %v757_v37  ;;  %v1015_v1 = vmul.f32 %v4609_v0, %v4189_v61  ;;  %v979_v53 = vmul.f32 %v4574_v13, %v4189_v61  ;;  %v627_v0 = vmul.f32 %v4523_v10, %v4056_v28 }
 0x3dc   :  { %v4926_v43 = vpop.permute.xlu1 %1567  ;;  %v1255_v10 = vmul.f32 %v4542_v2, %v4189_v61  ;;  %v991_v2 = vmul.f32 %v4384_v19, %v4189_v61 }
 0x3dd   :  { %v917_v14 = vadd.f32 %v4521_v46, %v837_v11  ;;  %v697_v46 = vadd.f32 %v4594_v51, %v627_v0  ;;  %v1175_v11 = vmul.f32 %v4665_v34, %v4189_v61 }
 0x3de   :  { %893 = vrot.lane.b32.xlu1 %v888_v33, %s3386_s15  ;;  %v1095_v33 = vmul.f32 %v4465_v12, %v4189_v61  ;;  %v4960_v12 = vpop.permute.xlu0 %1855 }
 0x3df   :  { %v981_v37 = vadd.f32 %v979_v53, %v917_v14  ;;  %v777_v13 = vadd.f32 %v4454_v4, %v697_v46 }
 0x3e0   :  { %v4930_v31 = vpop.permute.xlu1 %1587 }
 0x3e1   :  { %v857_v51 = vadd.f32 %v4662_v30, %v777_v13  ;;  %v1347_v30 = vmul.f32 %v4701_v54, %v4312_v60  ;;  %v5628_v54 = vmov 104  }
 0x3e2   :  { %1332 = vperm.xlu1 %3278, %v4635_v49  }
 0x3e3   :  { %v937_v0 = vadd.f32 %v4532_v47, %v857_v51 }
 0x3e4   :  { %v4938_v50 = vpop.permute.xlu1 %1904 }
 0x3e5   :  { %v993_v47 = vadd.f32 %v991_v2, %v937_v0  ;;  %v1464_v0 = vmul.f32 %v4771_v25, %v4294_v63 }
 0x3e6   :  { %1019 = vrot.lane.b32.xlu1 %v1015_v1, %s3383_s13  ;;  %v1045_v1 = vadd.f32 %v4710_v38, %v981_v37  ;;  %v4972_v38 = vpop.permute.xlu0 %2156  ;;  %v5627_v37 = vld [vmem:[#allocation30_spill] sm:$0xff] }
 0x3e7   :  { %3279 = vset.pattern.permute.xlu1 %v5626_v40  ;;  %v637_v46 = vmul.f32 %v5627_v37, %v4056_v28 }
 0x3e8   :  { %v4949_v36 = vpop.permute.xlu1 %1607  ;;  %v1125_v14 = vadd.f32 %v4673_v7, %v1045_v1  ;;  %v1383_v7 = vmul.f32 %v4741_v3, %v4312_v60  ;;  %v1384_v3 = vmul.f32 %v4749_v42, %v4294_v63 }
 0x3e9   :  { %v717_v19 = vadd.f32 %v4430_v39, %v637_v46  ;;  %v5633_v46 = vld [vmem:[#allocation19_spill] sm:$0xff] }
 0x3ea   :  { %1099 = vrot.lane.b32.xlu1 %v1095_v33, %s3384_s14  ;;  %v1205_v34 = vadd.f32 %v4782_v62, %v1125_v14  ;;  %v1544_v25 = vmul.f32 %v5633_v46, %v4294_v63  ;;  %v5643_v46 = vld [vmem:[#allocation18_spill] sm:$0xff] }
 0x3eb   :  { %v797_v14 = vadd.f32 %v4646_v18, %v717_v19 }
 0x3ec   :  { %v4958_v40 = vpop.permute.xlu1 %1609  ;;  %v1285_v4 = vadd.f32 %v4736_v17, %v1205_v34 }
 0x3ed   :  { %v877_v51 = vadd.f32 %v4668_v20, %v797_v14  ;;  %v5632_v20 = vld [vmem:[#allocation11_spill] sm:$0xff] }
 0x3ee   :  { %1179 = vrot.lane.b32.xlu1 %v1175_v11, %s3385_s0  ;;  %v4987_v11 = vpop.permute.xlu0 %1877  ;;  %v1349_v1 = vadd.f32 %v1347_v30, %v1285_v4  ;;  %v5631_v30 = vld [vmem:[#allocation46_spill] sm:$0xff]  ;;  %v1003_v37 = vmul.f32 %v5632_v20, %v4189_v61 }
 0x3f0   :  { %v4967_v33 = vpop.permute.xlu1 %1649  ;;  %v1413_v13 = vadd.f32 %v4847_v41, %v1349_v1  ;;  %v5630_v41 = vld [vmem:[#allocation38_spill] sm:$0xff]  ;;  %v5635_v1 = vld [vmem:[#allocation32_spill] sm:$0xff] }
 0x3f1   :  { %v628_v2 = vmul.f32 %v5630_v41, %v4037_v58 }
 0x3f2   :  { %1259 = vrot.lane.b32.xlu1 %v1255_v10, %s3386_s15  ;;  %v5003_v39 = vpop.permute.xlu0 %2206  ;;  %v1493_v4 = vadd.f32 %v4816_v52, %v1413_v13  ;;  %v5634_v52 = vld [vmem:[#allocation37_spill] sm:$0xff]  ;;  %v5637_v13 = vld [vmem:[#allocation12_spill] sm:$0xff] }
 0x3f3   :  { %v698_v19 = vadd.f32 %v5635_v1, %v628_v2  ;;  %v1359_v14 = vmul.f32 %v5637_v13, %v4312_v60  ;;  %v1624_v2 = vmul.f32 %v4827_v45, %v4294_v63  ;;  %v5644_v1 = vld [vmem:[#allocation36_spill] sm:$0xff] }
 0x3f4   :  { %v4974_v53 = vpop.permute.xlu1 %1669 }
 0x3f6   :  { %1696 = vperm.xlu1 %3279, %v4604_v15   ;;  %v1065_v15 = vadd.f32 %v4729_v26, %v993_v47  ;;  %v5629_v26 = vld [vmem:[#allocation44_spill] sm:$0xff] }
 0x3f8   :  { %v1989_v62 = vpop.permute.xlu1 %1988  ;;  %v1145_v34 = vadd.f32 %v5629_v26, %v1065_v15  ;;  %v1936_v15 = vpop.permute.xlu0 %1935 }
 0x3f9   :  { %v1992_v17 = vmul.f32 %v1989_v62, %v4413_v16  ;;  %v1573_v62 = vadd.f32 %v4926_v43, %v1493_v4  ;;  %v5640_v4 = vld [vmem:[#allocation39_spill] sm:$0xff] }
 0x3fa   :  { %1387 = vrot.lane.b32.xlu1 %v1383_v7, %s3383_s13  ;;  %v957_v7 = vadd.f32 %v5631_v30, %v877_v51  ;;  %v1225_v18 = vadd.f32 %v4789_v23, %v1145_v34  ;;  %v5636_v23 = vld [vmem:[#allocation28_spill] sm:$0xff]  ;;  %v5638_v51 = vld [vmem:[#allocation13_spill] sm:$0xff]  ;;  %v5639_v34 = vld [vmem:[#allocation42_spill] sm:$0xff]  ;;  %v638_v41 = vmul.f32 %v5640_v4, %v4037_v58  ;;  %v1715_v30 = vmul.f32 %v4840_v57, %v4440_v35 }
 0x3fb   :  { %1997 = vrot.lane.b32.xlu0 %v1992_v17, %s3386_s15  ;;  %3282 = vset.pattern.permute.xlu1 %v5628_v54  ;;  %v618_v17 = vmul.f32 %v5634_v52, %v4037_v58  ;;  %v1653_v43 = vadd.f32 %v4878_v5, %v1573_v62  ;;  %v5641_v5 = vld [vmem:[#allocation14_spill] sm:$0xff]  ;;  %v5642_v62 = vld [vmem:[#allocation43_spill] sm:$0xff]  ;;  %v1752_v57 = vmul.f32 %v4881_v55, %v4413_v16 }
 0x3fc   :  { %v4998_v10 = vpop.permute.xlu1 %1687  ;;  %v1005_v54 = vadd.f32 %v1003_v37, %v957_v7  ;;  %v5648_v4 = vld [vmem:[#allocation34_spill] sm:$0xff] }
 0x3fd   :  { %v678_v26 = vadd.f32 %v5638_v51, %v618_v17  ;;  %v1717_v52 = vadd.f32 %v1715_v30, %v1653_v43  ;;  %v5041_v17 = vpop.permute.xlu0 %1955 }
 0x3fe   :  { %1389 = vrot.lane.b32.xlu1 %v1384_v3, %s3383_s13  ;;  %v1305_v3 = vadd.f32 %v5636_v23, %v1225_v18  ;;  %v1085_v20 = vadd.f32 %v5642_v62, %v1005_v54  ;;  %v5645_v23 = vld [vmem:[#allocation52_spill] sm:$0xff]  ;;  %v5646_v54 = vld [vmem:[#allocation35_spill] sm:$0xff] }
 0x3ff   :  { %v758_v18 = vadd.f32 %v5641_v5, %v678_v26 }
 0x400   :  { %v1776_v42 = vpop.permute.xlu1 %1775  ;;  %v1361_v37 = vadd.f32 %v1359_v14, %v1305_v3  ;;  %v1165_v45 = vadd.f32 %v5645_v23, %v1085_v20  ;;  %v5647_v14 = vld [vmem:[#allocation45_spill] sm:$0xff]  ;;  %v5653_v20 = vld [vmem:[#allocation15_spill] sm:$0xff] }
 0x401   :  { %v1781_v51 = vadd.f32 %v1776_v42, %v1717_v52  ;;  %v838_v3 = vadd.f32 %v5646_v54, %v758_v18  ;;  %v5652_v42 = vld [vmem:[#allocation59_spill] sm:$0xff] }
 0x402   :  { %1469 = vrot.lane.b32.xlu1 %v1464_v0, %s3384_s14  ;;  %v778_v0 = vadd.f32 %v5639_v34, %v698_v19  ;;  %v1433_v13 = vadd.f32 %v4866_v24, %v1361_v37  ;;  %v1245_v34 = vadd.f32 %v4802_v21, %v1165_v45  ;;  %v5651_v24 = vld [vmem:[#allocation21_spill] sm:$0xff]  ;;  %v5654_v21 = vld [vmem:[#allocation31_spill] sm:$0xff] }
 0x403   :  { %v918_v5 = vadd.f32 %v5651_v24, %v838_v3  ;;  %v1861_v18 = vadd.f32 %v4960_v12, %v1781_v51  ;;  %v1831_v12 = vmul.f32 %v4834_v6, %v4440_v35  ;;  %v5661_v24 = vld [vmem:[#allocation49_spill] sm:$0xff] }
 0x404   :  { %v5019_v47 = vpop.permute.xlu1 %1795  ;;  %v858_v19 = vadd.f32 %v5644_v1, %v778_v0  ;;  %v5649_v0 = vld [vmem:[#allocation23_spill] sm:$0xff]  ;;  %v1325_v55 = vadd.f32 %v4830_v48, %v1245_v34  ;;  %v1513_v62 = vadd.f32 %v5652_v42, %v1433_v13  ;;  %v5066_v1 = vpop.permute.xlu0 %1975  ;;  %v5658_v34 = vld [vmem:[#allocation16_spill] sm:$0xff] }
 0x405   :  { %v1941_v54 = vadd.f32 %v1936_v15, %v1861_v18  ;;  %v5662_v15 = vld [vmem:[#allocation50_spill] sm:$0xff]  ;;  %v5663_v42 = vld [vmem:[#allocation55_spill] sm:$0xff] }
 0x406   :  { %1549 = vrot.lane.b32.xlu1 %v1544_v25, %s3385_s0  ;;  %v718_v25 = vadd.f32 %v5643_v46, %v638_v41  ;;  %v938_v43 = vadd.f32 %v5647_v14, %v858_v19  ;;  %v5655_v19 = vld [vmem:[#allocation27_spill] sm:$0xff]  ;;  %v1593_v45 = vadd.f32 %v4930_v31, %v1513_v62  ;;  %v5659_v31 = vld [vmem:[#allocation33_spill] sm:$0xff] }
 0x407   :  { %v1371_v23 = vmul.f32 %v5655_v19, %v4312_v60  ;;  %v5657_v14 = vld [vmem:[#allocation47_spill] sm:$0xff] }
 0x408   :  { %v2111_v7 = vpop.permute.xlu1 %2110  ;;  %v798_v41 = vadd.f32 %v5648_v4, %v718_v25  ;;  %v980_v25 = vmul.f32 %v5654_v21, %v5649_v0  ;;  %v2016_v6 = vpop.permute.xlu0 %2015 }
 0x409   :  { %v1373_v13 = vadd.f32 %v1371_v23, %v1325_v55  ;;  %v5665_v23 = vld [vmem:[#allocation17_spill] sm:$0xff] }
 0x40a   :  { %1629 = vrot.lane.b32.xlu1 %v1624_v2, %s3386_s15  ;;  %v5650_v2 = vld [vmem:[#allocation10_spill] sm:$0xff]  ;;  %v878_v37 = vadd.f32 %v5653_v20, %v798_v41  ;;  %v982_v48 = vadd.f32 %v980_v25, %v918_v5  ;;  %v1673_v41 = vadd.f32 %v4887_v27, %v1593_v45  ;;  %v2021_v27 = vadd.f32 %v2016_v6, %v1941_v54 }
 0x40b   :  { %v992_v30 = vmul.f32 %v5650_v2, %v5649_v0  ;;  %v1004_v2 = vmul.f32 %v5659_v31, %v5649_v0  ;;  %v1453_v62 = vadd.f32 %v5663_v42, %v1373_v13  ;;  %v5669_v31 = vld [vmem:[#allocation25_spill] sm:$0xff] }
 0x40c   :  { %v5048_v26 = vpop.permute.xlu1 %1815  ;;  %v2036_v6 = vpop.permute.xlu0 %2035 }
 0x40d   :  { %v994_v52 = vadd.f32 %v992_v30, %v938_v43  ;;  %v1046_v43 = vadd.f32 %v5657_v14, %v982_v48  ;;  %v1533_v21 = vadd.f32 %v4914_v59, %v1453_v62  ;;  %v5666_v48 = vld [vmem:[#allocation48_spill] sm:$0xff]  ;;  %v5667_v14 = vld [vmem:[#allocation57_spill] sm:$0xff] }
 0x40e   :  { %1757 = vrot.lane.b32.xlu1 %v1752_v57, %s3383_s13  ;;  %v5656_v57 = vld [vmem:[#allocation40_spill] sm:$0xff] }
 0x40f   :  { %v958_v51 = vadd.f32 %v5656_v57, %v878_v37  ;;  %v1066_v4 = vadd.f32 %v5658_v34, %v994_v52  ;;  %v1126_v5 = vadd.f32 %v5661_v24, %v1046_v43  ;;  %v1911_v37 = vmul.f32 %v4938_v50, %v4440_v35  ;;  %v5664_v52 = vld [vmem:[#allocation29_spill] sm:$0xff]  ;;  %v5668_v43 = vld [vmem:[#allocation58_spill] sm:$0xff]  ;;  %v5672_v24 = vld [vmem:[#allocation56_spill] sm:$0xff] }
 0x410   :  { %v5062_v46 = vpop.permute.xlu1 %1817  ;;  %v1613_v13 = vadd.f32 %v4949_v36, %v1533_v21  ;;  %v1991_v50 = vmul.f32 %v4897_v44, %v4440_v35  ;;  %v5670_v36 = vld [vmem:[#allocation41_spill] sm:$0xff]  ;;  %v1739_v44 = vmul.f32 %v4869_v29, %v4440_v35 }
 0x411   :  { %v1146_v55 = vadd.f32 %v5662_v15, %v1066_v4  ;;  %v1006_v20 = vadd.f32 %v1004_v2, %v958_v51  ;;  %v1206_v45 = vadd.f32 %v5665_v23, %v1126_v5  ;;  %v2117_v51 = vadd.f32 %v2111_v7, %v2021_v27 }
 0x412   :  { %2068 = vperm.xlu1 %3282, %v4635_v49   ;;  %v5660_v49 = vld [vmem:[#allocation24_spill] sm:$0xff]  ;;  %v1693_v4 = vadd.f32 %v4998_v10, %v1613_v13 }
 0x413   :  { %v1727_v30 = vmul.f32 %v5660_v49, %v4440_v35  ;;  %v1086_v19 = vadd.f32 %v5664_v52, %v1006_v20  ;;  %v1286_v59 = vadd.f32 %v5667_v14, %v1206_v45  ;;  %v1348_v49 = vmul.f32 %v5670_v36, %v4294_v63  ;;  %v5676_v45 = vld [vmem:[#allocation53_spill] sm:$0xff] }
 0x414   :  { %v5075_v3 = vpop.permute.xlu1 %1857  ;;  %v5114_v10 = vmax.f32 %v2117_v51, 0.0  ;;  %v1741_v62 = vadd.f32 %v1739_v44, %v1693_v4  ;;  %v5679_v4 = vld [vmem:[#allocation65_spill] sm:$0xff] }
 0x415   :  { %v1729_v25 = vadd.f32 %v1727_v30, %v1673_v41  ;;  %v1166_v2 = vadd.f32 %v5669_v31, %v1086_v19  ;;  %v1350_v42 = vadd.f32 %v1348_v49, %v1286_v59  ;;  %v5675_v19 = vld [vmem:[#allocation66_spill] sm:$0xff] }
 0x416   :  { %1835 = vrot.lane.b32.xlu1 %v1831_v12, %s3384_s14  ;;  %v1226_v12 = vadd.f32 %v5666_v48, %v1146_v55  ;;  %v1821_v21 = vadd.f32 %v5048_v26, %v1741_v62  ;;  %v5678_v59 = vld [vmem:[#allocation62_spill] sm:$0xff] }
 0x417   :  { %v1801_v57 = vadd.f32 %v5019_v47, %v1729_v25  ;;  %v5671_v47 = vld [vmem:[#allocation26_spill] sm:$0xff]  ;;  %v1246_v5 = vadd.f32 %v5672_v24, %v1166_v2  ;;  %v5680_v2 = vld [vmem:[#allocation64_spill] sm:$0xff] }
 0x418   :  { %v5090_v18 = vpop.permute.xlu1 %2160  ;;  %v1306_v34 = vadd.f32 %v5668_v43, %v1226_v12  ;;  %v1360_v30 = vmul.f32 %v5671_v47, %v4294_v63  ;;  %v5683_v24 = vld [vmem:[#allocation60_spill] sm:$0xff] }
 0x41a   :  { %1915 = vrot.lane.b32.xlu1 %v1911_v37, %s3385_s0  ;;  %v1362_v55 = vadd.f32 %v1360_v30, %v1306_v34  ;;  %v5673_v37 = vld [vmem:[#allocation61_spill] sm:$0xff] }
 0x41b   :  { %v1414_v27 = vadd.f32 %v5673_v37, %v1350_v42 }
 0x41c   :  { %v1876_v54 = vpop.permute.xlu1 %1875  ;;  %v1434_v48 = vadd.f32 %v5676_v45, %v1362_v55 }
 0x41d   :  { %v1881_v41 = vadd.f32 %v1876_v54, %v1801_v57  ;;  %v1494_v23 = vadd.f32 %v5675_v19, %v1414_v27  ;;  %v5677_v57 = vld [vmem:[#allocation20_spill] sm:$0xff] }
 0x41e   :  { %1995 = vrot.lane.b32.xlu1 %v1991_v50, %s3386_s15  ;;  %v1372_v50 = vmul.f32 %v5677_v57, %v4294_v63  ;;  %v1514_v51 = vadd.f32 %v4902_v9, %v1434_v48 }
 0x41f   :  { %v1961_v7 = vadd.f32 %v5041_v17, %v1881_v41  ;;  %v5674_v17 = vld [vmem:[#allocation22_spill] sm:$0xff]  ;;  %v1574_v43 = vadd.f32 %v5678_v59, %v1494_v23 }
 0x420   :  { %v2203_v15 = vpop.permute.xlu1 %2202  ;;  %v1326_v25 = vadd.f32 %v5674_v17, %v1246_v5  ;;  %v1594_v36 = vadd.f32 %v5680_v2, %v1514_v51 }
 0x421   :  { %v2041_v20 = vadd.f32 %v2036_v6, %v1961_v7  ;;  %v1654_v31 = vadd.f32 %v4967_v33, %v1574_v43  ;;  %v5682_v7 = vld [vmem:[#allocation63_spill] sm:$0xff] }
 0x422   :  { %2123 = vrot.lane.b32.xlu1 %v5114_v10, %s3383_s13  ;;  %v1374_v14 = vadd.f32 %v1372_v50, %v1326_v25  ;;  %v1674_v30 = vadd.f32 %v4974_v53, %v1594_v36  ;;  %v1728_v6 = vmul.f32 %v5682_v7, %v4413_v16 }
 0x423   :  { %v2163_v29 = vadd.f32 %v4972_v38, %v2041_v20  ;;  %v2056_v38 = vpop.permute.xlu0 %2055 }
 0x424   :  { %v1896_v52 = vpop.permute.xlu1 %1895  ;;  %v1454_v41 = vadd.f32 %v5679_v4, %v1374_v14  ;;  %v1730_v42 = vadd.f32 %v1728_v6, %v1674_v30 }
 0x425   :  { %v5124_v12 = vmax.f32 %v2163_v29, 0.0  ;;  %v1901_v13 = vadd.f32 %v1896_v52, %v1821_v21  ;;  %v5684_v21 = vld [vmem:[#allocation54_spill] sm:$0xff] }
 0x426   :  { %v1534_v5 = vadd.f32 %v5683_v24, %v1454_v41  ;;  %v1802_v27 = vadd.f32 %v4932_v8, %v1730_v42  ;;  %v1740_v29 = vmul.f32 %v5684_v21, %v4413_v16 }
 0x427   :  { %v1981_v54 = vadd.f32 %v5066_v1, %v1901_v13  ;;  %2169 = vrot.lane.b32.xlu1 %v5124_v12, %s3383_s13  ;;  %v5681_v1 = vld [vmem:[#allocation51_spill] sm:$0xff]  ;;  %v601_v25 = vpop.permute.xlu0 %600 }
 0x428   :  { %v1898_v26 = vpop.permute.xlu1 %1897  ;;  %v1716_v47 = vmul.f32 %v5681_v1, %v4413_v16  ;;  %v1614_v55 = vadd.f32 %v4958_v40, %v1534_v5  ;;  %v1882_v52 = vadd.f32 %v4987_v11, %v1802_v27  ;;  %v607_v30 = vmul.f32 %v601_v25, %v4056_v28 }
 0x429   :  { %v2061_v34 = vadd.f32 %v2056_v38, %v1981_v54 }
 0x42a   :  { %v1718_v33 = vadd.f32 %v1716_v47, %v1654_v31  ;;  %v1694_v20 = vadd.f32 %v4907_v56, %v1614_v55 }
 0x42b   :  { %v2209_v49 = vadd.f32 %v2203_v15, %v2061_v34  ;;  %2131 = vrot.lane.b32.xlu1 %v5114_v10, %s3384_s14  ;;  %v965_v57 = vpop.permute.xlu0 %964 }
 0x42c   :  { %v1938_v9 = vpop.permute.xlu1 %1937  ;;  %v1782_v62 = vadd.f32 %v4920_v22, %v1718_v33  ;;  %v1742_v22 = vadd.f32 %v1740_v29, %v1694_v20  ;;  %v968_v20 = vmul.f32 %v965_v57, %v5649_v0 }
 0x42d   :  { %v5141_v44 = vmax.f32 %v2209_v49, 0.0 }
 0x42e   :  { %v1862_v37 = vadd.f32 %v5075_v3, %v1782_v62  ;;  %v1822_v23 = vadd.f32 %v5062_v46, %v1742_v22 }
 0x42f   :  { %2215 = vrot.lane.b32.xlu1 %v5141_v44, %s3383_s13  ;;  %v732_v38 = vpop.permute.xlu0 %731 }
 0x430   :  { %v1958_v15 = vpop.permute.xlu1 %1957  ;;  %v1942_v17 = vadd.f32 %v1938_v9, %v1862_v37  ;;  %v1902_v45 = vadd.f32 %v1898_v26, %v1822_v23 }
 0x431   :  { %v1962_v56 = vadd.f32 %v1958_v15, %v1882_v52 }
 0x433   :  { %2177 = vrot.lane.b32.xlu1 %v5124_v12, %s3384_s14  ;;  %v812_v59 = vpop.permute.xlu0 %811 }
 0x434   :  { %v1978_v53 = vpop.permute.xlu1 %1977 }
 0x435   :  { %v1982_v50 = vadd.f32 %v1978_v53, %v1902_v45 }
 0x437   :  { %2139 = vrot.lane.b32.xlu1 %v5114_v10, %s3385_s0 }
 0x438   :  { %v2018_v40 = vpop.permute.xlu1 %2017 }
 0x439   :  { %v2022_v19 = vadd.f32 %v2018_v40, %v1942_v17 }
 0x43b   :  { %v2118_v3 = vadd.f32 %v4942_v32, %v2022_v19  ;;  %2223 = vrot.lane.b32.xlu1 %v5141_v44, %s3384_s14 }
 0x43c   :  { %v2038_v8 = vpop.permute.xlu1 %2037 }
 0x43d   :  { %v5164_v48 = vmax.f32 %v2118_v3, 0.0  ;;  %v2042_v13 = vadd.f32 %v2038_v8, %v1962_v56 }
 0x43f   :  { %v2164_v51 = vadd.f32 %v5090_v18, %v2042_v13  ;;  %2185 = vrot.lane.b32.xlu1 %v5124_v12, %s3385_s0  ;;  %2125 = vrot.lane.b32.xlu0 %v5164_v48, %s3383_s13 }
 0x440   :  { %v2058_v11 = vpop.permute.xlu1 %2057 }
 0x441   :  { %v5171_v32 = vmax.f32 %v2164_v51, 0.0  ;;  %v2062_v46 = vadd.f32 %v2058_v11, %v1982_v50 }
 0x443   :  { %2147 = vrot.lane.b32.xlu1 %v5114_v10, %s3386_s15  ;;  %2171 = vrot.lane.b32.xlu0 %v5171_v32, %s3383_s13  ;;  %v2210_v18 = vadd.f32 %v5003_v39, %v2062_v46  ;;  %v892_v39 = vpop.permute.xlu0 %891 }
 0x444   :  { %v605_v54 = vpop.permute.xlu1 %604 }
 0x445   :  { %v5182_v26 = vmax.f32 %v2210_v18, 0.0  ;;  %v608_v1 = vmul.f32 %v605_v54, %v4037_v58 }
 0x447   :  { %2231 = vrot.lane.b32.xlu1 %v5141_v44, %s3385_s0  ;;  %2133 = vrot.lane.b32.xlu0 %v5164_v48, %s3384_s14  ;;  %v1329_v4 = vpop.permute.xlu0 %1328 }
 0x449   :  { %v961_v14 = vpop.permute.xlu1 %960 }
 0x44a   :  { %v967_v22 = vmul.f32 %v961_v14, %v4189_v61 }
 0x44b   :  { %2193 = vrot.lane.b32.xlu1 %v5124_v12, %s3386_s15  ;;  %2217 = vrot.lane.b32.xlu0 %v5182_v26, %s3383_s13  ;;  %v1022_v31 = vpop.permute.xlu0 %1021 }
 0x44d   :  { %v652_v43 = vpop.permute.xlu1 %651 }
 0x44e   :  { %v657_v24 = vadd.f32 %v652_v43, %v607_v30 }
 0x44f   :  { %2239 = vrot.lane.b32.xlu1 %v5141_v44, %s3386_s15  ;;  %2179 = vrot.lane.b32.xlu0 %v5171_v32, %s3384_s14  ;;  %v1102_v36 = vpop.permute.xlu0 %1101 }
 0x450   :  { %v737_v42 = vadd.f32 %v732_v38, %v657_v24  ;;  %v1335_v38 = vmul.f32 %v1329_v4, %v4312_v60 }
 0x451   :  { %v654_v34 = vpop.permute.xlu1 %653 }
 0x452   :  { %v658_v7 = vadd.f32 %v654_v34, %v608_v1  ;;  %v817_v27 = vadd.f32 %v812_v59, %v737_v42 }
 0x453   :  { %2141 = vrot.lane.b32.xlu0 %v5164_v48, %s3385_s0  ;;  %v1182_v47 = vpop.permute.xlu0 %1181 }
 0x454   :  { %v897_v25 = vadd.f32 %v892_v39, %v817_v27 }
 0x455   :  { %v734_v41 = vpop.permute.xlu1 %733 }
 0x456   :  { %v738_v5 = vadd.f32 %v734_v41, %v658_v7  ;;  %v969_v56 = vadd.f32 %v967_v22, %v897_v25 }
 0x457   :  { %2225 = vrot.lane.b32.xlu0 %v5182_v26, %s3384_s14  ;;  %v1262_v33 = vpop.permute.xlu0 %1261 }
 0x459   :  { %v814_v2 = vpop.permute.xlu1 %813 }
 0x45a   :  { %v818_v15 = vadd.f32 %v814_v2, %v738_v5 }
 0x45b   :  { %2187 = vrot.lane.b32.xlu0 %v5171_v32, %s3385_s0  ;;  %v1701_v53 = vpop.permute.xlu0 %1700 }
 0x45c   :  { %v1704_v30 = vmul.f32 %v1701_v53, %v4413_v16 }
 0x45d   :  { %v894_v49 = vpop.permute.xlu1 %893 }
 0x45e   :  { %v898_v62 = vadd.f32 %v894_v49, %v818_v15 }
 0x45f   :  { %2149 = vrot.lane.b32.xlu0 %v5164_v48, %s3386_s15  ;;  %v1468_v29 = vpop.permute.xlu0 %1467 }
 0x460   :  { %v970_v21 = vadd.f32 %v968_v20, %v898_v62 }
 0x461   :  { %v1333_v9 = vpop.permute.xlu1 %1332 }
 0x462   :  { %v1026_v40 = vadd.f32 %v1022_v31, %v970_v21  ;;  %v1336_v18 = vmul.f32 %v1333_v9, %v4294_v63 }
 0x463   :  { %2233 = vrot.lane.b32.xlu0 %v5182_v26, %s3385_s0  ;;  %v1548_v52 = vpop.permute.xlu0 %1547 }
 0x464   :  { %v1106_v23 = vadd.f32 %v1102_v36, %v1026_v40 }
 0x465   :  { %v1020_v6 = vpop.permute.xlu1 %1019 }
 0x466   :  { %v1025_v3 = vadd.f32 %v1020_v6, %v969_v56  ;;  %v1186_v13 = vadd.f32 %v1182_v47, %v1106_v23 }
 0x467   :  { %2195 = vrot.lane.b32.xlu0 %v5171_v32, %s3386_s15  ;;  %v1628_v50 = vpop.permute.xlu0 %1627 }
 0x468   :  { %v1266_v46 = vadd.f32 %v1262_v33, %v1186_v13 }
 0x469   :  { %v1100_v55 = vpop.permute.xlu1 %1099 }
 0x46a   :  { %v1105_v45 = vadd.f32 %v1100_v55, %v1025_v3  ;;  %v1338_v43 = vadd.f32 %v1336_v18, %v1266_v46 }
 0x46b   :  { %2241 = vrot.lane.b32.xlu0 %v5182_v26, %s3386_s15  ;;  %v1756_v54 = vpop.permute.xlu0 %1755 }
 0x46d   :  { %v1180_v37 = vpop.permute.xlu1 %1179 }
 0x46e   :  { %v1185_v51 = vadd.f32 %v1180_v37, %v1105_v45 }
 0x46f   :  { %v2065_v39 = vpop.permute.xlu0 %2064 }
 0x471   :  { %v1260_v17 = vpop.permute.xlu1 %1259 }
 0x472   :  { %v1265_v11 = vadd.f32 %v1260_v17, %v1185_v51 }
 0x473   :  { %v1838_v1 = vpop.permute.xlu0 %1837 }
 0x474   :  { %v1337_v14 = vadd.f32 %v1335_v38, %v1265_v11 }
 0x475   :  { %v1697_v19 = vpop.permute.xlu1 %1696 }
 0x476   :  { %v1703_v42 = vmul.f32 %v1697_v19, %v4440_v35 }
 0x477   :  { %v1918_v9 = vpop.permute.xlu0 %1917 }
 0x479   :  { %v1388_v8 = vpop.permute.xlu1 %1387 }
 0x47a   :  { %v1393_v34 = vadd.f32 %v1388_v8, %v1337_v14 }
 0x47b   :  { %v1998_v20 = vpop.permute.xlu0 %1997 }
 0x47c   :  { %v1473_v36 = vadd.f32 %v1468_v29, %v1393_v34 }
 0x47d   :  { %v1390_v57 = vpop.permute.xlu1 %1389 }
 0x47e   :  { %v1394_v41 = vadd.f32 %v1390_v57, %v1338_v43  ;;  %v1553_v6 = vadd.f32 %v1548_v52, %v1473_v36 }
 0x480   :  { %v1633_v15 = vadd.f32 %v1628_v50, %v1553_v6 }
 0x481   :  { %v1470_v59 = vpop.permute.xlu1 %1469 }
 0x482   :  { %v1474_v2 = vadd.f32 %v1470_v59, %v1394_v41  ;;  %v1705_v27 = vadd.f32 %v1703_v42, %v1633_v15 }
 0x484   :  { %v1761_v53 = vadd.f32 %v1756_v54, %v1705_v27 }
 0x485   :  { %v1550_v31 = vpop.permute.xlu1 %1549 }
 0x486   :  { %v1554_v49 = vadd.f32 %v1550_v31, %v1474_v2 }
 0x489   :  { %v1630_v47 = vpop.permute.xlu1 %1629 }
 0x48a   :  { %v1634_v7 = vadd.f32 %v1630_v47, %v1554_v49 }
 0x48c   :  { %v1706_v24 = vadd.f32 %v1704_v30, %v1634_v7 }
 0x48d   :  { %v1758_v4 = vpop.permute.xlu1 %1757 }
 0x48e   :  { %v1762_v5 = vadd.f32 %v1758_v4, %v1706_v24 }
 0x490   :  { %v1842_v33 = vadd.f32 %v1838_v1, %v1762_v5 }
 0x491   :  { %v2069_v55 = vpop.permute.xlu1 %2068 }
 0x492   :  { %v1922_v62 = vadd.f32 %v1918_v9, %v1842_v33 }
 0x494   :  { %v2002_v37 = vadd.f32 %v1998_v20, %v1922_v62 }
 0x495   :  { %v1836_v21 = vpop.permute.xlu1 %1835 }
 0x496   :  { %v2072_v29 = vadd.f32 %v2069_v55, %v2002_v37  ;;  %v1841_v25 = vadd.f32 %v1836_v21, %v1761_v53  ;;  %v2326_v53 = vld [vmem:[%s5444_s5 + $0x80] sm:$0xff] }
 0x498   :  { %v5214_v17 = vmax.f32 %v2072_v29, 0.0 }
 0x499   :  { %v1916_v40 = vpop.permute.xlu1 %1915 }
 0x49a   :  { %2079 = vrot.lane.b32.xlu0 %v5214_v17, %s3383_s13  ;;  %v1921_v22 = vadd.f32 %v1916_v40, %v1841_v25 }
 0x49d   :  { %v1996_v52 = vpop.permute.xlu1 %1995 }
 0x49e   :  { %v2001_v23 = vadd.f32 %v1996_v52, %v1921_v22  ;;  %2087 = vrot.lane.b32.xlu0 %v5214_v17, %s3384_s14  ;;  %v3474_v22 = vmov 0.0|0.0  }
 0x49f   :  { %2953 = vmatprep.subr.bf16.mxu1 %v3474_v22  ;;  %2929 = vmatprep.subr.bf16.mxu0 %v3474_v22 }
 0x4a0   :  { %v2071_v19 = vadd.f32 %v2065_v39, %v2001_v23  ;;  %v3476_v23 = vmov 0.0  }
 0x4a1   :  { %v2124_v56 = vpop.permute.xlu1 %2123  ;;  %2912 = vmatprep.mubr.msk.f32.mxu1 %vm3475_vm0, %v3476_v23  ;;  %2905 = vmatprep.mubr.msk.f32.mxu0 %vm3475_vm0, %v3476_v23 }
 0x4a2   :  { %v5220_v3 = vmax.f32 %v2071_v19, 0.0  ;;  %2095 = vrot.lane.b32.xlu0 %v5214_v17, %s3385_s0  ;;  %v2129_v34 = vmax.f32 %v5114_v10, %v2124_v56  ;;  %v2311_v19 = vld [vmem:[%s5444_s5 + $0x8] sm:$0xff]  ;;  %v2312_v56 = vld [vmem:[%s5444_s5 + $0x10] sm:$0xff] }
 0x4a4   :  { %2077 = vrot.lane.b32.xlu1 %v5220_v3, %s3383_s13 }
 0x4a5   :  { %v2170_v8 = vpop.permute.xlu1 %2169 }
 0x4a6   :  { %2103 = vrot.lane.b32.xlu0 %v5214_v17, %s3386_s15  ;;  %v2175_v24 = vmax.f32 %v5124_v12, %v2170_v8 }
 0x4a8   :  { %2085 = vrot.lane.b32.xlu1 %v5220_v3, %s3384_s14  ;;  %s3477_s14 = smov 32  }
 0x4a9   :  { %v2132_v45 = vpop.permute.xlu1 %2131 }
 0x4aa   :  { %v2137_v2 = vmax.f32 %v2129_v34, %v2132_v45  ;;  %v2319_v34 = vld [vmem:[%s5444_s5 + $0x48] sm:$0xff] }
 0x4ac   :  { %2093 = vrot.lane.b32.xlu1 %v5220_v3, %s3385_s0 }
 0x4ad   :  { %v2216_v13 = vpop.permute.xlu1 %2215 }
 0x4ae   :  { %v2221_v15 = vmax.f32 %v5141_v44, %v2216_v13  ;;  %v2327_v44 = vld [vmem:[%s5444_s5 + $0x88] sm:$0xff]  ;;  %v2313_v13 = vld [vmem:[%s5444_s5 + $0x18] sm:$0xff] }
 0x4af   :  { %v5262_v52 = vpack.c.bf16 %v2327_v44, %v2326_v53 }
 0x4b0   :  { %2101 = vrot.lane.b32.xlu1 %v5220_v3, %s3386_s15 }
 0x4b1   :  { %v2126_v50 = vpop.permute.xlu0 %2125  ;;  %v2178_v51 = vpop.permute.xlu1 %2177  ;;  %2955 = vmatpush3.bf16.msra.mxu1 %v5262_v52 }
 0x4b2   :  { %v2130_v41 = vmax.f32 %v5164_v48, %v2126_v50  ;;  %v2183_v9 = vmax.f32 %v2175_v24, %v2178_v51  ;;  %2956 = vmatprep.subr.bf16.mxu1 %v3474_v22  ;;  %v2325_v24 = vld [vmem:[%s5444_s5 + $0x78] sm:$0xff] }
 0x4b5   :  { %v2172_v57 = vpop.permute.xlu0 %2171  ;;  %v2140_v11 = vpop.permute.xlu1 %2139 }
 0x4b6   :  { %v2145_v1 = vmax.f32 %v2137_v2, %v2140_v11  ;;  %v2176_v4 = vmax.f32 %v5171_v32, %v2172_v57  ;;  %v5286_v57 = vld [vmem:[%s5440_s1] sm:$0x3]  ;;  %v2933_v11 = vpack.c.bf16 %v2313_v13, %v2312_v56  ;;  %s3478_s1 = smov 48   ;;  %v2321_v2 = vld [vmem:[%s5444_s5 + $0x58] sm:$0xff] }
 0x4b7   :  { %2913 = vmatmul.mubr.msk.f32.vlgmr.msra.gmra.mrb[0].mxu1 %vm2253_vm1, %v5286_v57 }
 0x4b8   :  { %2958 = vmatpush3.bf16.msra.mxu1 %v5262_v52  ;;  %2919 = vmatprep.mubr.msk.f32.mxu1 %vm3475_vm0, %v3476_v23 }
 0x4b9   :  { %v2134_v46 = vpop.permute.xlu0 %2133  ;;  %v2224_v54 = vpop.permute.xlu1 %2223  ;;  %2959 = vmatprep.subr.bf16.mxu1 %v3474_v22 }
 0x4ba   :  { %v2138_v36 = vmax.f32 %v2130_v41, %v2134_v46  ;;  %v2229_v20 = vmax.f32 %v2221_v15, %v2224_v54  ;;  %v2314_v54 = vld [vmem:[%s5444_s5 + $0x20] sm:$0xff] }
 0x4bd   :  { %v2218_v38 = vpop.permute.xlu0 %2217  ;;  %v2186_v59 = vpop.permute.xlu1 %2185 }
 0x4be   :  { %v2222_v55 = vmax.f32 %v5182_v26, %v2218_v38  ;;  %v2191_v42 = vmax.f32 %v2183_v9, %v2186_v59  ;;  %v2310_v26 = vld [vmem:[%s5444_s5] sm:$0xff]  ;;  %v2315_v38 = vld [vmem:[%s5444_s5 + $0x28] sm:$0xff]  ;;  %v2316_v59 = vld [vmem:[%s5444_s5 + $0x30] sm:$0xff] }
 0x4bf   :  { %v2930_v45 = vpack.c.bf16 %v2311_v19, %v2310_v26 }
 0x4c1   :  { %v2180_v18 = vpop.permute.xlu0 %2179  ;;  %v2148_v43 = vpop.permute.xlu1 %2147  ;;  %2931 = vmatpush3.bf16.msra.mxu0 %v2930_v45 }
 0x4c2   :  { %v5236_v7 = vmax.f32 %v2145_v1, %v2148_v43  ;;  %v2184_v33 = vmax.f32 %v2176_v4, %v2180_v18  ;;  %2932 = vmatprep.subr.bf16.mxu0 %v3474_v22  ;;  %v2936_v18 = vpack.c.bf16 %v2315_v38, %v2314_v54  ;;  %v2323_v1 = vld [vmem:[%s5444_s5 + $0x68] sm:$0xff] }
 0x4c5   :  { %v2142_v14 = vpop.permute.xlu0 %2141  ;;  %v2232_v49 = vpop.permute.xlu1 %2231  ;;  %2934 = vmatpush3.bf16.msra.mxu0 %v2933_v11 }
 0x4c6   :  { %v2146_v47 = vmax.f32 %v2138_v36, %v2142_v14  ;;  %v2237_v21 = vmax.f32 %v2229_v20, %v2232_v49  ;;  %2935 = vmatprep.subr.bf16.mxu0 %v3474_v22  ;;  %v2317_v14 = vld [vmem:[%s5444_s5 + $0x38] sm:$0xff]  ;;  %v2322_v49 = vld [vmem:[%s5444_s5 + $0x60] sm:$0xff] }
 0x4c7   :  { %v2939_v43 = vpack.c.bf16 %v2317_v14, %v2316_v59 }
 0x4c9   :  { %v2226_v39 = vpop.permute.xlu0 %2225  ;;  %v2194_v5 = vpop.permute.xlu1 %2193  ;;  %2937 = vmatpush3.bf16.msra.mxu0 %v2936_v18 }
 0x4ca   :  { %v2230_v37 = vmax.f32 %v2222_v55, %v2226_v39  ;;  %v5247_v32 = vmax.f32 %v2191_v42, %v2194_v5  ;;  %2938 = vmatprep.subr.bf16.mxu0 %v3474_v22  ;;  %v2318_v39 = vld [vmem:[%s5444_s5 + $0x40] sm:$0xff] }
 0x4cb   :  { %v2942_v41 = vpack.c.bf16 %v2319_v34, %v2318_v39 }
 0x4cd   :  { %v2188_v31 = vpop.permute.xlu0 %2187  ;;  %v2240_v29 = vpop.permute.xlu1 %2239  ;;  %2940 = vmatpush3.bf16.msra.mxu0 %v2939_v43 }
 0x4ce   :  { %v2192_v62 = vmax.f32 %v2184_v33, %v2188_v31  ;;  %v5277_v50 = vmax.f32 %v2237_v21, %v2240_v29  ;;  %2941 = vmatprep.subr.bf16.mxu0 %v3474_v22  ;;  %v2320_v31 = vld [vmem:[%s5444_s5 + $0x50] sm:$0xff] }
 0x4cf   :  { %v2945_v36 = vpack.c.bf16 %v2321_v2, %v2320_v31 }
 0x4d1   :  { %v2150_v30 = vpop.permute.xlu0 %2149  ;;  %2943 = vmatpush3.bf16.msra.mxu0 %v2942_v41  ;;  %v5351_v41 = vld [vmem:[%s5444_s5 + $0x91] ss:$0 sm:$0xff] }
 0x4d2   :  { %v5238_v6 = vmax.f32 %v2146_v47, %v2150_v30  ;;  %2944 = vmatprep.subr.bf16.mxu0 %v3474_v22  ;;  %v2948_v47 = vpack.c.bf16 %v2323_v1, %v2322_v49  ;;  %v2324_v30 = vld [vmem:[%s5444_s5 + $0x70] sm:$0xff] }
 0x4d3   :  { %v2951_v4 = vpack.c.bf16 %v2325_v24, %v2324_v30 }
 0x4d4   :  { %v3283_v10 = vpack.i.bf16 %v5238_v6, %v5236_v7 }
 0x4d5   :  { %v2234_v48 = vpop.permute.xlu0 %2233  ;;  %2946 = vmatpush3.bf16.msra.mxu0 %v2945_v36 }
 0x4d6   :  { %3284 = vrot.lane.b32.xlu1 %v3283_v10, %s3473_s4  ;;  %v2238_v40 = vmax.f32 %v2230_v37, %v2234_v48  ;;  %2947 = vmatprep.subr.bf16.mxu0 %v3474_v22 }
 0x4d9   :  { %v2196_v12 = vpop.permute.xlu0 %2195  ;;  %2949 = vmatpush3.bf16.msra.mxu0 %v2948_v47  ;;  %v2837_v47 = vld [vmem:[%s5444_s5 + $0x90] ss:$0 sm:$0xff] }
 0x4da   :  { %v5249_v27 = vmax.f32 %v2192_v62, %v2196_v12  ;;  %2950 = vmatprep.subr.bf16.mxu0 %v3474_v22 }
 0x4dc   :  { %v3288_v25 = vpack.i.bf16 %v5249_v27, %v5247_v32 }
 0x4dd   :  { %v2242_v8 = vpop.permute.xlu0 %2241  ;;  %2952 = vmatpush3.bf16.msra.mxu0 %v2951_v4 }
 0x4de   :  { %v5279_v51 = vmax.f32 %v2238_v40, %v2242_v8  ;;  %3289 = vrot.lane.b32.xlu0 %v3288_v25, %s3477_s14 }
 0x4e0   :  { %v3293_v46 = vpack.i.bf16 %v5279_v51, %v5277_v50 }
 0x4e2   :  { %3294 = vrot.lane.b32.xlu1 %v3293_v46, %s3478_s1 }
 0x50c   :  { %v2080_v10 = vpop.permute.xlu0 %2079 }
 0x50d   :  { %v2084_v48 = vmax.f32 %v5214_v17, %v2080_v10 }
 0x510   :  { %v2088_v5 = vpop.permute.xlu0 %2087 }
 0x511   :  { %v2092_v33 = vmax.f32 %v2084_v48, %v2088_v5 }
 0x514   :  { %v2096_v9 = vpop.permute.xlu0 %2095 }
 0x515   :  { %v2100_v55 = vmax.f32 %v2092_v33, %v2096_v9 }
 0x516   :  { %v2078_v15 = vpop.permute.xlu1 %2077 }
 0x517   :  { %v2083_v37 = vmax.f32 %v5220_v3, %v2078_v15 }
 0x518   :  { %v2104_v42 = vpop.permute.xlu0 %2103 }
 0x519   :  { %v2108_v62 = vmax.f32 %v2100_v55, %v2104_v42 }
 0x51a   :  { %v2086_v20 = vpop.permute.xlu1 %2085 }
 0x51b   :  { %v2248_v12 = vmax.f32 %v2108_v62, %v5238_v6  ;;  %v2091_v44 = vmax.f32 %v2083_v37, %v2086_v20 }
 0x51d   :  { %v2250_v21 = vmax.f32 %v2248_v12, %v5249_v27 }
 0x51e   :  { %v2094_v29 = vpop.permute.xlu1 %2093 }
 0x51f   :  { %v2252_v53 = vmax.f32 %v2250_v21, %v5279_v51  ;;  %v2099_v26 = vmax.f32 %v2091_v44, %v2094_v29 }
 0x521   :  { %v5342_v3 = vsel %vm2255_vm2, %v2252_v53, -inf }
 0x522   :  { %v2102_v40 = vpop.permute.xlu1 %2101 }
 0x523   :  { %v2107_v17 = vmax.f32 %v2099_v26, %v2102_v40 }
 0x525   :  { %v2247_v25 = vmax.f32 %v2107_v17, %v5236_v7 }
 0x527   :  { %v2249_v22 = vmax.f32 %v2247_v25, %v5247_v32 }
 0x529   :  { %v2251_v19 = vmax.f32 %v2249_v22, %v5277_v50 }
 0x52b   :  { %v5340_v6 = vsel %vm2253_vm1, %v2251_v19, -inf }
 0x52c   :  { %v2257_v27 = vmax.f32 %v5340_v6, %v5342_v3  ;;  %v2767_v6 = vld [vmem:[%s5441_s2] sm:$0x3] }
 0x548   :  { %v3285_v56 = vpop.permute.xlu1 %3284 }
 0x549   :  { %v3287_v45 = vunpack.i.h.bf16 %v3285_v56  ;;  %v3286_v13 = vunpack.i.l.bf16 %v3285_v56 }
 0x54b   :  { %v2292_v32 = vsel %vm2253_vm1, %v2108_v62, %v3287_v45  ;;  %v2291_v50 = vsel %vm2253_vm1, %v2107_v17, %v3286_v13 }
 0x550   :  { %v3290_v8 = vpop.permute.xlu0 %3289 }
 0x551   :  { %v3292_v51 = vunpack.i.h.bf16 %v3290_v8  ;;  %v3291_v11 = vunpack.i.l.bf16 %v3290_v8 }
 0x553   :  { %v2294_v38 = vsel %vm2293_vm3, %v2291_v50, %v3291_v11  ;;  %v2295_v18 = vsel %vm2293_vm3, %v2292_v32, %v3292_v51 }
 0x554   :  { %v3295_v7 = vpop.permute.xlu1 %3294 }
 0x555   :  { %v3297_v46 = vunpack.i.h.bf16 %v3295_v7  ;;  %v3296_v54 = vunpack.i.l.bf16 %v3295_v7 }
 0x557   :  { %v2297_v59 = vsel %vm2296_vm4, %v2294_v38, %v3296_v54  ;;  %v2298_v14 = vsel %vm2296_vm4, %v2295_v18, %v3297_v46 }
 0x558   :  { %v2302_v43 = vrot.slane %v2297_v59, 6  ;;  %v2303_v39 = vrot.slane %v2298_v14, 6 }
 0x55a   :  { %v2304_v34 = vsel %vm2301_vm5, %v2302_v43, %v2303_v39 }
 0x55b   :  { %2305 = vrot.lane.b32.xlu0 %v2304_v34, %s3479_s18 }
 0x58a   :  { %v2478_v31 = vpop.f32.mrb[0].mxu1 }
 0x58b   :  { %v2479_v2 = vadd.f32 %v5351_v41, %v2478_v31  ;;  %v2914_v36 = vpop.f32.mrb[1].mxu1 }
 0x58d   :  { %2490 = vrot.lane.b32.xlu1 %v2479_v2, %s3480_s20 }
 0x5cd   :  { %v2306_v49 = vpop.permute.xlu0 %2305 }
 0x5ce   :  { %v2309_v1 = vsel %vm2308_vm6, %v2297_v59, %v2306_v49 }
 0x5cf   :  { %2906 = vmatmul.mubr.f32.vlgmr.msra.gmra.mrb[0].mxu0 %v2309_v1 }
 0x5ff   :  { %v2491_v33 = vpop.permute.xlu1 %2490 }
 0x6a2   :  { %v2400_v30 = vpop.f32.mrb[0].mxu0 }
 0x6a3   :  { %v5358_v24 = vadd.f32 %v2837_v47, %v2400_v30  ;;  %v2907_v4 = vpop.f32.mrb[1].mxu0 }
 0x6a5   :  { %v2482_v10 = vadd.f32 %v2479_v2, %v5358_v24 }
 0x6a7   :  { %v2840_v5 = vmul.f32 -1.442695, %v2482_v10 }
 0x6a9   :  { %3299 = vpow2.f32 %v2840_v5 }
 0x6b3   :  { %v3300_v48 = vpop.eup %3299 }
 0x6b4   :  { %v2486_v9 = vadd.f32 1.0, %v3300_v48 }
 0x6b6   :  { %3301 = vrcp.f32 %v2486_v9 }
 0x6c0   :  { %v3302_v15 = vpop.eup %3301 }
 0x6c1   :  { %v2493_v55 = vmul.f32 %v3302_v15, %v2491_v33  ;;  %v2500_v37 = vsub.f32 1.0, %v3302_v15 }
 0x6c3   :  { %2495 = vrot.lane.b32.xlu0 %v2493_v55, %s3477_s14 }
 0x6c7   :  { %2506 = vrot.lane.b32.xlu0 %v5286_v57, %s3473_s4 }
 0x735   :  { %v2496_v42 = vpop.permute.xlu0 %2495 }
 0x736   :  { %v2498_v62 = vadd.f32 %v2496_v42, %v5358_v24 }
 0x738   :  { %3303 = vtanh.f32 %v2498_v62 }
 0x739   :  { %v2507_v12 = vpop.permute.xlu0 %2506 }
 0x73a   :  { %v2509_v29 = vmul.f32 %v3302_v15, %v2507_v12  ;;  %v580_v12 = vmax.f32 %v4037_v58, %v5649_v0 }
 0x742   :  { %v3304_v20 = vpop.eup %3303 }
 0x743   :  { %2502 = vrot.lane.b32.xlu1 %v3304_v20, %s3481_s23 }
 0x7b5   :  { %v2503_v21 = vpop.permute.xlu1 %2502 }
 0x7b6   :  { %v2505_v53 = vmul.f32 %v2503_v21, %v2500_v37  ;;  %v582_v21 = vmax.f32 %v580_v12, %v4294_v63 }
 0x7b8   :  { %v2510_v44 = vadd.f32 %v2509_v29, %v2505_v53  ;;  %v584_v53 = vmax.f32 %v582_v21, %v4413_v16 }
 0x7ba   :  { %2512 = vrot.lane.b32.xlu1 %v2510_v44, %s3481_s23  ;;  %v2615_v7 = vrot.slane %v2510_v44, 6 }
 0x82c   :  { %v2513_v26 = vpop.permute.xlu1 %2512 }
 0x82d   :  { %2516 = vst.msk [vmem:[#allocation2] sm:$0x3] %vm2515_vm7, %v2513_v26  ;;  %2920 = vmatmul.mubr.msk.f32.vlgmr.msra.gmra.mrb[2].mxu1 %vm2253_vm1, %v2513_v26  ;;  %v588_v26 = vsel %vm587_vm9, %v584_v53, -inf }
 0x82e   :  { %2961 = vmatpush3.bf16.msra.mxu1 %v5262_v52  ;;  %2926 = vmatprep.mubr.msk.f32.mxu1 %vm3475_vm0, %v3476_v23 }
 0x900   :  { %v2585_v57 = vpop.f32.mrb[2].mxu1 }
 0x901   :  { %v2586_v40 = vadd.f32 %v5351_v41, %v2585_v57  ;;  %v2921_v17 = vpop.f32.mrb[3].mxu1 }
 0x903   :  { %v2590_v25 = vrot.slane %v2586_v40, 6 }
 0x905   :  { %2599 = vrot.lane.b32.xlu0 %v2590_v25, %s3480_s20  ;;  %v2592_v22 = vadd.f32 %v2590_v25, %v5358_v24 }
 0x907   :  { %v2842_v19 = vmul.f32 -1.442695, %v2592_v22 }
 0x909   :  { %3305 = vpow2.f32 %v2842_v19 }
 0x913   :  { %v3306_v56 = vpop.eup %3305 }
 0x914   :  { %v2596_v8 = vadd.f32 1.0, %v3306_v56 }
 0x916   :  { %3307 = vrcp.f32 %v2596_v8 }
 0x920   :  { %v3308_v45 = vpop.eup %3307 }
 0x921   :  { %v2609_v32 = vsub.f32 1.0, %v3308_v45  ;;  %v2617_v54 = vmul.f32 %v3308_v45, %v2615_v7 }
 0x977   :  { %v2600_v13 = vpop.permute.xlu0 %2599 }
 0x978   :  { %v2602_v52 = vmul.f32 %v3308_v45, %v2600_v13 }
 0x97a   :  { %2604 = vrot.lane.b32.xlu1 %v2602_v52, %s3477_s14 }
 0x9ec   :  { %v2605_v23 = vpop.permute.xlu1 %2604 }
 0x9ed   :  { %v2607_v51 = vadd.f32 %v2605_v23, %v5358_v24 }
 0x9ef   :  { %3309 = vtanh.f32 %v2607_v51 }
 0x9f9   :  { %v3310_v11 = vpop.eup %3309 }
 0x9fa   :  { %2611 = vrot.lane.b32.xlu0 %v3310_v11, %s3481_s23 }
 0xa6c   :  { %v2612_v50 = vpop.permute.xlu0 %2611 }
 0xa6d   :  { %v2614_v46 = vmul.f32 %v2612_v50, %v2609_v32 }
 0xa6f   :  { %v2618_v38 = vadd.f32 %v2617_v54, %v2614_v46 }
 0xa71   :  { %v2625_v18 = vrot.slane %v2618_v38, 2  ;;  %v2726_v9 = vrot.slane %v2618_v38, 6 }
 0xa73   :  { %2626 = vrot.lane.b32.xlu1 %v2625_v18, %s3481_s23 }
 0xae5   :  { %v2627_v59 = vpop.permute.xlu1 %2626 }
 0xae6   :  { %2927 = vmatmul.mubr.msk.f32.vlgmr.msra.gmra.mrb[4].mxu1 %vm2253_vm1, %v2627_v59 }
 0xbb9   :  { %v2696_v14 = vpop.f32.mrb[4].mxu1 }
 0xbba   :  { %v2697_v43 = vadd.f32 %v5351_v41, %v2696_v14  ;;  %v2928_v39 = vpop.f32.mrb[5].mxu1  ;;  %v2845_v41 = vld [vmem:[%s5444_s5 + $0x98] ss:$0 sm:$0xff]  ;;  %s3482_s5 = smov 111  }
 0xbbc   :  { %v2701_v34 = vrot.slane %v2697_v43, 4 }
 0xbbe   :  { %2710 = vrot.lane.b32.xlu0 %v2701_v34, %s3480_s20  ;;  %v2703_v31 = vadd.f32 %v2701_v34, %v5358_v24 }
 0xbc0   :  { %v2844_v2 = vmul.f32 -1.442695, %v2703_v31 }
 0xbc2   :  { %3311 = vpow2.f32 %v2844_v2 }
 0xbcc   :  { %v3312_v36 = vpop.eup %3311 }
 0xbcd   :  { %v2707_v49 = vadd.f32 1.0, %v3312_v36 }
 0xbcf   :  { %3313 = vrcp.f32 %v2707_v49 }
 0xbd9   :  { %v3314_v1 = vpop.eup %3313 }
 0xbda   :  { %v2720_v48 = vsub.f32 1.0, %v3314_v1  ;;  %v2728_v55 = vmul.f32 %v3314_v1, %v2726_v9 }
 0xc30   :  { %v2711_v47 = vpop.permute.xlu0 %2710 }
 0xc31   :  { %v2713_v30 = vmul.f32 %v3314_v1, %v2711_v47 }
 0xc33   :  { %2715 = vrot.lane.b32.xlu1 %v2713_v30, %s3477_s14 }
 0xc37   :  { %2756 = vrot.lane.b32.xlu1 %v2845_v41, %s3473_s4 }
 0xca5   :  { %v2716_v4 = vpop.permute.xlu1 %2715 }
 0xca6   :  { %v2718_v10 = vadd.f32 %v2716_v4, %v5358_v24  ;;  %v579_v24 = vmax.f32 %v4056_v28, %v4189_v61 }
 0xca8   :  { %3315 = vtanh.f32 %v2718_v10  ;;  %v581_v37 = vmax.f32 %v579_v24, %v4312_v60 }
 0xca9   :  { %v2757_v42 = vpop.permute.xlu1 %2756 }
 0xcaa   :  { %v583_v29 = vmax.f32 %v581_v37, %v4440_v35 }
 0xcac   :  { %v586_v44 = vsel %vm585_vm8, %v583_v29, -inf }
 0xcad   :  { %v589_v57 = vmax.f32 %v586_v44, %v588_v26 }
 0xcb2   :  { %v3316_v5 = vpop.eup %3315 }
 0xcb3   :  { %2722 = vrot.lane.b32.xlu0 %v3316_v5, %s3481_s23 }
 0xd25   :  { %v2723_v33 = vpop.permute.xlu0 %2722 }
 0xd26   :  { %v2725_v15 = vmul.f32 %v2723_v33, %v2720_v48 }
 0xd28   :  { %v2729_v62 = vadd.f32 %v2728_v55, %v2725_v15 }
 0xd2a   :  { %v2759_v20 = vmul.f32 %v2757_v42, %v2729_v62 }
 0xd2c   :  { %2761 = vrot.lane.b32.xlu0 %v2759_v20, %s3481_s23 }
 0xd30   :  { %2620 = vrot.lane.b32.xlu0 %v2618_v38, %s3481_s23 }
 0xd34   :  { %2731 = vrot.lane.b32.xlu0 %v2729_v62, %s3481_s23 }
 0xd38   :  { %2768 = vrot.lane.b32.xlu0 %v2845_v41, %s3482_s5 }
 0xd3c   :  { %2776 = vrot.lane.b32.xlu0 %v2845_v41, %s3481_s23 }
 0xd5b   :  { %590 = vmax.xlane.f32.xlu0 %v589_v57 }
 0xd9e   :  { %v2762_v40 = vpop.permute.xlu0 %2761 }
 0xd9f   :  { %v2764_v28 = vsel %vm2734_vm10, %v2762_v40, 0.0 }
 0xda0   :  { %2765 = vadd.xlane.f32.xlu1 %v2764_v28 }
 0xda2   :  { %v2621_v58 = vpop.permute.xlu0 %2620 }
 0xda3   :  { %2624 = vst.msk [vmem:[#allocation2] sm:$0xc] %vm2623_vm11, %v2621_v58 }
 0xda4   :  { %2258 = vmax.xlane.f32.xlu1 %v2257_v27 }
 0xda6   :  { %v2732_v61 = vpop.permute.xlu0 %2731 }
 0xda7   :  { %2735 = vst.msk [vmem:[#allocation2] sm:$0x30] %vm2734_vm10, %v2732_v61  ;;  %2736 = vst.msk [vmem:[#allocation4 - $0x4] sm:$0x30] %vm2734_vm10, %v2732_v61 }
 0xdaa   :  { %v2769_v35 = vpop.permute.xlu0 %2768 }
 0xdab   :  { %v2771_v3 = vmul.f32 %v2769_v35, %v2767_v6 }
 0xdad   :  { %v2773_v27 = vrot.slane %v2771_v3, 4 }
 0xdae   :  { %v2737_v63 = vld [vmem:[#allocation2] sm:$0x3f]  ;;  %v2777_v0 = vpop.permute.xlu0 %2776 }
 0xdaf   :  { %v2738_v60 = vand.u32 2147483647, %v2737_v63 }
 0xdb1   :  { %v2740_v16 = vsel %vm2739_vm12, %v2738_v60, -inf }
 0xdb2   :  { %2741 = vmax.xlane.f32.xlu1 %v2740_v16 }
 0xde8   :  { %v591_v17 = vpop.xlane.xlu0 %590 }
 0xde9   :  { %v592_v25 = vrot.slane %v591_v17, 4 }
 0xdeb   :  { %v593_v22 = vmax.f32 %v591_v17, %v592_v25 }
 0xded   :  { %v594_v19 = vrot.slane %v593_v22, 2 }
 0xdef   :  { %v595_v56 = vmax.f32 %v593_v22, %v594_v19 }
 0xdf1   :  { %v596_v8 = vrot.slane %v595_v56, 1 }
 0xdf3   :  { %v597_v45 = vmax.f32 %v595_v56, %v596_v8 }
 0xdf5   :  { %2962 = vpush %v597_v45 }
 0xe2d   :  { %v2766_v13 = vpop.xlane.xlu1 %2765 }
 0xe2e   :  { %v2775_v52 = vadd.f32 %v2773_v27, %v2766_v13 }
 0xe30   :  { %v2779_v23 = vadd.f32 %v2777_v0, %v2775_v52 }
 0xe31   :  { %v2259_v51 = vpop.xlane.xlu1 %2258 }
 0xe32   :  { %v2846_v11 = vmul.f32 -1.442695, %v2779_v23  ;;  %v2260_v7 = vrot.slane %v2259_v51, 4  ;;  %v2780_v32 = vand.u32 2147483647, %v2779_v23 }
 0xe34   :  { %3317 = vpow2.f32 %v2846_v11  ;;  %v2261_v50 = vmax.f32 %v2259_v51, %v2260_v7  ;;  %v2782_v46 = vsel %vm2781_vm13, %v2780_v32, -inf }
 0xe35   :  { %2783 = vmax.xlane.f32.xlu1 %v2782_v46 }
 0xe36   :  { %v2262_v54 = vrot.slane %v2261_v50, 2 }
 0xe38   :  { %v2263_v38 = vmax.f32 %v2261_v50, %v2262_v54 }
 0xe3a   :  { %v2264_v18 = vrot.slane %v2263_v38, 1 }
 0xe3c   :  { %v2265_v59 = vmax.f32 %v2263_v38, %v2264_v18 }
 0xe3e   :  { %v3318_v14 = vpop.eup %3317  ;;  %2964 = vpush %v2265_v59 }
 0xe3f   :  { %v2795_v43 = vadd.f32 1.0, %v3318_v14  ;;  %v2742_v39 = vpop.xlane.xlu1 %2741 }
 0xe40   :  { %v2743_v34 = vrot.slane %v2742_v39, 4 }
 0xe41   :  { %3319 = vrcp.f32 %v2795_v43 }
 0xe42   :  { %v2744_v31 = vmax.f32 %v2742_v39, %v2743_v34 }
 0xe44   :  { %v2745_v2 = vrot.slane %v2744_v31, 2 }
 0xe46   :  { %v2746_v36 = vmax.f32 %v2744_v31, %v2745_v2 }
 0xe48   :  { %v2747_v49 = vrot.slane %v2746_v36, 1 }
 0xe4a   :  { %v2748_v1 = vmax.f32 %v2746_v36, %v2747_v49 }
 0xe4b   :  { %v3320_v47 = vpop.eup %3319 }
 0xe4c   :  { %2798 = vst.msk [vmem:[%s5445_s6 - $0x4] sm:$0x30] %vm2781_vm13, %v3320_v47 }
 0xe4d   :  { %2966 = vpush %v2748_v1 }
 0xe4e   :  { %3336 = shalt.err (!%p3333_p4)
}
 0xe4f   :  { %s3337_s10 = scalar_lea.hbm %s5446_s7, 32 }
 0xe50   :  { %p3338_p5 = scmp.ne.s32.totalorder %s5446_s7, %s3337_s10  ;;  %p3341_p6 = scmp.lt.u32.totalorder %s3337_s10, %s5446_s7 }
 0xe52   :  { %p3343_p7 = pnand %p3341_p6, %p3338_p5 }
 0xe54   :  { %3346 = shalt.err (!%p3343_p7)
}
 0xe55   :  { %2817 = dma.vmem_to_hbm [thread:$0]  %s2815_s28, 32, %s5446_s7, [#allocation5]  }
 0xe56   :  { %s2963_s16 = spop %2962  ;;  %s3347_s5 = scalar_lea.hbm %s5447_s8, 16 }
 0xe57   :  { %s2800_s20 = smax.f32 %s2963_s16, %s5442_s3  ;;  %p3348_p8 = scmp.ne.s32.totalorder %s5447_s8, %s3347_s5 }
 0xe58   :  { %p3351_p9 = scmp.lt.u32.totalorder %s3347_s5, %s5447_s8 }
 0xe5a   :  { %p3353_p10 = pnand %p3351_p9, %p3348_p8 }
 0xe6f   :  { %s2965_s17 = spop %2964 }
 0xe70   :  { %s2801_s21 = smax.f32 %s2965_s17, %s2800_s20 }
 0xe7e   :  { %s2967_s18 = spop %2966 }
 0xe7f   :  { %s2802_s22 = smax.f32 %s2967_s18, %s2801_s21 }
 0xec2   :  { %v2784_v30 = vpop.xlane.xlu1 %2783 }
 0xec3   :  { %v2785_v41 = vrot.slane %v2784_v30, 4 }
 0xec5   :  { %v2786_v4 = vmax.f32 %v2784_v30, %v2785_v41 }
 0xec7   :  { %v2787_v10 = vrot.slane %v2786_v4, 2 }
 0xec9   :  { %v2788_v5 = vmax.f32 %v2786_v4, %v2787_v10 }
 0xecb   :  { %v2789_v48 = vrot.slane %v2788_v5, 1 }
 0xecd   :  { %v2790_v9 = vmax.f32 %v2788_v5, %v2789_v48 }
 0xecf   :  { %2968 = vpush %v2790_v9 }
 0xf00   :  { %s2969_s23 = spop %2968 }
 0xf01   :  { %s2803_s24 = smax.f32 %s2969_s23, %s2802_s22 }
 0xf02   :  { %2805 = sst [smem:[#allocation7]] %s2803_s24 }
 0xf03   :  { %3356 = shalt.err (!%p3353_p10)
}
 0xf04   :  { %s3484_s3 = smov [#allocation7]  }
 0xf05   :  { %2825 = dma.smem_to_hbm %s3484_s3, 16, %s5447_s8, [#allocation6]  }
 0xf06   :  { %3357 = dma.done.wait [#allocation5], 32  }
 0xf07   :  { %3358 = vsyncadd [#allocation5], 4294967264 }
 0xf08   :  { %3359 = dma.done.wait [#allocation6], 16  }
 0xf09   :  { %3360 = vsyncadd [#allocation6], 4294967280 }
 0xf0a   :  { %2834 = sfence }
 0xf0b   :  { %2835 = vsyncpa [#allocation5], 1 }
 0xf0c   :  { %2836 = vsyncpa [#allocation6], 1 }

</bundles_post_ra>
